<compile_context>
chip_gen: v5e
topology: v5e:2x2
jax: 0.10.0
libtpu: 0.0.40
codegen_flags: <defaults>
</compile_context>

<pallas_src>
import jax
import jax.numpy as jnp
from jax.experimental import pallas as pl
from jax.experimental.pallas import tpu as pltpu


def _caa_kernel(alpha_ref, x_ref, wqk_ref, bqk_ref, wv_ref, bv_ref, out_ref):
    blk_b, C, N = x_ref.shape
    Cq = bqk_ref.shape[1] // 2

    # bf16 MXU operands; accumulation stays f32.
    x_bf = x_ref[...].astype(jnp.bfloat16).reshape(blk_b * C, N)

    # Fused query/key projection: a single (blk_b*C, N) @ (N, 2*Cq) MXU pass.
    # Columns [:Cq] are proj_query^T rows, columns [Cq:] are proj_key^T rows.
    qk = jax.lax.dot_general(x_bf, wqk_ref[...],
                             (((1,), (1,)), ((), ())),
                             preferred_element_type=jnp.float32)
    qk = jnp.maximum(qk + bqk_ref[...], 0.0)            # (blk_b*C, 2*Cq), f32

    alpha = alpha_ref[0, 0]
    wv = wv_ref[...]                                    # (C, C)  bf16
    bv = bv_ref[...]                                    # (C, 1)  f32

    for b in range(blk_b):                              # small, fully unrolled
        rows = slice(b * C, (b + 1) * C)
        q_t = qk[rows, :Cq]                             # proj_query^T (C, Cq)
        k_t = qk[rows, Cq:]                             # proj_key^T   (C, Cq)

        # similarity_mat = proj_key^T @ proj_query = k_t @ q_t^T : (C, C)
        sim = jax.lax.dot_general(k_t, q_t, (((1,), (1,)), ((), ())),
                                  preferred_element_type=jnp.float32)

        # softmax(rowmax(sim) - sim) == softmax(rowmin(sim) - sim): softmax is
        # shift-invariant and the row-min shift is the numerically stable form,
        # so one lane reduction suffices.
        e = jnp.exp(jnp.min(sim, axis=-1, keepdims=True) - sim)
        # alpha folded into the per-row normalization; reciprocal on the EUP.
        row_scale = alpha * pl.reciprocal(
            jnp.sum(e, axis=-1, keepdims=True), approx=True)
        aff = (e * row_scale).astype(jnp.bfloat16)      # (C, C)

        # proj_value = ReLU(BN3(Conv1d(x))) : (C, N)
        v = jnp.dot(wv, x_bf[rows, :],
                    preferred_element_type=jnp.float32) + bv
        v = jnp.maximum(v, 0.0).astype(jnp.bfloat16)

        # out = alpha * (affinity @ value) + x   (alpha already inside `aff`);
        # the residual x is re-read from the VMEM tile here (low vreg pressure).
        att = jnp.dot(aff, v, preferred_element_type=jnp.float32)
        out_ref[b] = (att + x_ref[b].astype(jnp.float32)).astype(out_ref.dtype)


def _pick_block_b(batch):
    # Prefer multiple batch elements per grid step (fills more MXU rows and
    # amortizes per-step overhead / weight revisit), but keep >= 2 grid steps
    # when possible so the "parallel" batch axis can still be split across
    # the two TensorCores on v7x.
    for bb in (4, 2):
        if batch % bb == 0 and batch // bb >= 2:
            return bb
    return 1


def caa_forward(x, params, *, block_b=None):
    B, C, N = x.shape
    wq, bq = params["wq"], params["bq"]
    wk, bk = params["wk"], params["bk"]
    wv, bv = params["wv"], params["bv"]
    Cq = wq.shape[0]  # 1024 // 8 = 128

    # Fuse the query/key projections into one weight; bf16 MXU operands halve
    # the weight DMA (accumulation stays f32 inside the kernel).
    wqk = jnp.concatenate([wq, wk], axis=0).astype(jnp.bfloat16)   # (2*Cq, N)
    bqk = jnp.concatenate([bq, bk], axis=1).astype(jnp.float32)    # (1, 2*Cq)
    wv_bf = wv.astype(jnp.bfloat16)                                # (C, C)
    bv_f = bv.astype(jnp.float32)                                  # (C, 1)
    alpha = params["alpha"].reshape(1, 1).astype(jnp.float32)

    if block_b is None:
        block_b = _pick_block_b(B)
    assert B % block_b == 0, (B, block_b)

    return pl.pallas_call(
        _caa_kernel,
        out_shape=jax.ShapeDtypeStruct((B, C, N), x.dtype),
        grid=(B // block_b,),
        in_specs=[
            pl.BlockSpec(memory_space=pltpu.MemorySpace.SMEM),      # alpha (1,1)
            pl.BlockSpec((block_b, C, N), lambda b: (b, 0, 0)),     # x tile
            pl.BlockSpec((2 * Cq, N), lambda b: (0, 0)),            # W_qk' (BN folded)
            pl.BlockSpec((1, 2 * Cq), lambda b: (0, 0)),            # b_qk'
            pl.BlockSpec((C, C), lambda b: (0, 0)),                 # W_v'  (BN folded)
            pl.BlockSpec((C, 1), lambda b: (0, 0)),                 # b_v'
        ],
        out_specs=pl.BlockSpec((block_b, C, N), lambda b: (b, 0, 0)),
        compiler_params=pltpu.CompilerParams(
            dimension_semantics=("parallel",),          # batch is independent
            vmem_limit_bytes=32 * 1024 * 1024),
    )(alpha, x, wqk, bqk, wv_bf, bv_f)


def init_params(key, in_dim, dtype=jnp.float32):
    """Deterministic synthetic params; BN (eval mode) folded into the 1x1 convs."""
    N = 1024
    Cq = N // 8
    eps = 1e-5
    ks = jax.random.split(key, 6)

    def bn_params(k, n):
        k1, k2, k3, k4 = jax.random.split(k, 4)
        gamma = 1.0 + 0.1 * jax.random.normal(k1, (n,), dtype)
        beta = 0.1 * jax.random.normal(k2, (n,), dtype)
        mean = 0.1 * jax.random.normal(k3, (n,), dtype)
        var = 1.0 + 0.5 * jax.random.uniform(k4, (n,), dtype)
        return gamma, beta, mean, var

    def fold(w, bn):
        gamma, beta, mean, var = bn
        s = gamma / jnp.sqrt(var + eps)
        return w * s[:, None], beta - s * mean

    # Conv1d default (kaiming-uniform) std ~= 1/sqrt(3*fan_in).
    wq_raw = jax.random.normal(ks[0], (Cq, N), dtype) / jnp.sqrt(3.0 * N)
    wk_raw = jax.random.normal(ks[1], (Cq, N), dtype) / jnp.sqrt(3.0 * N)
    wv_raw = jax.random.normal(ks[2], (in_dim, in_dim), dtype) / jnp.sqrt(3.0 * in_dim)

    wq, bq = fold(wq_raw, bn_params(ks[3], Cq))
    wk, bk = fold(wk_raw, bn_params(ks[4], Cq))
    wv, bv = fold(wv_raw, bn_params(ks[5], in_dim))

    # nn.Parameter(torch.zeros(1)) would make out == x; use a deterministic
    # nonzero alpha so the attention path is actually exercised.
    alpha = jnp.full((1, 1), 0.5, dtype)

    return dict(wq=wq, bq=bq.reshape(1, Cq),
                wk=wk, bk=bk.reshape(1, Cq),
                wv=wv, bv=bv.reshape(in_dim, 1),
                alpha=alpha)


def caa_reference(x, p):
    """Pure-JAX f32 reference of the same (BN-folded) forward pass."""
    hp = jax.lax.Precision.HIGHEST
    q_t = jax.nn.relu(jnp.einsum('bcn,qn->bcq', x, p['wq'], precision=hp)
                      + p['bq'][None])
    k_t = jax.nn.relu(jnp.einsum('bcn,qn->bcq', x, p['wk'], precision=hp)
                      + p['bk'][None])
    sim = jnp.einsum('bcq,bdq->bcd', k_t, q_t, precision=hp)
    aff = jax.nn.softmax(jnp.max(sim, -1, keepdims=True) - sim, axis=-1)
    v = jax.nn.relu(jnp.einsum('cd,bdn->bcn', p['wv'], x, precision=hp)
                    + p['bv'][None])
    out = p['alpha'][0, 0] * jnp.einsum('bcd,bdn->bcn', aff, v, precision=hp) + x
    return out


if __name__ == "__main__":
    key = jax.random.PRNGKey(0)
    kx, kp = jax.random.split(key)

    # N=1024 is mandated by the module definition; B=4 exercises block_b=2
    # batching with a 2-step "parallel" grid.
    B, in_dim, N = 4, 64, 1024
    x = jax.random.normal(kx, (B, in_dim, N), jnp.float32)
    params = init_params(kp, in_dim)

    out = jax.block_until_ready(caa_forward(x, params))
    ref = caa_reference(x, params)

    assert out.shape == (B, in_dim, N)
    assert bool(jnp.all(jnp.isfinite(out)))
    # bf16 MXU operands + EUP approx reciprocal vs. f32 HIGHEST reference:
    # rtol kept at 1e-2; atol of 2e-2 absorbs bf16 rounding of the attention
    # logits at near-zero outputs (typical max abs err is a few 1e-3).
    err = float(jnp.max(jnp.abs(out - ref)))
    assert bool(jnp.allclose(out, ref, rtol=1e-2, atol=2e-2)), (
        "max abs err = %e" % err)
    print("KERNEL_OK")
</pallas_src>

<mosaic_0001>
module attributes {stable_mosaic.version = 11 : i64} {
  func.func @_caa_kernel(%arg0: i32, %arg1: memref<1x1xf32, #tpu.memory_space<smem>>, %arg2: memref<2x64x1024xf32, #tpu.memory_space<vmem>>, %arg3: memref<256x1024xbf16, #tpu.memory_space<vmem>>, %arg4: memref<1x256xf32, #tpu.memory_space<vmem>>, %arg5: memref<64x64xbf16, #tpu.memory_space<vmem>>, %arg6: memref<64x1xf32, #tpu.memory_space<vmem>>, %arg7: memref<2x64x1024xf32, #tpu.memory_space<vmem>>) attributes {dimension_semantics = [#tpu.dimension_semantics<parallel>], iteration_bounds = array<i64: 2>, scalar_prefetch = 0 : i64, scratch_operands = 0 : i64, tpu.core_type = #tpu.core_type<tc>, window_params = [{transform_indices = @transform_0, window_bounds = array<i64: 1, 1>}, {transform_indices = @transform_1, window_bounds = array<i64: 2, 64, 1024>}, {pipeline_mode = #tpu.pipeline_mode<synchronous>, transform_indices = @transform_2, window_bounds = array<i64: 256, 1024>}, {pipeline_mode = #tpu.pipeline_mode<synchronous>, transform_indices = @transform_3, window_bounds = array<i64: 1, 256>}, {pipeline_mode = #tpu.pipeline_mode<synchronous>, transform_indices = @transform_4, window_bounds = array<i64: 64, 64>}, {pipeline_mode = #tpu.pipeline_mode<synchronous>, transform_indices = @transform_5, window_bounds = array<i64: 64, 1>}, {transform_indices = @transform_6, window_bounds = array<i64: 2, 64, 1024>}]} {
    %c0 = arith.constant 0 : index
    %c0_0 = arith.constant 0 : index
    %c0_1 = arith.constant 0 : index
    %0 = vector.load %arg2[%c0, %c0_0, %c0_1] : memref<2x64x1024xf32, #tpu.memory_space<vmem>>, vector<2x64x1024xf32>
    %1 = arith.truncf %0 : vector<2x64x1024xf32> to vector<2x64x1024xbf16>
    %2 = vector.shape_cast %1 : vector<2x64x1024xbf16> to vector<128x1024xbf16>
    %c0_2 = arith.constant 0 : index
    %c0_3 = arith.constant 0 : index
    %3 = vector.load %arg3[%c0_2, %c0_3] : memref<256x1024xbf16, #tpu.memory_space<vmem>>, vector<256x1024xbf16>
    %cst = arith.constant dense<0.000000e+00> : vector<128x256xf32>
    %4 = tpu.matmul %2, %3, %cst {dimension_numbers = #tpu.dot_dimension_numbers<[1], [1], [0], [0], [0, 0, 1, 0], [], []>} : vector<128x1024xbf16>, vector<256x1024xbf16>, vector<128x256xf32> -> vector<128x256xf32>
    %c0_4 = arith.constant 0 : index
    %c0_5 = arith.constant 0 : index
    %5 = vector.load %arg4[%c0_4, %c0_5] : memref<1x256xf32, #tpu.memory_space<vmem>>, vector<1x256xf32>
    %6 = vector.broadcast %5 : vector<1x256xf32> to vector<128x256xf32>
    %7 = arith.addf %4, %6 : vector<128x256xf32>
    %cst_6 = arith.constant 0.000000e+00 : f32
    %8 = vector.broadcast %cst_6 : f32 to vector<128x256xf32>
    %9 = arith.maximumf %7, %8 : vector<128x256xf32>
    %c0_7 = arith.constant 0 : index
    %c0_8 = arith.constant 0 : index
    %10 = memref.load %arg1[%c0_7, %c0_8] : memref<1x1xf32, #tpu.memory_space<smem>>
    %c0_9 = arith.constant 0 : index
    %c0_10 = arith.constant 0 : index
    %11 = vector.load %arg5[%c0_9, %c0_10] : memref<64x64xbf16, #tpu.memory_space<vmem>>, vector<64x64xbf16>
    %c0_11 = arith.constant 0 : index
    %c0_12 = arith.constant 0 : index
    %12 = vector.load %arg6[%c0_11, %c0_12] : memref<64x1xf32, #tpu.memory_space<vmem>>, vector<64x1xf32>
    %13 = vector.extract_strided_slice %9 {offsets = [0, 0], sizes = [64, 128], strides = [1, 1]} : vector<128x256xf32> to vector<64x128xf32>
    %14 = vector.extract_strided_slice %9 {offsets = [0, 128], sizes = [64, 128], strides = [1, 1]} : vector<128x256xf32> to vector<64x128xf32>
    %cst_13 = arith.constant dense<0.000000e+00> : vector<64x64xf32>
    %15 = tpu.matmul %14, %13, %cst_13 {dimension_numbers = #tpu.dot_dimension_numbers<[1], [1], [0], [0], [0, 0, 1, 0], [], []>} : vector<64x128xf32>, vector<64x128xf32>, vector<64x64xf32> -> vector<64x64xf32>
    %cst_14 = arith.constant dense<0x7F800000> : vector<64xf32>
    %16 = vector.multi_reduction <minimumf>, %15, %cst_14 [1] : vector<64x64xf32> to vector<64xf32>
    %17 = vector.shape_cast %16 : vector<64xf32> to vector<64x1xf32>
    %18 = vector.broadcast %17 : vector<64x1xf32> to vector<64x64xf32>
    %19 = arith.subf %18, %15 : vector<64x64xf32>
    %20 = math.exp %19 : vector<64x64xf32>
    %cst_15 = arith.constant dense<0.000000e+00> : vector<64xf32>
    %21 = vector.multi_reduction <add>, %20, %cst_15 [1] : vector<64x64xf32> to vector<64xf32>
    %22 = vector.shape_cast %21 : vector<64xf32> to vector<64x1xf32>
    %23 = tpu.reciprocal %22 {approx = true} : vector<64x1xf32> -> vector<64x1xf32>
    %24 = vector.broadcast %10 : f32 to vector<64x1xf32>
    %25 = arith.mulf %24, %23 : vector<64x1xf32>
    %26 = vector.broadcast %25 : vector<64x1xf32> to vector<64x64xf32>
    %27 = arith.mulf %20, %26 : vector<64x64xf32>
    %28 = arith.truncf %27 : vector<64x64xf32> to vector<64x64xbf16>
    %29 = vector.extract_strided_slice %2 {offsets = [0, 0], sizes = [64, 1024], strides = [1, 1]} : vector<128x1024xbf16> to vector<64x1024xbf16>
    %cst_16 = arith.constant dense<0.000000e+00> : vector<64x1024xf32>
    %30 = tpu.matmul %11, %29, %cst_16 {dimension_numbers = #tpu.dot_dimension_numbers<[1], [0], [0], [1], [0, 0, 1, 1], [], []>} : vector<64x64xbf16>, vector<64x1024xbf16>, vector<64x1024xf32> -> vector<64x1024xf32>
    %31 = vector.broadcast %12 : vector<64x1xf32> to vector<64x1024xf32>
    %32 = arith.addf %30, %31 : vector<64x1024xf32>
    %cst_17 = arith.constant 0.000000e+00 : f32
    %33 = vector.broadcast %cst_17 : f32 to vector<64x1024xf32>
    %34 = arith.maximumf %32, %33 : vector<64x1024xf32>
    %35 = arith.truncf %34 : vector<64x1024xf32> to vector<64x1024xbf16>
    %cst_18 = arith.constant dense<0.000000e+00> : vector<64x1024xf32>
    %36 = tpu.matmul %28, %35, %cst_18 {dimension_numbers = #tpu.dot_dimension_numbers<[1], [0], [0], [1], [0, 0, 1, 1], [], []>} : vector<64x64xbf16>, vector<64x1024xbf16>, vector<64x1024xf32> -> vector<64x1024xf32>
    %c0_19 = arith.constant 0 : index
    %c0_20 = arith.constant 0 : index
    %c0_21 = arith.constant 0 : index
    %37 = vector.load %arg2[%c0_19, %c0_20, %c0_21] : memref<2x64x1024xf32, #tpu.memory_space<vmem>>, vector<1x64x1024xf32>
    %38 = vector.shape_cast %37 : vector<1x64x1024xf32> to vector<64x1024xf32>
    %39 = arith.addf %36, %38 : vector<64x1024xf32>
    %c0_22 = arith.constant 0 : index
    %c0_23 = arith.constant 0 : index
    %c0_24 = arith.constant 0 : index
    %40 = vector.load %arg7[%c0_22, %c0_23, %c0_24] : memref<2x64x1024xf32, #tpu.memory_space<vmem>>, vector<1x64x1024xf32>
    %41 = vector.shape_cast %40 : vector<1x64x1024xf32> to vector<64x1024xf32>
    %42 = vector.shape_cast %39 : vector<64x1024xf32> to vector<1x64x1024xf32>
    tpu.vector_store %arg7[%c0_22, %c0_23, %c0_24], %42 {strides = array<i32>} : memref<2x64x1024xf32, #tpu.memory_space<vmem>>, vector<1x64x1024xf32>,
    %43 = vector.extract_strided_slice %9 {offsets = [64, 0], sizes = [64, 128], strides = [1, 1]} : vector<128x256xf32> to vector<64x128xf32>
    %44 = vector.extract_strided_slice %9 {offsets = [64, 128], sizes = [64, 128], strides = [1, 1]} : vector<128x256xf32> to vector<64x128xf32>
    %cst_25 = arith.constant dense<0.000000e+00> : vector<64x64xf32>
    %45 = tpu.matmul %44, %43, %cst_25 {dimension_numbers = #tpu.dot_dimension_numbers<[1], [1], [0], [0], [0, 0, 1, 0], [], []>} : vector<64x128xf32>, vector<64x128xf32>, vector<64x64xf32> -> vector<64x64xf32>
    %cst_26 = arith.constant dense<0x7F800000> : vector<64xf32>
    %46 = vector.multi_reduction <minimumf>, %45, %cst_26 [1] : vector<64x64xf32> to vector<64xf32>
    %47 = vector.shape_cast %46 : vector<64xf32> to vector<64x1xf32>
    %48 = vector.broadcast %47 : vector<64x1xf32> to vector<64x64xf32>
    %49 = arith.subf %48, %45 : vector<64x64xf32>
    %50 = math.exp %49 : vector<64x64xf32>
    %cst_27 = arith.constant dense<0.000000e+00> : vector<64xf32>
    %51 = vector.multi_reduction <add>, %50, %cst_27 [1] : vector<64x64xf32> to vector<64xf32>
    %52 = vector.shape_cast %51 : vector<64xf32> to vector<64x1xf32>
    %53 = tpu.reciprocal %52 {approx = true} : vector<64x1xf32> -> vector<64x1xf32>
    %54 = vector.broadcast %10 : f32 to vector<64x1xf32>
    %55 = arith.mulf %54, %53 : vector<64x1xf32>
    %56 = vector.broadcast %55 : vector<64x1xf32> to vector<64x64xf32>
    %57 = arith.mulf %50, %56 : vector<64x64xf32>
    %58 = arith.truncf %57 : vector<64x64xf32> to vector<64x64xbf16>
    %59 = vector.extract_strided_slice %2 {offsets = [64, 0], sizes = [64, 1024], strides = [1, 1]} : vector<128x1024xbf16> to vector<64x1024xbf16>
    %cst_28 = arith.constant dense<0.000000e+00> : vector<64x1024xf32>
    %60 = tpu.matmul %11, %59, %cst_28 {dimension_numbers = #tpu.dot_dimension_numbers<[1], [0], [0], [1], [0, 0, 1, 1], [], []>} : vector<64x64xbf16>, vector<64x1024xbf16>, vector<64x1024xf32> -> vector<64x1024xf32>
    %61 = vector.broadcast %12 : vector<64x1xf32> to vector<64x1024xf32>
    %62 = arith.addf %60, %61 : vector<64x1024xf32>
    %cst_29 = arith.constant 0.000000e+00 : f32
    %63 = vector.broadcast %cst_29 : f32 to vector<64x1024xf32>
    %64 = arith.maximumf %62, %63 : vector<64x1024xf32>
    %65 = arith.truncf %64 : vector<64x1024xf32> to vector<64x1024xbf16>
    %cst_30 = arith.constant dense<0.000000e+00> : vector<64x1024xf32>
    %66 = tpu.matmul %58, %65, %cst_30 {dimension_numbers = #tpu.dot_dimension_numbers<[1], [0], [0], [1], [0, 0, 1, 1], [], []>} : vector<64x64xbf16>, vector<64x1024xbf16>, vector<64x1024xf32> -> vector<64x1024xf32>
    %c1 = arith.constant 1 : index
    %c0_31 = arith.constant 0 : index
    %c0_32 = arith.constant 0 : index
    %67 = vector.load %arg2[%c1, %c0_31, %c0_32] : memref<2x64x1024xf32, #tpu.memory_space<vmem>>, vector<1x64x1024xf32>
    %68 = vector.shape_cast %67 : vector<1x64x1024xf32> to vector<64x1024xf32>
    %69 = arith.addf %66, %68 : vector<64x1024xf32>
    %c1_33 = arith.constant 1 : index
    %c0_34 = arith.constant 0 : index
    %c0_35 = arith.constant 0 : index
    %70 = vector.load %arg7[%c1_33, %c0_34, %c0_35] : memref<2x64x1024xf32, #tpu.memory_space<vmem>>, vector<1x64x1024xf32>
    %71 = vector.shape_cast %70 : vector<1x64x1024xf32> to vector<64x1024xf32>
    %72 = vector.shape_cast %69 : vector<64x1024xf32> to vector<1x64x1024xf32>
    tpu.vector_store %arg7[%c1_33, %c0_34, %c0_35], %72 {strides = array<i32>} : memref<2x64x1024xf32, #tpu.memory_space<vmem>>, vector<1x64x1024xf32>,
    return
  }
  func.func @transform_0(%arg0: i32) -> (i32, i32) {
    %c0_i32 = arith.constant 0 : i32
    %c0_i32_0 = arith.constant 0 : i32
    %c0_i32_1 = arith.constant 0 : i32
    return %c0_i32, %c0_i32_0 : i32, i32
  }
  func.func @transform_1(%arg0: i32) -> (i32, i32, i32) {
    %c0_i32 = arith.constant 0 : i32
    %c0_i32_0 = arith.constant 0 : i32
    %c0_i32_1 = arith.constant 0 : i32
    return %arg0, %c0_i32, %c0_i32_0 : i32, i32, i32
  }
  func.func @transform_2(%arg0: i32) -> (i32, i32) {
    %c0_i32 = arith.constant 0 : i32
    %c0_i32_0 = arith.constant 0 : i32
    %c0_i32_1 = arith.constant 0 : i32
    return %c0_i32, %c0_i32_0 : i32, i32
  }
  func.func @transform_3(%arg0: i32) -> (i32, i32) {
    %c0_i32 = arith.constant 0 : i32
    %c0_i32_0 = arith.constant 0 : i32
    %c0_i32_1 = arith.constant 0 : i32
    return %c0_i32, %c0_i32_0 : i32, i32
  }
  func.func @transform_4(%arg0: i32) -> (i32, i32) {
    %c0_i32 = arith.constant 0 : i32
    %c0_i32_0 = arith.constant 0 : i32
    %c0_i32_1 = arith.constant 0 : i32
    return %c0_i32, %c0_i32_0 : i32, i32
  }
  func.func @transform_5(%arg0: i32) -> (i32, i32) {
    %c0_i32 = arith.constant 0 : i32
    %c0_i32_0 = arith.constant 0 : i32
    %c0_i32_1 = arith.constant 0 : i32
    return %c0_i32, %c0_i32_0 : i32, i32
  }
  func.func @transform_6(%arg0: i32) -> (i32, i32, i32) {
    %c0_i32 = arith.constant 0 : i32
    %c0_i32_0 = arith.constant 0 : i32
    %c0_i32_1 = arith.constant 0 : i32
    return %arg0, %c0_i32, %c0_i32_0 : i32, i32, i32
  }
}

</mosaic_0001>

<bundles_post_ra>
// kernel: tpu_custom_call.1
= control target key start
LH: loop header
LB: loop body
LE: loop exit
PB: predicated region body
PF: predicated region fallthrough
CT: control target
= control target key end

     0   :  { %s7456_s0 = inlined_call_operand.<no memory space> [shape: f32[1,1], index: 0, kind: input, shape index: {}]   ;;  %s7457_s1 = inlined_call_operand.hbm [shape: f32[4,64,1024], index: 1, kind: input, shape index: {}]   ;;  %s7458_s2 = inlined_call_operand.hbm [shape: bf16[256,1024], index: 2, kind: input, shape index: {}]   ;;  %s7459_s3 = inlined_call_operand.vmem [shape: f32[1,256], index: 3, kind: input, shape index: {}]   ;;  %s7460_s4 = inlined_call_operand.vmem [shape: bf16[64,64], index: 4, kind: input, shape index: {}]   ;;  %s7461_s5 = inlined_call_operand.vmem [shape: f32[64,1], index: 5, kind: input, shape index: {}]   ;;  %s7462_s6 = inlined_call_operand.hbm [shape: f32[4,64,1024], index: 6, kind: output, shape index: {}]  }
   0x1   :  { %11 = sst [smem:[#allocation2]] %s7456_s0 }
   0x2   :  { %12 = vsyncpa [#allocation4], 0 }
   0x3   :  { %14 = vsyncpa [#allocation4 + $0x1], 0 }
   0x4   :  { %15 = vsyncpa [#allocation7], 0 }
   0x5   :  { %16 = vsyncpa [#allocation5], 0 }
   0x6   :  { %18 = vsyncpa [#allocation5 + $0x1], 0  ;;  %s5535_s23 = smov 0   ;;  %s5537_s24 = smov 0  }
   0x7   :  { %s5539_s25 = smov 0   ;;  %s5541_s26 = smov 0  }
   0x8 LB: > { %s5556_s0 = sadd.s32 4294967295, %s5487_s26   ;;  %s4271_s27 = sadd.s32 4294967294, %s5487_s26   ;;  %s5487_s26 = sphi %s5541_s26, %s7792_s26   ;;  %s5483_s25 = sphi %s5539_s25, %s7791_s25   ;;  %s5479_s24 = sphi %s5537_s24, %s7790_s24   ;;  %s5475_s23 = sphi %s5535_s23, %s7789_s23  }
   0x9   : > { %p65_p0 = scmp.ne.s32.totalorder %s5479_s24, %s5475_s23  ;;  %p66_p1 = scmp.eq.s32.totalorder %s5556_s0, 0 }
   0xa   : > { %p173_p2 = scmp.eq.s32.totalorder %s5556_s0, 1  ;;  %p179_p3 = scmp.eq.s32.totalorder %s4271_s27, 1 }
   0xb   : > { %p5565_p4 = por %p66_p1, %p65_p0  ;;  %p4272_p5 = scmp.ge.s32.totalorder %s5487_s26, 1 }
   0xc   : > { %p5570_p6 = por %p179_p3, %p65_p0  ;;  %p186_p7 = scmp.lt.s32.totalorder %s5487_s26, 3 }
   0xd   : > { %s200_s8 = sshll.u32 %s7458_s2, 4  ;;  %s5489_s10 = smov [#allocation6]   ;;  %s201_s8 = int_to_ptr.hbm [resolvable:$true] %s200_s8 }
   0xe   : > { %p5578_p8 = pnand %p4272_p5, %p186_p7  ;;  %s202_s11 = sshll.u32 %s5489_s10, 4  ;;  %s203_s11 = int_to_ptr.vmem [resolvable:$true] %s202_s11 }
   0xf   : > { %s5588_s12 = sadd.s32 1, %s5487_s26   ;;  %s5490_s13 = smov 512  }
  0x10   : > { %p5229_p9 = pneg %p5578_p8  ;;  %s5491_s14 = smov 32  }
  0x11   : > { %s49_s15 = ssub.s32 %s5487_s26, %s5588_s12  ;;  %s52_s16 = sadd.s32 1, %s5483_s25 }
  0x12   : > { %p5230_p10 = pnand %p5229_p9, %p66_p1  ;;  %p50_p12 = scmp.eq.s32.totalorder %s49_s15, 0 }
  0x13   : > { %p59_p13 = scmp.ne.s32.totalorder %s5483_s25, %s5479_s24  ;;  %p60_p0 = scmp.eq.s32.totalorder %s5487_s26, 0 }
  0x14   : > { %5232 = dma.hbm_to_vmem [thread:$0]  (!%p5230_p10), %s201_s8, 16384, %s203_s11, [#allocation7], %s5490_s13, %s5490_s13, %s5491_s14  }
  0x15   : > { %p5242_p3 = scmp.lt.s32.totalorder %s5487_s26, 2  ;;  %p61_p5 = por %p60_p0, %p59_p13 }
  0x16   : > { %s5598_s17 = scalar_select %p50_p12, %s5483_s25, %s52_s16  }
  0x17   : > { %p5602_p7 = por %p173_p2, %p59_p13  ;;  %s225_s19 = sand.u32 1, %s5483_s25  }
  0x18   : > { %s5074_s20 = sshll.u32 %s5487_s26, 10  ;;  %s4275_s21 = sshll.u32 %s225_s19, 10 }
  0x19   : > { %s235_s30 = scalar_lea.hbm %s7457_s1, %s5074_s20  ;;  %s229_s8 = scalar_lea.vmem [#allocation3], %s4275_s21 }
  0x1a   : > { %s236_s7 = sshll.u32 %s235_s30, 4  ;;  %s238_s10 = sshll.u32 %s229_s8, 4  ;;  %s237_s7 = int_to_ptr.hbm [resolvable:$true] %s236_s7  ;;  %s239_s10 = int_to_ptr.vmem [resolvable:$true] %s238_s10 }
  0x1b   : > { %p5613_p9 = pnand %p5242_p3, %p61_p5  ;;  %s226_s13 = scalar_lea.sflag [#allocation4], %s225_s19 }
  0x1c   : > { %s5387_s14 = sshra.s32 %s237_s7, 4  ;;  %s5394_s21 = scalar_lea.hbm %s7457_s1, 2048  ;;  %s5388_s14 = int_to_ptr.hbm [resolvable:$true] %s5387_s14 }
  0x1d   : > { %s5389_s15 = scalar_lea.hbm %s5388_s14, 1024  ;;  %p5391_p10 = pneg %p5613_p9 }
  0x1e   : > { %p5390_p2 = scmp.ne.s32.totalorder %s5388_s14, %s5389_s15  ;;  %p5395_p0 = scmp.lt.s32.totalorder %s5388_s14, %s7457_s1 }
  0x1f   : > { %p5396_p3 = scmp.lt.s32.totalorder %s5394_s21, %s5389_s15 }
  0x20   : > { %p5392_p12 = pnand %p5391_p10, %p5390_p2 }
  0x21   : > { %p5397_p5 = por %p5396_p3, %p5395_p0 }
  0x22   : > { %p5393_p13 = pneg %p5392_p12 }
  0x24   : > { %p5398_p11 = pnand %p5397_p5, %p5393_p13 }
  0x26   : > { %5401 = shalt.err (!%p5398_p11)
}
  0x27   : > { %s5492_s19 = smov 1024   ;;  %s5493_s30 = smov 64  }
  0x28   : > { %5236 = dma.hbm_to_vmem [thread:$0]  (!%p5613_p9), %s237_s7, 16384, %s239_s10, %s226_s13, %s5492_s19, %s5492_s19, %s5493_s30  }
  0x29   : > { %250 = sbr.rel (%p5578_p8) target bundleno = 1821 (0x71d), region = 44 }
  0x2e   : > { %s5630_s8 = sand.u32 1, %s5479_s24  }
  0x2f   : > { %s4280_s14 = sshll.u32 %s5630_s8, 10  ;;  %s253_s15 = scalar_lea.sflag [#allocation4], %s5630_s8 }
  0x30   : > { %s5636_s16 = scalar_lea.vmem [#allocation3], %s4280_s14 }
  0x31   : > { %5462 = dma.done.wait (%p5565_p4), %s253_s15, 16384  }
  0x32   : > { %5464 = vsyncadd (%p5565_p4), %s253_s15, 4294950912 }
  0x33   : > { %5466 = dma.done.wait (%p66_p1), [#allocation7], 16384  }
  0x34   : > { %5468 = vsyncadd (%p66_p1), [#allocation7], 4294950912  ;;  %v4509_v0 = vld [vmem:[#allocation6 + $0x1c0] sm:$0xf]  ;;  %v5131_v2 = vld [vmem:[#allocation6 + $0x1c4] sm:$0xf] }
  0x35   : > { %v5135_v1 = vld [vmem:[#allocation6 + $0x1dc] sm:$0xf0]  ;;  %v4511_v4 = vld [vmem:[#allocation6 + $0x1e0] sm:$0xf0]  ;;  %v4517_v5 = vld [vmem:[#allocation6 + $0x1c8] sm:$0xf] }
  0x36   : > { %v4510_v3 = vor.u32 %v5135_v1, %v4509_v0  ;;  %v5136_v6 = vld [vmem:[#allocation6 + $0x1e4] sm:$0xf0]  ;;  %v4514_v7 = vor.u32 %v5131_v2, %v4511_v4  ;;  %v5132_v9 = vld [vmem:[#allocation6 + $0x1cc] sm:$0xf]  ;;  %v4477_v12 = vld [vmem:[#allocation6 + $0x180] sm:$0xf] }
  0x37   : > { %v4518_v8 = vor.u32 %v5136_v6, %v4517_v5  ;;  %v4519_v10 = vld [vmem:[#allocation6 + $0x1e8] sm:$0xf0]  ;;  %v5127_v13 = vld [vmem:[#allocation6 + $0x19c] sm:$0xf0]  ;;  %v5123_v14 = vld [vmem:[#allocation6 + $0x184] sm:$0xf] }
  0x38   : > { %1580 = vmatpush.bf16.xpose.msra.mxu0 %v4510_v3  ;;  %v4522_v11 = vor.u32 %v5132_v9, %v4519_v10  ;;  %1629 = vmatpush.bf16.xpose.msra.mxu1 %v4514_v7  ;;  %v4479_v15 = vld [vmem:[#allocation6 + $0x1a0] sm:$0xf0]  ;;  %v4485_v16 = vld [vmem:[#allocation6 + $0x188] sm:$0xf]  ;;  %v5124_v18 = vld [vmem:[#allocation6 + $0x18c] sm:$0xf]  ;;  %v4478_v20 = vor.u32 %v5127_v13, %v4477_v12 }
  0x39   : > { %1678 = vmatpush.bf16.xpose.msra.mxu2 %v4518_v8  ;;  %v5128_v17 = vld [vmem:[#allocation6 + $0x1a4] sm:$0xf0]  ;;  %v4487_v19 = vld [vmem:[#allocation6 + $0x1a8] sm:$0xf0]  ;;  %v4482_v21 = vor.u32 %v5123_v14, %v4479_v15  ;;  %v4445_v24 = vld [vmem:[#allocation6 + $0x140] sm:$0xf] }
  0x3a   : > { %1727 = vmatpush.bf16.xpose.msra.mxu3 %v4522_v11  ;;  %v4486_v22 = vor.u32 %v5128_v17, %v4485_v16  ;;  %v4490_v23 = vor.u32 %v5124_v18, %v4487_v19  ;;  %v5119_v25 = vld [vmem:[#allocation6 + $0x15c] sm:$0xf0]  ;;  %v5115_v26 = vld [vmem:[#allocation6 + $0x144] sm:$0xf]  ;;  %v4453_v28 = vld [vmem:[#allocation6 + $0x148] sm:$0xf] }
  0x3b   : > { %v4447_v27 = vld [vmem:[#allocation6 + $0x160] sm:$0xf0]  ;;  %v5120_v29 = vld [vmem:[#allocation6 + $0x164] sm:$0xf0]  ;;  %v5116_v30 = vld [vmem:[#allocation6 + $0x14c] sm:$0xf]  ;;  %v4446_v32 = vor.u32 %v5119_v25, %v4445_v24 }
  0x3c   : > { %v4455_v31 = vld [vmem:[#allocation6 + $0x168] sm:$0xf0]  ;;  %v4450_v33 = vor.u32 %v5115_v26, %v4447_v27  ;;  %v4454_v34 = vor.u32 %v5120_v29, %v4453_v28  ;;  %v4413_v36 = vld [vmem:[#allocation6 + $0x100] sm:$0xf]  ;;  %v5107_v38 = vld [vmem:[#allocation6 + $0x104] sm:$0xf] }
  0x3d   : > { %v4458_v35 = vor.u32 %v5116_v30, %v4455_v31  ;;  %v5111_v37 = vld [vmem:[#allocation6 + $0x11c] sm:$0xf0]  ;;  %v4415_v39 = vld [vmem:[#allocation6 + $0x120] sm:$0xf0]  ;;  %v4421_v40 = vld [vmem:[#allocation6 + $0x108] sm:$0xf] }
  0x3e   : > { %v5112_v41 = vld [vmem:[#allocation6 + $0x124] sm:$0xf0]  ;;  %v5108_v42 = vld [vmem:[#allocation6 + $0x10c] sm:$0xf]  ;;  %v4414_v44 = vor.u32 %v5111_v37, %v4413_v36  ;;  %v4418_v45 = vor.u32 %v5107_v38, %v4415_v39  ;;  %v4381_v48 = vld [vmem:[#allocation6 + $0xc0] sm:$0xf] }
  0x3f   : > { %v4423_v43 = vld [vmem:[#allocation6 + $0x128] sm:$0xf0]  ;;  %v4422_v46 = vor.u32 %v5112_v41, %v4421_v40  ;;  %v5103_v49 = vld [vmem:[#allocation6 + $0xdc] sm:$0xf0]  ;;  %v5099_v50 = vld [vmem:[#allocation6 + $0xc4] sm:$0xf] }
  0x40   : > { %1581 = vmatpush.bf16.xpose.msra.mxu0 %v4478_v20  ;;  %1630 = vmatpush.bf16.xpose.msra.mxu1 %v4482_v21  ;;  %v4426_v47 = vor.u32 %v5108_v42, %v4423_v43  ;;  %v4383_v51 = vld [vmem:[#allocation6 + $0xe0] sm:$0xf0]  ;;  %v4389_v52 = vld [vmem:[#allocation6 + $0xc8] sm:$0xf]  ;;  %v5100_v54 = vld [vmem:[#allocation6 + $0xcc] sm:$0xf]  ;;  %v4382_v56 = vor.u32 %v5103_v49, %v4381_v48 }
  0x41   : > { %1679 = vmatpush.bf16.xpose.msra.mxu2 %v4486_v22  ;;  %v5104_v53 = vld [vmem:[#allocation6 + $0xe4] sm:$0xf0]  ;;  %v4391_v55 = vld [vmem:[#allocation6 + $0xe8] sm:$0xf0]  ;;  %v4386_v57 = vor.u32 %v5099_v50, %v4383_v51  ;;  %v4349_v60 = vld [vmem:[#allocation6 + $0x80] sm:$0xf] }
  0x42   : > { %1728 = vmatpush.bf16.xpose.msra.mxu3 %v4490_v23  ;;  %v4390_v58 = vor.u32 %v5104_v53, %v4389_v52  ;;  %v4394_v59 = vor.u32 %v5100_v54, %v4391_v55  ;;  %v5095_v61 = vld [vmem:[#allocation6 + $0x9c] sm:$0xf0]  ;;  %v5091_v62 = vld [vmem:[#allocation6 + $0x84] sm:$0xf]  ;;  %v4357_v0 = vld [vmem:[#allocation6 + $0x88] sm:$0xf] }
  0x43   : > { %v4351_v63 = vld [vmem:[#allocation6 + $0xa0] sm:$0xf0]  ;;  %v5096_v1 = vld [vmem:[#allocation6 + $0xa4] sm:$0xf0]  ;;  %v5092_v2 = vld [vmem:[#allocation6 + $0x8c] sm:$0xf]  ;;  %v4350_v4 = vor.u32 %v5095_v61, %v4349_v60 }
  0x44   : > { %v4359_v3 = vld [vmem:[#allocation6 + $0xa8] sm:$0xf0]  ;;  %v4354_v5 = vor.u32 %v5091_v62, %v4351_v63  ;;  %v4358_v6 = vor.u32 %v5096_v1, %v4357_v0  ;;  %v4317_v8 = vld [vmem:[#allocation6 + $0x40] sm:$0xf]  ;;  %v5083_v10 = vld [vmem:[#allocation6 + $0x44] sm:$0xf] }
  0x45   : > { %v4362_v7 = vor.u32 %v5092_v2, %v4359_v3  ;;  %v5087_v9 = vld [vmem:[#allocation6 + $0x5c] sm:$0xf0]  ;;  %v4319_v11 = vld [vmem:[#allocation6 + $0x60] sm:$0xf0]  ;;  %v4325_v12 = vld [vmem:[#allocation6 + $0x48] sm:$0xf] }
  0x46   : > { %v5088_v13 = vld [vmem:[#allocation6 + $0x64] sm:$0xf0]  ;;  %v5084_v14 = vld [vmem:[#allocation6 + $0x4c] sm:$0xf]  ;;  %v4318_v16 = vor.u32 %v5087_v9, %v4317_v8  ;;  %v4322_v17 = vor.u32 %v5083_v10, %v4319_v11  ;;  %v4285_v20 = vld [vmem:[#allocation6] sm:$0xf] }
  0x47   : > { %v4327_v15 = vld [vmem:[#allocation6 + $0x68] sm:$0xf0]  ;;  %v4326_v18 = vor.u32 %v5088_v13, %v4325_v12  ;;  %v5079_v21 = vld [vmem:[#allocation6 + $0x1c] sm:$0xf0]  ;;  %v5075_v24 = vld [vmem:[#allocation6 + $0x4] sm:$0xf] }
  0x48   : > { %1582 = vmatpush.bf16.xpose.msra.mxu0 %v4446_v32  ;;  %1631 = vmatpush.bf16.xpose.msra.mxu1 %v4450_v33  ;;  %v4330_v19 = vor.u32 %v5084_v14, %v4327_v15  ;;  %v294_v22 = vld [vmem:[%s5636_s16] sm:$0xff]  ;;  %v295_v23 = vld [vmem:[%s5636_s16 + $0x8] sm:$0xff]  ;;  %v296_v29 = vld [vmem:[%s5636_s16 + $0x10] sm:$0xff]  ;;  %v4286_v41 = vor.u32 %v5079_v21, %v4285_v20  ;;  %vm2454_vm0 = vcmask 523264   ;;  %s2396_s7 = sld [smem:[#allocation2]]  ;;  %s6799_s10 = scalar_lea.vmem [#allocation8], %s4280_s14 }
  0x49   : > { %1680 = vmatpush.bf16.xpose.msra.mxu2 %v4454_v34  ;;  %v4287_v25 = vld [vmem:[#allocation6 + $0x20] sm:$0xf0]  ;;  %v4293_v26 = vld [vmem:[#allocation6 + $0x8] sm:$0xf]  ;;  %v297_v30 = vld [vmem:[%s5636_s16 + $0x18] sm:$0xff]  ;;  %v422_v36 = vpack.c.bf16 %v295_v23, %v294_v22  ;;  %s5208_s30 = sshll.u32 %s5556_s0, 10 }
  0x4a   : > { %1729 = vmatpush.bf16.xpose.msra.mxu3 %v4458_v35  ;;  %v302_v27 = vld [vmem:[%s5636_s16 + $0x40] sm:$0xff]  ;;  %v303_v28 = vld [vmem:[%s5636_s16 + $0x48] sm:$0xff]  ;;  %v304_v31 = vld [vmem:[%s5636_s16 + $0x50] sm:$0xff]  ;;  %v423_v42 = vpack.c.bf16 %v297_v30, %v296_v29  ;;  %s4184_s9 = scalar_lea.hbm %s7462_s6, %s5208_s30  ;;  %s4185_s0 = sshll.u32 %s6799_s10, 4  ;;  %s4186_s0 = int_to_ptr.vmem [resolvable:$true] %s4185_s0 }
  0x4b   : > { %v305_v32 = vld [vmem:[%s5636_s16 + $0x58] sm:$0xff]  ;;  %v5080_v33 = vld [vmem:[#allocation6 + $0x24] sm:$0xf0]  ;;  %v5076_v34 = vld [vmem:[#allocation6 + $0xc] sm:$0xf]  ;;  %v426_v37 = vpack.c.bf16 %v303_v28, %v302_v27  ;;  %v684_v52 = vunpack.c.l.b16 %v422_v36  ;;  %v685_v55 = vunpack.c.h.b16 %v422_v36  ;;  %s4172_s14 = scalar_lea.sflag [#allocation5], %s5630_s8 }
  0x4c   : > { %v4295_v35 = vld [vmem:[#allocation6 + $0x28] sm:$0xf0]  ;;  %v4533_v38 = vld [vmem:[#allocation6 + $0x1d8] sm:$0xf]  ;;  %v4525_v40 = vld [vmem:[#allocation6 + $0x1d0] sm:$0xf]  ;;  %v427_v43 = vpack.c.bf16 %v305_v32, %v304_v31  ;;  %v4294_v48 = vor.u32 %v5080_v33, %v4293_v26  ;;  %v687_v62 = vunpack.c.h.b16 %v423_v42 }
  0x4d   : > { %v5138_v39 = vld [vmem:[#allocation6 + $0x1f4] sm:$0xf0]  ;;  %v5133_v49 = vld [vmem:[#allocation6 + $0x1d4] sm:$0xf]  ;;  %v4298_v51 = vor.u32 %v5076_v34, %v4295_v35  ;;  %v692_v54 = vunpack.c.l.b16 %v426_v37  ;;  %v4493_v3 = vld [vmem:[#allocation6 + $0x190] sm:$0xf] }
  0x4e   : > { %v4527_v50 = vld [vmem:[#allocation6 + $0x1f0] sm:$0xf0]  ;;  %v4534_v53 = vor.u32 %v5138_v39, %v4533_v38  ;;  %v694_v60 = vunpack.c.l.b16 %v427_v43  ;;  %v695_v63 = vunpack.c.h.b16 %v427_v43  ;;  %v4501_v1 = vld [vmem:[#allocation6 + $0x198] sm:$0xf]  ;;  %v4503_v8 = vld [vmem:[#allocation6 + $0x1b8] sm:$0xf0] }
  0x4f   : > { %v4530_v61 = vor.u32 %v5133_v49, %v4527_v50  ;;  %v5654_v0 = vpack.c.b16 %v692_v54, %v684_v52  ;;  %v5130_v2 = vld [vmem:[#allocation6 + $0x1b4] sm:$0xf0]  ;;  %v5125_v10 = vld [vmem:[#allocation6 + $0x194] sm:$0xf]  ;;  %v310_v13 = vld [vmem:[%s5636_s16 + $0x80] sm:$0xff]  ;;  %s5437_s21 = scalar_lea.hbm %s7462_s6, 2048 }
  0x50   : > { %1583 = vmatpush.bf16.xpose.msra.mxu0 %v4414_v44  ;;  %1632 = vmatpush.bf16.xpose.msra.mxu1 %v4418_v45  ;;  %v5137_v44 = vld [vmem:[#allocation6 + $0x1ec] sm:$0xf0]  ;;  %v5134_v45 = vld [vmem:[#allocation6 + $0x1dc] sm:$0xf]  ;;  %v5660_v9 = vpack.c.b16 %v695_v63, %v687_v62  ;;  %v4495_v11 = vld [vmem:[#allocation6 + $0x1b0] sm:$0xf0]  ;;  %v4502_v12 = vor.u32 %v5130_v2, %v4501_v1 }
  0x51   : > { %1681 = vmatpush.bf16.xpose.msra.mxu2 %v4422_v46  ;;  %v4535_v46 = vld [vmem:[#allocation6 + $0x1f8] sm:$0xf0]  ;;  %v311_v14 = vld [vmem:[%s5636_s16 + $0x88] sm:$0xff]  ;;  %v4498_v20 = vor.u32 %v5125_v10, %v4495_v11  ;;  %v320_v22 = vld [vmem:[%s5636_s16 + $0xd0] sm:$0xff] }
  0x52   : > { %1730 = vmatpush.bf16.xpose.msra.mxu3 %v4426_v47  ;;  %v4290_v47 = vor.u32 %v5075_v24, %v4287_v25  ;;  %7578 = vst [vmem:[#allocation14_spill] sm:$0xff] %v5660_v9  ;;  %v313_v21 = vld [vmem:[%s5636_s16 + $0x98] sm:$0xff]  ;;  %v430_v24 = vpack.c.bf16 %v311_v14, %v310_v13  ;;  %v4461_v28 = vld [vmem:[#allocation6 + $0x150] sm:$0xf]  ;;  %v5117_v34 = vld [vmem:[#allocation6 + $0x154] sm:$0xf] }
  0x53   : > { %v321_v23 = vld [vmem:[%s5636_s16 + $0xd8] sm:$0xff]  ;;  %v5121_v31 = vld [vmem:[#allocation6 + $0x16c] sm:$0xf0]  ;;  %v4463_v35 = vld [vmem:[#allocation6 + $0x170] sm:$0xf0] }
  0x54   : > { %v4469_v26 = vld [vmem:[#allocation6 + $0x158] sm:$0xf]  ;;  %v435_v30 = vpack.c.bf16 %v321_v23, %v320_v22  ;;  %v5118_v32 = vld [vmem:[#allocation6 + $0x15c] sm:$0xf]  ;;  %v700_v36 = vunpack.c.l.b16 %v430_v24  ;;  %v701_v39 = vunpack.c.h.b16 %v430_v24  ;;  %v326_v52 = vld [vmem:[%s5636_s16 + $0x100] sm:$0xff] }
  0x55   : > { %v5122_v27 = vld [vmem:[#allocation6 + $0x174] sm:$0xf0]  ;;  %v4471_v33 = vld [vmem:[#allocation6 + $0x178] sm:$0xf0]  ;;  %v334_v54 = vld [vmem:[%s5636_s16 + $0x140] sm:$0xff] }
  0x56   : > { %v4429_v62 = vld [vmem:[#allocation6 + $0x110] sm:$0xf]  ;;  %v5110_v2 = vld [vmem:[#allocation6 + $0x11c] sm:$0xf]  ;;  %v5109_v11 = vld [vmem:[#allocation6 + $0x114] sm:$0xf] }
  0x57   : > { %v5113_v1 = vld [vmem:[#allocation6 + $0x12c] sm:$0xf0] }
  0x58   : > { %1584 = vmatpush.bf16.xpose.msra.mxu0 %v4382_v56  ;;  %1633 = vmatpush.bf16.xpose.msra.mxu1 %v4386_v57  ;;  %v4526_v56 = vor.u32 %v5137_v44, %v4525_v40  ;;  %v4538_v57 = vor.u32 %v5134_v45, %v4535_v46  ;;  %v4462_v40 = vor.u32 %v5121_v31, %v4461_v28  ;;  %v710_v44 = vunpack.c.l.b16 %v435_v30  ;;  %v342_v28 = vld [vmem:[%s5636_s16 + $0x180] sm:$0xff]  ;;  %v351_v31 = vld [vmem:[%s5636_s16 + $0x1c8] sm:$0xff] }
  0x59   : > { %1682 = vmatpush.bf16.xpose.msra.mxu2 %v4390_v58  ;;  %v693_v58 = vunpack.c.h.b16 %v426_v37  ;;  %v4470_v37 = vor.u32 %v5122_v27, %v4469_v26  ;;  %v4466_v45 = vor.u32 %v5117_v34, %v4463_v35  ;;  %v352_v34 = vld [vmem:[%s5636_s16 + $0x1d0] sm:$0xff]  ;;  %v353_v35 = vld [vmem:[%s5636_s16 + $0x1d8] sm:$0xff] }
  0x5a   : > { %1731 = vmatpush.bf16.xpose.msra.mxu3 %v4394_v59  ;;  %v686_v59 = vunpack.c.l.b16 %v423_v42 }
  0x60   : > { %1585 = vmatpush.bf16.xpose.msra.mxu0 %v4350_v4  ;;  %1634 = vmatpush.bf16.xpose.msra.mxu1 %v4354_v5  ;;  %v5656_v4 = vpack.c.b16 %v693_v58, %v685_v55  ;;  %v5658_v5 = vpack.c.b16 %v694_v60, %v686_v59  ;;  %v335_v55 = vld [vmem:[%s5636_s16 + $0x148] sm:$0xff]  ;;  %v336_v58 = vld [vmem:[%s5636_s16 + $0x150] sm:$0xff]  ;;  %v337_v59 = vld [vmem:[%s5636_s16 + $0x158] sm:$0xff] }
  0x61   : > { %1683 = vmatpush.bf16.xpose.msra.mxu2 %v4358_v6  ;;  %v5129_v6 = vld [vmem:[#allocation6 + $0x1ac] sm:$0xf0]  ;;  %v4437_v60 = vld [vmem:[#allocation6 + $0x118] sm:$0xf]  ;;  %v443_v14 = vpack.c.bf16 %v337_v59, %v336_v58 }
  0x62   : > { %1732 = vmatpush.bf16.xpose.msra.mxu3 %v4362_v7  ;;  %7576 = vst [vmem:[#allocation12_spill] sm:$0xff] %v5656_v4  ;;  %v5126_v7 = vld [vmem:[#allocation6 + $0x19c] sm:$0xf]  ;;  %v4494_v15 = vor.u32 %v5129_v6, %v4493_v3 }
  0x63   : > { %7577 = vst [vmem:[#allocation13_spill] sm:$0xff] %v5658_v5  ;;  %v4439_v3 = vld [vmem:[#allocation6 + $0x138] sm:$0xf0]  ;;  %v727_v23 = vunpack.c.h.b16 %v443_v14 }
  0x64   : > { %v4442_v10 = vor.u32 %v5110_v2, %v4439_v3 }
  0x68   : > { %1586 = vmatpush.bf16.xpose.msra.mxu0 %v4318_v16  ;;  %1635 = vmatpush.bf16.xpose.msra.mxu1 %v4322_v17  ;;  %v4506_v16 = vor.u32 %v5126_v7, %v4503_v8  ;;  %v318_v17 = vld [vmem:[%s5636_s16 + $0xc0] sm:$0xff]  ;;  %v442_v7 = vpack.c.bf16 %v335_v55, %v334_v54  ;;  %v4430_v8 = vor.u32 %v5113_v1, %v4429_v62 }
  0x69   : > { %1684 = vmatpush.bf16.xpose.msra.mxu2 %v4326_v18  ;;  %v319_v18 = vld [vmem:[%s5636_s16 + $0xc8] sm:$0xff]  ;;  %v451_v54 = vpack.c.bf16 %v353_v35, %v352_v34 }
  0x6a   : > { %1733 = vmatpush.bf16.xpose.msra.mxu3 %v4330_v19  ;;  %v312_v19 = vld [vmem:[%s5636_s16 + $0x90] sm:$0xff]  ;;  %v434_v25 = vpack.c.bf16 %v319_v18, %v318_v17  ;;  %v724_v17 = vunpack.c.l.b16 %v442_v7 }
  0x6b   : > { %v431_v29 = vpack.c.bf16 %v313_v21, %v312_v19  ;;  %v725_v19 = vunpack.c.h.b16 %v442_v7  ;;  %v726_v21 = vunpack.c.l.b16 %v443_v14  ;;  %v358_v7 = vld [vmem:[%s5636_s16 + $0x200] sm:$0xff]  ;;  %v368_v14 = vld [vmem:[%s5636_s16 + $0x250] sm:$0xff] }
  0x6c   : > { %v708_v38 = vunpack.c.l.b16 %v434_v25  ;;  %v709_v42 = vunpack.c.h.b16 %v434_v25 }
  0x6d   : > { %v702_v43 = vunpack.c.l.b16 %v431_v29  ;;  %v703_v46 = vunpack.c.h.b16 %v431_v29  ;;  %v343_v29 = vld [vmem:[%s5636_s16 + $0x188] sm:$0xff] }
  0x6e   : > { %v5676_v49 = vpack.c.b16 %v709_v42, %v701_v39  ;;  %v4407_v42 = vld [vmem:[#allocation6 + $0xf8] sm:$0xf0] }
  0x6f   : > { %v5678_v50 = vpack.c.b16 %v710_v44, %v702_v43  ;;  %v446_v43 = vpack.c.bf16 %v343_v29, %v342_v28 }
  0x70   : > { %1587 = vmatpush.bf16.xpose.msra.mxu0 %v4286_v41  ;;  %1636 = vmatpush.bf16.xpose.msra.mxu1 %v4290_v47  ;;  %v4474_v41 = vor.u32 %v5118_v32, %v4471_v33  ;;  %v711_v47 = vunpack.c.h.b16 %v435_v30  ;;  %7579 = vst [vmem:[#allocation15_spill] sm:$0xff] %v5676_v49  ;;  %v350_v30 = vld [vmem:[%s5636_s16 + $0x1c0] sm:$0xff]  ;;  %v344_v32 = vld [vmem:[%s5636_s16 + $0x190] sm:$0xff]  ;;  %v345_v33 = vld [vmem:[%s5636_s16 + $0x198] sm:$0xff] }
  0x71   : > { %1685 = vmatpush.bf16.xpose.msra.mxu2 %v4294_v48  ;;  %v5674_v48 = vpack.c.b16 %v708_v38, %v700_v36  ;;  %7580 = vst [vmem:[#allocation16_spill] sm:$0xff] %v5678_v50  ;;  %v4405_v36 = vld [vmem:[#allocation6 + $0xd8] sm:$0xf]  ;;  %v4397_v38 = vld [vmem:[#allocation6 + $0xd0] sm:$0xf]  ;;  %v450_v44 = vpack.c.bf16 %v351_v31, %v350_v30  ;;  %v733_v58 = vunpack.c.h.b16 %v446_v43 }
  0x72   : > { %1734 = vmatpush.bf16.xpose.msra.mxu3 %v4298_v51  ;;  %v5680_v51 = vpack.c.b16 %v711_v47, %v703_v46  ;;  %v5101_v47 = vld [vmem:[#allocation6 + $0xd4] sm:$0xf] }
  0x73   : > { %v741_v59 = vunpack.c.h.b16 %v450_v44  ;;  %v5093_v31 = vld [vmem:[#allocation6 + $0x94] sm:$0xf] }
  0x74   : > { %7581 = vst [vmem:[#allocation17_spill] sm:$0xff] %v5680_v51 }
  0x75   : > { %v5716_v2 = vpack.c.b16 %v741_v59, %v733_v58  ;;  %v384_v58 = vld [vmem:[%s5636_s16 + $0x2d0] sm:$0xff]  ;;  %v385_v59 = vld [vmem:[%s5636_s16 + $0x2d8] sm:$0xff] }
  0x77   : > { %1588 = vmatmul.bf16.vlgmr.msra.gmra.mxu0 %v5654_v0  ;;  %1637 = vmatmul.bf16.vlgmr.msra.gmra.mxu1 %v5656_v4  ;;  %7585 = vst [vmem:[#allocation21_spill] sm:$0xff] %v5716_v2 }
  0x78   : > { %1776 = vmatpush.bf16.xpose.msrb.mxu0 %v4526_v56  ;;  %1825 = vmatpush.bf16.xpose.msrb.mxu1 %v4530_v61  ;;  %v328_v56 = vld [vmem:[%s5636_s16 + $0x110] sm:$0xff]  ;;  %v5114_v61 = vld [vmem:[#allocation6 + $0x134] sm:$0xf0] }
  0x79   : > { %1874 = vmatpush.bf16.xpose.msrb.mxu2 %v4534_v53  ;;  %1735 = vmatmul.bf16.vlgmr.msra.gmra.mxu3 %v5660_v9  ;;  %v327_v53 = vld [vmem:[%s5636_s16 + $0x108] sm:$0xff]  ;;  %v4438_v63 = vor.u32 %v5114_v61, %v4437_v60  ;;  %v742_v61 = vunpack.c.l.b16 %v451_v54 }
  0x7a   : > { %1923 = vmatpush.bf16.xpose.msrb.mxu3 %v4538_v57  ;;  %1686 = vmatmul.bf16.vlgmr.msra.gmra.mxu2 %v5658_v5  ;;  %v329_v57 = vld [vmem:[%s5636_s16 + $0x118] sm:$0xff]  ;;  %v438_v6 = vpack.c.bf16 %v327_v53, %v326_v52  ;;  %v4399_v52 = vld [vmem:[#allocation6 + $0xf0] sm:$0xf0]  ;;  %v447_v53 = vpack.c.bf16 %v345_v33, %v344_v32 }
  0x7b   : > { %v439_v13 = vpack.c.bf16 %v329_v57, %v328_v56  ;;  %v4402_v55 = vor.u32 %v5101_v47, %v4399_v52  ;;  %v732_v56 = vunpack.c.l.b16 %v446_v43  ;;  %v740_v57 = vunpack.c.l.b16 %v450_v44  ;;  %v4367_v32 = vld [vmem:[#allocation6 + $0xb0] sm:$0xf0]  ;;  %v374_v52 = vld [vmem:[%s5636_s16 + $0x280] sm:$0xff] }
  0x7c   : > { %v717_v18 = vunpack.c.h.b16 %v438_v6  ;;  %v734_v60 = vunpack.c.l.b16 %v447_v53  ;;  %v735_v62 = vunpack.c.h.b16 %v447_v53  ;;  %v4370_v35 = vor.u32 %v5093_v31, %v4367_v32  ;;  %v375_v53 = vld [vmem:[%s5636_s16 + $0x288] sm:$0xff] }
  0x7d   : > { %v719_v22 = vunpack.c.h.b16 %v439_v13  ;;  %v5714_v1 = vpack.c.b16 %v740_v57, %v732_v56  ;;  %v376_v56 = vld [vmem:[%s5636_s16 + $0x290] sm:$0xff]  ;;  %v377_v57 = vld [vmem:[%s5636_s16 + $0x298] sm:$0xff] }
  0x7e   : > { %v5696_v25 = vpack.c.b16 %v725_v19, %v717_v18  ;;  %v5718_v3 = vpack.c.b16 %v742_v61, %v734_v60  ;;  %v4365_v18 = vld [vmem:[#allocation6 + $0x90] sm:$0xf]  ;;  %v4341_v60 = vld [vmem:[#allocation6 + $0x58] sm:$0xf] }
  0x7f   : > { %v5700_v27 = vpack.c.b16 %v727_v23, %v719_v22  ;;  %v4375_v22 = vld [vmem:[#allocation6 + $0xb8] sm:$0xf0]  ;;  %v5090_v61 = vld [vmem:[#allocation6 + $0x74] sm:$0xf0] }
  0x80   : > { %1777 = vmatpush.bf16.xpose.msrb.mxu0 %v4494_v15  ;;  %1826 = vmatpush.bf16.xpose.msrb.mxu1 %v4498_v20  ;;  %v718_v20 = vunpack.c.l.b16 %v439_v13  ;;  %7582 = vst [vmem:[#allocation18_spill] sm:$0xff] %v5696_v25  ;;  %v361_v13 = vld [vmem:[%s5636_s16 + $0x218] sm:$0xff] }
  0x81   : > { %1875 = vmatpush.bf16.xpose.msrb.mxu2 %v4502_v12  ;;  %v4431_v12 = vld [vmem:[#allocation6 + $0x130] sm:$0xf0]  ;;  %7584 = vst [vmem:[#allocation20_spill] sm:$0xff] %v5700_v27 }
  0x82   : > { %1924 = vmatpush.bf16.xpose.msrb.mxu3 %v4506_v16  ;;  %v4434_v15 = vor.u32 %v5109_v11, %v4431_v12  ;;  %v716_v16 = vunpack.c.l.b16 %v438_v6  ;;  %v5698_v26 = vpack.c.b16 %v726_v21, %v718_v20  ;;  %v367_v11 = vld [vmem:[%s5636_s16 + $0x248] sm:$0xff]  ;;  %v360_v12 = vld [vmem:[%s5636_s16 + $0x210] sm:$0xff]  ;;  %v5094_v21 = vld [vmem:[#allocation6 + $0x9c] sm:$0xf] }
  0x83   : > { %v5097_v20 = vld [vmem:[#allocation6 + $0xac] sm:$0xf0]  ;;  %v4378_v30 = vor.u32 %v5094_v21, %v4375_v22  ;;  %v455_v33 = vpack.c.bf16 %v361_v13, %v360_v12 }
  0x84   : > { %v5694_v24 = vpack.c.b16 %v724_v17, %v716_v16  ;;  %7583 = vst [vmem:[#allocation19_spill] sm:$0xff] %v5698_v26  ;;  %v4373_v16 = vld [vmem:[#allocation6 + $0x98] sm:$0xf]  ;;  %v4366_v29 = vor.u32 %v5097_v20, %v4365_v18  ;;  %v467_v18 = vpack.c.bf16 %v385_v59, %v384_v58  ;;  %v4311_v58 = vld [vmem:[#allocation6 + $0x38] sm:$0xf0] }
  0x85   : > { %v5098_v17 = vld [vmem:[#allocation6 + $0xb4] sm:$0xf0] }
  0x86   : > { %v4374_v19 = vor.u32 %v5098_v17, %v4373_v16  ;;  %v4335_v16 = vld [vmem:[#allocation6 + $0x70] sm:$0xf0]  ;;  %v463_v17 = vpack.c.bf16 %v377_v57, %v376_v56  ;;  %v775_v31 = vunpack.c.h.b16 %v467_v18  ;;  %v5081_v56 = vld [vmem:[#allocation6 + $0x2c] sm:$0xf0]  ;;  %v5078_v57 = vld [vmem:[#allocation6 + $0x1c] sm:$0xf] }
  0x87   : > { %1593 = vmatmul.bf16.gmra.mxu0 %v5674_v48  ;;  %1642 = vmatmul.bf16.gmra.mxu1 %v5676_v49 }
  0x88   : > { %1778 = vmatpush.bf16.xpose.msrb.mxu0 %v4462_v40  ;;  %1827 = vmatpush.bf16.xpose.msrb.mxu1 %v4466_v45  ;;  %v5105_v40 = vld [vmem:[#allocation6 + $0xec] sm:$0xf0] }
  0x89   : > { %1876 = vmatpush.bf16.xpose.msrb.mxu2 %v4470_v37  ;;  %1740 = vmatmul.bf16.gmra.mxu3 %v5680_v51  ;;  %v5106_v37 = vld [vmem:[#allocation6 + $0xf4] sm:$0xf0]  ;;  %v4398_v45 = vor.u32 %v5105_v40, %v4397_v38  ;;  %v750_v40 = vunpack.c.l.b16 %v455_v33 }
  0x8a   : > { %1925 = vmatpush.bf16.xpose.msrb.mxu3 %v4474_v41  ;;  %1691 = vmatmul.bf16.gmra.mxu2 %v5678_v50  ;;  %v4406_v39 = vor.u32 %v5106_v37, %v4405_v36  ;;  %v5102_v41 = vld [vmem:[#allocation6 + $0xdc] sm:$0xf] }
  0x8b   : > { %v4410_v46 = vor.u32 %v5102_v41, %v4407_v42  ;;  %v751_v42 = vunpack.c.h.b16 %v455_v33 }
  0x90   : > { %1779 = vmatpush.bf16.xpose.msrb.mxu0 %v4430_v8  ;;  %1828 = vmatpush.bf16.xpose.msrb.mxu1 %v4434_v15  ;;  %v359_v8 = vld [vmem:[%s5636_s16 + $0x208] sm:$0xff]  ;;  %v369_v15 = vld [vmem:[%s5636_s16 + $0x258] sm:$0xff] }
  0x91   : > { %1877 = vmatpush.bf16.xpose.msrb.mxu2 %v4438_v63  ;;  %v743_v63 = vunpack.c.h.b16 %v451_v54  ;;  %v454_v23 = vpack.c.bf16 %v359_v8, %v358_v7  ;;  %v459_v34 = vpack.c.bf16 %v369_v15, %v368_v14  ;;  %v382_v54 = vld [vmem:[%s5636_s16 + $0x2c0] sm:$0xff]  ;;  %v5089_v7 = vld [vmem:[#allocation6 + $0x6c] sm:$0xf0]  ;;  %v5086_v8 = vld [vmem:[#allocation6 + $0x5c] sm:$0xf] }
  0x92   : > { %1926 = vmatpush.bf16.xpose.msrb.mxu3 %v4442_v10  ;;  %v366_v10 = vld [vmem:[%s5636_s16 + $0x240] sm:$0xff]  ;;  %v5085_v15 = vld [vmem:[#allocation6 + $0x54] sm:$0xf] }
  0x93   : > { %v5720_v6 = vpack.c.b16 %v743_v63, %v735_v62  ;;  %v458_v28 = vpack.c.bf16 %v367_v11, %v366_v10  ;;  %v748_v36 = vunpack.c.l.b16 %v454_v23  ;;  %v749_v38 = vunpack.c.h.b16 %v454_v23  ;;  %v4333_v62 = vld [vmem:[#allocation6 + $0x50] sm:$0xf]  ;;  %v4343_v10 = vld [vmem:[#allocation6 + $0x78] sm:$0xf0] }
  0x94   : > { %v758_v41 = vunpack.c.l.b16 %v459_v34  ;;  %v759_v43 = vunpack.c.h.b16 %v459_v34  ;;  %v4342_v63 = vor.u32 %v5090_v61, %v4341_v60  ;;  %v462_v11 = vpack.c.bf16 %v375_v53, %v374_v52  ;;  %v4309_v52 = vld [vmem:[#allocation6 + $0x18] sm:$0xf] }
  0x95   : > { %v756_v37 = vunpack.c.l.b16 %v458_v28  ;;  %v4334_v13 = vor.u32 %v5089_v7, %v4333_v62  ;;  %v4346_v14 = vor.u32 %v5086_v8, %v4343_v10  ;;  %v5082_v53 = vld [vmem:[#allocation6 + $0x34] sm:$0xf0]  ;;  %v4314_v62 = vor.u32 %v5078_v57, %v4311_v58  ;;  %v4303_v7 = vld [vmem:[#allocation6 + $0x30] sm:$0xf0] }
  0x96   : > { %v5740_v47 = vpack.c.b16 %v759_v43, %v751_v42  ;;  %v764_v20 = vunpack.c.l.b16 %v462_v11  ;;  %v765_v22 = vunpack.c.h.b16 %v462_v11  ;;  %v400_v42 = vld [vmem:[%s5636_s16 + $0x350] sm:$0xff]  ;;  %v401_v43 = vld [vmem:[%s5636_s16 + $0x358] sm:$0xff] }
  0x97   : > { %1598 = vmatmul.bf16.gmra.mxu0 %v5694_v24  ;;  %1647 = vmatmul.bf16.gmra.mxu1 %v5696_v25  ;;  %v5734_v44 = vpack.c.b16 %v756_v37, %v748_v36  ;;  %v390_v36 = vld [vmem:[%s5636_s16 + $0x300] sm:$0xff]  ;;  %v391_v37 = vld [vmem:[%s5636_s16 + $0x308] sm:$0xff]  ;;  %v475_v10 = vpack.c.bf16 %v401_v43, %v400_v42 }
  0x98   : > { %1780 = vmatpush.bf16.xpose.msrb.mxu0 %v4398_v45  ;;  %1829 = vmatpush.bf16.xpose.msrb.mxu1 %v4402_v55  ;;  %7589 = vst [vmem:[#allocation25_spill] sm:$0xff] %v5740_v47  ;;  %v383_v55 = vld [vmem:[%s5636_s16 + $0x2c8] sm:$0xff]  ;;  %v470_v59 = vpack.c.bf16 %v391_v37, %v390_v36  ;;  %v408_v36 = vld [vmem:[%s5636_s16 + $0x390] sm:$0xff]  ;;  %v409_v37 = vld [vmem:[%s5636_s16 + $0x398] sm:$0xff] }
  0x99   : > { %1745 = vmatmul.bf16.gmra.mxu3 %v5700_v27  ;;  %1878 = vmatpush.bf16.xpose.msrb.mxu2 %v4406_v39  ;;  %v757_v39 = vunpack.c.h.b16 %v458_v28  ;;  %7586 = vst [vmem:[#allocation22_spill] sm:$0xff] %v5734_v44  ;;  %v466_v12 = vpack.c.bf16 %v383_v55, %v382_v54  ;;  %v766_v28 = vunpack.c.l.b16 %v463_v17  ;;  %v4301_v54 = vld [vmem:[#allocation6 + $0x10] sm:$0xf]  ;;  %v4310_v55 = vor.u32 %v5082_v53, %v4309_v52  ;;  %v4765_v42 = vld [vmem:[#allocation6 + $0x3c0] sm:$0xf] }
  0x9a   : > { %1696 = vmatmul.bf16.gmra.mxu2 %v5698_v26  ;;  %1927 = vmatpush.bf16.xpose.msrb.mxu3 %v4410_v46  ;;  %v5738_v46 = vpack.c.b16 %v758_v41, %v750_v40  ;;  %v392_v40 = vld [vmem:[%s5636_s16 + $0x310] sm:$0xff]  ;;  %v393_v41 = vld [vmem:[%s5636_s16 + $0x318] sm:$0xff]  ;;  %v4302_v61 = vor.u32 %v5081_v56, %v4301_v54  ;;  %v5199_v52 = vld [vmem:[#allocation6 + $0x3dc] sm:$0xf0] }
  0x9b   : > { %v5736_v45 = vpack.c.b16 %v757_v39, %v749_v38  ;;  %v772_v21 = vunpack.c.l.b16 %v466_v12  ;;  %v773_v23 = vunpack.c.h.b16 %v466_v12  ;;  %v398_v38 = vld [vmem:[%s5636_s16 + $0x340] sm:$0xff]  ;;  %v399_v39 = vld [vmem:[%s5636_s16 + $0x348] sm:$0xff]  ;;  %v471_v8 = vpack.c.bf16 %v393_v41, %v392_v40 }
  0x9c   : > { %7588 = vst [vmem:[#allocation24_spill] sm:$0xff] %v5738_v46  ;;  %v474_v60 = vpack.c.bf16 %v399_v39, %v398_v38  ;;  %v780_v12 = vunpack.c.l.b16 %v470_v59  ;;  %v416_v38 = vld [vmem:[%s5636_s16 + $0x3d0] sm:$0xff]  ;;  %v417_v39 = vld [vmem:[%s5636_s16 + $0x3d8] sm:$0xff]  ;;  %v4773_v40 = vld [vmem:[#allocation6 + $0x3c8] sm:$0xf]  ;;  %v4766_v57 = vor.u32 %v5199_v52, %v4765_v42 }
  0x9d   : > { %7587 = vst [vmem:[#allocation23_spill] sm:$0xff] %v5736_v45  ;;  %v5754_v32 = vpack.c.b16 %v772_v21, %v764_v20  ;;  %v5756_v33 = vpack.c.b16 %v773_v23, %v765_v22  ;;  %v5200_v41 = vld [vmem:[#allocation6 + $0x3e4] sm:$0xf0]  ;;  %v5196_v53 = vld [vmem:[#allocation6 + $0x3cc] sm:$0xf] }
  0x9e   : > { %v4774_v43 = vor.u32 %v5200_v41, %v4773_v40  ;;  %v4775_v54 = vld [vmem:[#allocation6 + $0x3e8] sm:$0xf0]  ;;  %v4741_v40 = vld [vmem:[#allocation6 + $0x388] sm:$0xf]  ;;  %v4733_v42 = vld [vmem:[#allocation6 + $0x380] sm:$0xf] }
  0x9f   : > { %7590 = vst [vmem:[#allocation26_spill] sm:$0xff] %v5754_v32  ;;  %v4778_v58 = vor.u32 %v5196_v53, %v4775_v54  ;;  %v5192_v41 = vld [vmem:[#allocation6 + $0x3a4] sm:$0xf0]  ;;  %v5191_v52 = vld [vmem:[#allocation6 + $0x39c] sm:$0xf0] }
  0xa0   : > { %1781 = vmatpush.bf16.xpose.msrb.mxu0 %v4366_v29  ;;  %1830 = vmatpush.bf16.xpose.msrb.mxu1 %v4370_v35  ;;  %v774_v29 = vunpack.c.l.b16 %v467_v18  ;;  %7591 = vst [vmem:[#allocation27_spill] sm:$0xff] %v5756_v33  ;;  %v783_v18 = vunpack.c.h.b16 %v471_v8  ;;  %v5188_v53 = vld [vmem:[#allocation6 + $0x38c] sm:$0xf] }
  0xa1   : > { %1879 = vmatpush.bf16.xpose.msrb.mxu2 %v4374_v19  ;;  %v4338_v19 = vor.u32 %v5085_v15, %v4335_v16  ;;  %v789_v15 = vunpack.c.h.b16 %v474_v60  ;;  %v782_v16 = vunpack.c.l.b16 %v471_v8  ;;  %v4743_v54 = vld [vmem:[#allocation6 + $0x3a8] sm:$0xf0] }
  0xa2   : > { %1928 = vmatpush.bf16.xpose.msrb.mxu3 %v4378_v30  ;;  %v767_v30 = vunpack.c.h.b16 %v463_v17  ;;  %v5758_v34 = vpack.c.b16 %v774_v29, %v766_v28  ;;  %v790_v17 = vunpack.c.l.b16 %v475_v10  ;;  %v406_v28 = vld [vmem:[%s5636_s16 + $0x380] sm:$0xff]  ;;  %v407_v29 = vld [vmem:[%s5636_s16 + $0x388] sm:$0xff] }
  0xa4   : > { %7592 = vst [vmem:[#allocation28_spill] sm:$0xff] %v5758_v34  ;;  %v5760_v35 = vpack.c.b16 %v775_v31, %v767_v30  ;;  %v5778_v22 = vpack.c.b16 %v790_v17, %v782_v16  ;;  %v414_v30 = vld [vmem:[%s5636_s16 + $0x3c0] sm:$0xff]  ;;  %v415_v31 = vld [vmem:[%s5636_s16 + $0x3c8] sm:$0xff] }
  0xa5   : > { %v482_v56 = vpack.c.bf16 %v415_v31, %v414_v30  ;;  %v306_v30 = vld [vmem:[%s5636_s16 + $0x60] sm:$0xff]  ;;  %v307_v31 = vld [vmem:[%s5636_s16 + $0x68] sm:$0xff] }
  0xa6   : > { %7593 = vst [vmem:[#allocation29_spill] sm:$0xff] %v5760_v35 }
  0xa7   : > { %1603 = vmatmul.bf16.gmra.mxu0 %v5714_v1  ;;  %1652 = vmatmul.bf16.gmra.mxu1 %v5716_v2  ;;  %7596 = vst [vmem:[#allocation32_spill] sm:$0xff] %v5778_v22 }
  0xa8   : > { %1782 = vmatpush.bf16.xpose.msrb.mxu0 %v4334_v13  ;;  %1831 = vmatpush.bf16.xpose.msrb.mxu1 %v4338_v19  ;;  %v788_v13 = vunpack.c.l.b16 %v474_v60  ;;  %v791_v19 = vunpack.c.h.b16 %v475_v10  ;;  %v483_v60 = vpack.c.bf16 %v417_v39, %v416_v38  ;;  %v308_v38 = vld [vmem:[%s5636_s16 + $0x70] sm:$0xff]  ;;  %v309_v39 = vld [vmem:[%s5636_s16 + $0x78] sm:$0xff] }
  0xa9   : > { %1750 = vmatmul.bf16.gmra.mxu3 %v5720_v6  ;;  %1880 = vmatpush.bf16.xpose.msrb.mxu2 %v4342_v63  ;;  %v5077_v63 = vld [vmem:[#allocation6 + $0x14] sm:$0xf] }
  0xaa   : > { %1701 = vmatmul.bf16.gmra.mxu2 %v5718_v3  ;;  %1929 = vmatpush.bf16.xpose.msrb.mxu3 %v4346_v14  ;;  %v4306_v11 = vor.u32 %v5077_v63, %v4303_v7  ;;  %v781_v14 = vunpack.c.h.b16 %v470_v59  ;;  %v5774_v20 = vpack.c.b16 %v788_v13, %v780_v12  ;;  %v5780_v23 = vpack.c.b16 %v791_v19, %v783_v18 }
  0xab   : > { %v479_v59 = vpack.c.bf16 %v409_v37, %v408_v36  ;;  %v804_v7 = vunpack.c.l.b16 %v482_v56  ;;  %v806_v13 = vunpack.c.l.b16 %v483_v60  ;;  %v300_v36 = vld [vmem:[%s5636_s16 + $0x30] sm:$0xff]  ;;  %v301_v37 = vld [vmem:[%s5636_s16 + $0x38] sm:$0xff] }
  0xac   : > { %7594 = vst [vmem:[#allocation30_spill] sm:$0xff] %v5774_v20  ;;  %v5776_v21 = vpack.c.b16 %v789_v15, %v781_v14  ;;  %v807_v15 = vunpack.c.h.b16 %v483_v60  ;;  %v429_v60 = vpack.c.bf16 %v309_v39, %v308_v38 }
  0xad   : > { %7597 = vst [vmem:[#allocation33_spill] sm:$0xff] %v5780_v23  ;;  %v798_v12 = vunpack.c.l.b16 %v479_v59  ;;  %v799_v14 = vunpack.c.h.b16 %v479_v59  ;;  %v425_v59 = vpack.c.bf16 %v301_v37, %v300_v36 }
  0xae   : > { %7595 = vst [vmem:[#allocation31_spill] sm:$0xff] %v5776_v21 }
  0xaf   : > { %v5798_v18 = vpack.c.b16 %v806_v13, %v798_v12  ;;  %v5800_v19 = vpack.c.b16 %v807_v15, %v799_v14  ;;  %v690_v13 = vunpack.c.l.b16 %v425_v59  ;;  %v698_v14 = vunpack.c.l.b16 %v429_v60 }
  0xb0   : > { %1783 = vmatpush.bf16.xpose.msrb.mxu0 %v4302_v61  ;;  %1832 = vmatpush.bf16.xpose.msrb.mxu1 %v4306_v11  ;;  %v5195_v61 = vld [vmem:[#allocation6 + $0x3c4] sm:$0xf]  ;;  %v805_v11 = vunpack.c.h.b16 %v482_v56  ;;  %v428_v56 = vpack.c.bf16 %v307_v31, %v306_v30 }
  0xb1   : > { %1881 = vmatpush.bf16.xpose.msrb.mxu2 %v4310_v55  ;;  %v478_v55 = vpack.c.bf16 %v407_v29, %v406_v28  ;;  %7600 = vst [vmem:[#allocation36_spill] sm:$0xff] %v5798_v18  ;;  %v298_v28 = vld [vmem:[%s5636_s16 + $0x20] sm:$0xff]  ;;  %v299_v29 = vld [vmem:[%s5636_s16 + $0x28] sm:$0xff]  ;;  %v5823_v37 = vpack.c.b16 %v698_v14, %v690_v13 }
  0xb2   : > { %1930 = vmatpush.bf16.xpose.msrb.mxu3 %v4314_v62  ;;  %v4767_v62 = vld [vmem:[#allocation6 + $0x3e0] sm:$0xf0]  ;;  %7601 = vst [vmem:[#allocation37_spill] sm:$0xff] %v5800_v19  ;;  %v697_v12 = vunpack.c.h.b16 %v428_v56 }
  0xb3   : > { %v796_v63 = vunpack.c.l.b16 %v478_v55  ;;  %v4770_v8 = vor.u32 %v5195_v61, %v4767_v62  ;;  %v797_v10 = vunpack.c.h.b16 %v478_v55  ;;  %v424_v55 = vpack.c.bf16 %v299_v29, %v298_v28  ;;  %v614_v61 = vld [vmem:[%s7459_s3] sm:$0x3]  ;;  %v5187_v62 = vld [vmem:[#allocation6 + $0x384] sm:$0xf]  ;;  %7604 = vst [vmem:[#allocation40_spill] sm:$0xff] %v5823_v37 }
  0xb4   : > { %v5817_v15 = vperm.slane %v614_v61, 0  ;;  %v691_v28 = vunpack.c.h.b16 %v425_v59  ;;  %v699_v29 = vunpack.c.h.b16 %v429_v60  ;;  %v5184_v59 = vld [vmem:[#allocation6 + $0x364] sm:$0xf0]  ;;  %v4701_v60 = vld [vmem:[#allocation6 + $0x340] sm:$0xf] }
  0xb5   : > { %v5794_v16 = vpack.c.b16 %v804_v7, %v796_v63  ;;  %v5796_v17 = vpack.c.b16 %v805_v11, %v797_v10  ;;  %v4735_v63 = vld [vmem:[#allocation6 + $0x3a0] sm:$0xf0]  ;;  %v688_v7 = vunpack.c.l.b16 %v424_v55  ;;  %v689_v11 = vunpack.c.h.b16 %v424_v55  ;;  %v317_v55 = vld [vmem:[%s5636_s16 + $0xb8] sm:$0xff] }
  0xb6   : > { %v4738_v10 = vor.u32 %v5187_v62, %v4735_v63  ;;  %v5183_v62 = vld [vmem:[#allocation6 + $0x35c] sm:$0xf0]  ;;  %v5180_v63 = vld [vmem:[#allocation6 + $0x34c] sm:$0xf] }
  0xb7   : > { %1608 = vmatmul.bf16.gmra.mxu0 %v5734_v44  ;;  %1657 = vmatmul.bf16.gmra.mxu1 %v5736_v45  ;;  %7598 = vst [vmem:[#allocation34_spill] sm:$0xff] %v5794_v16  ;;  %v5821_v36 = vpack.c.b16 %v697_v12, %v689_v11  ;;  %v4702_v12 = vor.u32 %v5183_v62, %v4701_v60 }
  0xb8   : > { %1972 = vmatpush.bf16.xpose.msra.mxu0 %v4766_v57  ;;  %2021 = vmatpush.bf16.xpose.msra.mxu1 %v4770_v8  ;;  %7599 = vst [vmem:[#allocation35_spill] sm:$0xff] %v5796_v17  ;;  %v4734_v57 = vor.u32 %v5191_v52, %v4733_v42  ;;  %v696_v8 = vunpack.c.l.b16 %v428_v56  ;;  %v315_v42 = vld [vmem:[%s5636_s16 + $0xa8] sm:$0xff]  ;;  %v322_v52 = vld [vmem:[%s5636_s16 + $0xe0] sm:$0xff]  ;;  %v324_v56 = vld [vmem:[%s5636_s16 + $0xf0] sm:$0xff] }
  0xb9   : > { %1755 = vmatmul.bf16.gmra.mxu3 %v5740_v47  ;;  %2070 = vmatpush.bf16.xpose.msra.mxu2 %v4774_v43  ;;  %v4742_v43 = vor.u32 %v5192_v41, %v4741_v40  ;;  %7603 = vst [vmem:[#allocation39_spill] sm:$0xff] %v5821_v36  ;;  %v5826_v40 = vpack.c.b16 %v699_v29, %v691_v28  ;;  %v314_v41 = vld [vmem:[%s5636_s16 + $0xa0] sm:$0xff] }
  0xba   : > { %1706 = vmatmul.bf16.gmra.mxu2 %v5738_v46  ;;  %2119 = vmatpush.bf16.xpose.msra.mxu3 %v4778_v58  ;;  %v4746_v58 = vor.u32 %v5188_v53, %v4743_v54  ;;  %v5819_v30 = vpack.c.b16 %v696_v8, %v688_v7  ;;  %v323_v53 = vld [vmem:[%s5636_s16 + $0xe8] sm:$0xff]  ;;  %v316_v54 = vld [vmem:[%s5636_s16 + $0xb0] sm:$0xff] }
  0xbb   : > { %7605 = vst [vmem:[#allocation41_spill] sm:$0xff] %v5826_v40  ;;  %v4711_v7 = vld [vmem:[#allocation6 + $0x368] sm:$0xf0]  ;;  %v436_v11 = vpack.c.bf16 %v323_v53, %v322_v52 }
  0xbc   : > { %7602 = vst [vmem:[#allocation38_spill] sm:$0xff] %v5819_v30  ;;  %v4714_v13 = vor.u32 %v5180_v63, %v4711_v7 }
  0xc0   : > { %1973 = vmatpush.bf16.xpose.msra.mxu0 %v4734_v57  ;;  %2022 = vmatpush.bf16.xpose.msra.mxu1 %v4738_v10  ;;  %v325_v57 = vld [vmem:[%s5636_s16 + $0xf8] sm:$0xff]  ;;  %v432_v10 = vpack.c.bf16 %v315_v42, %v314_v41  ;;  %v712_v42 = vunpack.c.l.b16 %v436_v11 }
  0xc1   : > { %2071 = vmatpush.bf16.xpose.msra.mxu2 %v4742_v43 }
  0xc2   : > { %2120 = vmatpush.bf16.xpose.msra.mxu3 %v4746_v58  ;;  %v4709_v58 = vld [vmem:[#allocation6 + $0x348] sm:$0xf]  ;;  %v704_v41 = vunpack.c.l.b16 %v432_v10  ;;  %v705_v53 = vunpack.c.h.b16 %v432_v10 }
  0xc3   : > { %v4710_v61 = vor.u32 %v5184_v59, %v4709_v58  ;;  %v5179_v59 = vld [vmem:[#allocation6 + $0x344] sm:$0xf] }
  0xc7   : > { %1613 = vmatmul.bf16.gmra.mxu0 %v5754_v32  ;;  %1662 = vmatmul.bf16.gmra.mxu1 %v5756_v33 }
  0xc8   : > { %1974 = vmatpush.bf16.xpose.msra.mxu0 %v4702_v12 }
  0xc9   : > { %1760 = vmatmul.bf16.gmra.mxu3 %v5760_v35  ;;  %2072 = vmatpush.bf16.xpose.msra.mxu2 %v4710_v61  ;;  %v5843_v61 = vpack.c.b16 %v712_v42, %v704_v41  ;;  %v4677_v41 = vld [vmem:[#allocation6 + $0x308] sm:$0xf] }
  0xca   : > { %1711 = vmatmul.bf16.gmra.mxu2 %v5758_v34  ;;  %2121 = vmatpush.bf16.xpose.msra.mxu3 %v4714_v13  ;;  %v330_v13 = vld [vmem:[%s5636_s16 + $0x120] sm:$0xff]  ;;  %v5176_v42 = vld [vmem:[#allocation6 + $0x324] sm:$0xf0] }
  0xcb   : > { %7606 = vst [vmem:[#allocation42_spill] sm:$0xff] %v5843_v61 }
  0xd7   : > { %1618 = vmatmul.bf16.gmra.mxu0 %v5774_v20  ;;  %1667 = vmatmul.bf16.gmra.mxu1 %v5776_v21  ;;  %v4543_v20 = vld [vmem:[#allocation6 + $0x220] sm:$0xf0] }
  0xd9   : > { %1765 = vmatmul.bf16.gmra.mxu3 %v5780_v23 }
  0xda   : > { %1716 = vmatmul.bf16.gmra.mxu2 %v5778_v22  ;;  %v4575_v22 = vld [vmem:[#allocation6 + $0x260] sm:$0xf0] }
  0xe7   : > { %1623 = vmatmul.bf16.gmra.mxu0 %v5794_v16  ;;  %1672 = vmatmul.bf16.gmra.mxu1 %v5796_v17  ;;  %v4607_v16 = vld [vmem:[#allocation6 + $0x2a0] sm:$0xf0] }
  0xe9   : > { %1770 = vmatmul.bf16.gmra.mxu3 %v5800_v19 }
  0xea   : > { %1721 = vmatmul.bf16.gmra.mxu2 %v5798_v18  ;;  %v4639_v18 = vld [vmem:[#allocation6 + $0x2e0] sm:$0xf0] }
  0xf4   : > { %v1589_v31 = vpop.f32.mrf.mxu0  ;;  %v1638_v39 = vpop.f32.mrf.mxu1 }
  0xf5   : > { %v1590_v38 = vadd.f32 %v1589_v31, %v5817_v15  ;;  %v433_v31 = vpack.c.bf16 %v317_v55, %v316_v54 }
  0xf7   : > { %v1639_v43 = vadd.f32 %v1638_v39, %v1590_v38  ;;  %1784 = vmatmul.bf16.vlgmr.msrb.gmra.mxu0 %v5819_v30  ;;  %1833 = vmatmul.bf16.vlgmr.msrb.gmra.mxu1 %v5821_v36  ;;  %v437_v38 = vpack.c.bf16 %v325_v57, %v324_v56  ;;  %v706_v60 = vunpack.c.l.b16 %v433_v31  ;;  %v707_v55 = vunpack.c.h.b16 %v433_v31  ;;  %v332_v31 = vld [vmem:[%s5636_s16 + $0x130] sm:$0xff]  ;;  %v4671_v30 = vld [vmem:[#allocation6 + $0x320] sm:$0xf0] }
  0xf9   : > { %1931 = vmatmul.bf16.vlgmr.msrb.gmra.mxu3 %v5826_v40  ;;  %v714_v54 = vunpack.c.l.b16 %v437_v38  ;;  %v715_v56 = vunpack.c.h.b16 %v437_v38  ;;  %v333_v38 = vld [vmem:[%s5636_s16 + $0x138] sm:$0xff] }
  0xfa   : > { %1882 = vmatmul.bf16.vlgmr.msrb.gmra.mxu2 %v5823_v37  ;;  %v4703_v37 = vld [vmem:[#allocation6 + $0x360] sm:$0xf0] }
  0xfb   : > { %v4706_v52 = vor.u32 %v5179_v59, %v4703_v37  ;;  %v5847_v7 = vpack.c.b16 %v714_v54, %v706_v60  ;;  %v341_v59 = vld [vmem:[%s5636_s16 + $0x178] sm:$0xff]  ;;  %v5172_v60 = vld [vmem:[#allocation6 + $0x30c] sm:$0xf] }
  0xfc   : > { %v1736_v28 = vpop.f32.mrf.mxu3  ;;  %v1591_v29 = vpop.f32.mrf.mxu0  ;;  %v4679_v54 = vld [vmem:[#allocation6 + $0x328] sm:$0xf0] }
  0xfd   : > { %v1687_v8 = vpop.f32.mrf.mxu2  ;;  %v1592_v39 = vadd.f32 %v1591_v29, %v5817_v15  ;;  %v1640_v40 = vpop.f32.mrf.mxu1  ;;  %2023 = vmatpush.bf16.xpose.msra.mxu1 %v4706_v52  ;;  %7608 = vst [vmem:[#allocation44_spill] sm:$0xff] %v5847_v7  ;;  %v339_v29 = vld [vmem:[%s5636_s16 + $0x168] sm:$0xff]  ;;  %v4669_v52 = vld [vmem:[#allocation6 + $0x300] sm:$0xf] }
  0xfe   : > { %v1688_v14 = vadd.f32 %v1687_v8, %v1639_v43  ;;  %v713_v43 = vunpack.c.h.b16 %v436_v11  ;;  %v5850_v11 = vpack.c.b16 %v715_v56, %v707_v55 }
  0xff   : > { %v1641_v36 = vadd.f32 %v1640_v40, %v1592_v39  ;;  %v340_v39 = vld [vmem:[%s5636_s16 + $0x170] sm:$0xff] }
 0x100   : > { %v5841_v58 = vadd.f32 %v1736_v28, %v1688_v14  ;;  %v5845_v37 = vpack.c.b16 %v713_v43, %v705_v53  ;;  %7609 = vst [vmem:[#allocation45_spill] sm:$0xff] %v5850_v11  ;;  %v331_v14 = vld [vmem:[%s5636_s16 + $0x128] sm:$0xff]  ;;  %v4678_v53 = vor.u32 %v5176_v42, %v4677_v41  ;;  %v5175_v43 = vld [vmem:[#allocation6 + $0x31c] sm:$0xf0]  ;;  %v5171_v42 = vld [vmem:[#allocation6 + $0x304] sm:$0xf] }
 0x101   : > { %v440_v56 = vpack.c.bf16 %v331_v14, %v330_v13 }
 0x102   : > { %7607 = vst [vmem:[#allocation43_spill] sm:$0xff] %v5845_v37  ;;  %2073 = vmatpush.bf16.xpose.msra.mxu2 %v4678_v53 }
 0x103   : > { %v720_v13 = vunpack.c.l.b16 %v440_v56 }
 0x104   : > { %v1738_v40 = vpop.f32.mrf.mxu3  ;;  %v1594_v63 = vpop.f32.mrf.mxu0 }
 0x105   : > { %v1689_v57 = vpop.f32.mrf.mxu2  ;;  %v1595_v8 = vadd.f32 %v1594_v63, %v5817_v15  ;;  %v1643_v10 = vpop.f32.mrf.mxu1 }
 0x106   : > { %v1690_v62 = vadd.f32 %v1689_v57, %v1641_v36  ;;  %v338_v36 = vld [vmem:[%s5636_s16 + $0x160] sm:$0xff] }
 0x107   : > { %v1644_v28 = vadd.f32 %v1643_v10, %v1595_v8  ;;  %1789 = vmatmul.bf16.gmra.mxu0 %v5843_v61  ;;  %1838 = vmatmul.bf16.gmra.mxu1 %v5845_v37  ;;  %v444_v57 = vpack.c.bf16 %v339_v29, %v338_v36  ;;  %v445_v37 = vpack.c.bf16 %v341_v59, %v340_v39  ;;  %v721_v29 = vunpack.c.h.b16 %v440_v56  ;;  %v346_v56 = vld [vmem:[%s5636_s16 + $0x1a0] sm:$0xff] }
 0x108   : > { %v5852_v12 = vadd.f32 %v1738_v40, %v1690_v62  ;;  %v4670_v62 = vor.u32 %v5175_v43, %v4669_v52  ;;  %v4682_v40 = vor.u32 %v5172_v60, %v4679_v54  ;;  %v4674_v36 = vor.u32 %v5171_v42, %v4671_v30  ;;  %v357_v42 = vld [vmem:[%s5636_s16 + $0x1f8] sm:$0xff] }
 0x109   : > { %1936 = vmatmul.bf16.gmra.mxu3 %v5850_v11  ;;  %v728_v14 = vunpack.c.l.b16 %v444_v57  ;;  %v731_v39 = vunpack.c.h.b16 %v445_v37 }
 0x10a   : > { %1887 = vmatmul.bf16.gmra.mxu2 %v5847_v7  ;;  %v441_v7 = vpack.c.bf16 %v333_v38, %v332_v31  ;;  %1975 = vmatpush.bf16.xpose.msra.mxu0 %v4670_v62  ;;  %v730_v31 = vunpack.c.l.b16 %v445_v37 }
 0x10b   : > { %2122 = vmatpush.bf16.xpose.msra.mxu3 %v4682_v40  ;;  %2024 = vmatpush.bf16.xpose.msra.mxu1 %v4674_v36  ;;  %v5869_v53 = vpack.c.b16 %v728_v14, %v720_v13  ;;  %v355_v40 = vld [vmem:[%s5636_s16 + $0x1e8] sm:$0xff]  ;;  %v4637_v36 = vld [vmem:[#allocation6 + $0x2c0] sm:$0xf] }
 0x10c   : > { %v1741_v8 = vpop.f32.mrf.mxu3  ;;  %v1596_v10 = vpop.f32.mrf.mxu0  ;;  %v722_v52 = vunpack.c.l.b16 %v441_v7  ;;  %v723_v38 = vunpack.c.h.b16 %v441_v7  ;;  %v4645_v13 = vld [vmem:[#allocation6 + $0x2c8] sm:$0xf] }
 0x10d   : > { %v1692_v55 = vpop.f32.mrf.mxu2  ;;  %v1597_v11 = vadd.f32 %v1596_v10, %v5817_v15  ;;  %v1645_v61 = vpop.f32.mrf.mxu1  ;;  %7610 = vst [vmem:[#allocation46_spill] sm:$0xff] %v5869_v53  ;;  %v356_v10 = vld [vmem:[%s5636_s16 + $0x1f0] sm:$0xff]  ;;  %v5168_v14 = vld [vmem:[#allocation6 + $0x2e4] sm:$0xf0] }
 0x10e   : > { %v1693_v63 = vadd.f32 %v1692_v55, %v1644_v28  ;;  %v729_v28 = vunpack.c.h.b16 %v444_v57  ;;  %v5873_v60 = vpack.c.b16 %v730_v31, %v722_v52  ;;  %v5876_v54 = vpack.c.b16 %v731_v39, %v723_v38  ;;  %v347_v57 = vld [vmem:[%s5636_s16 + $0x1a8] sm:$0xff] }
 0x10f   : > { %v1646_v19 = vadd.f32 %v1645_v61, %v1597_v11  ;;  %v5164_v52 = vld [vmem:[#allocation6 + $0x2cc] sm:$0xf]  ;;  %v448_v39 = vpack.c.bf16 %v347_v57, %v346_v56 }
 0x110   : > { %v5867_v41 = vadd.f32 %v1741_v8, %v1693_v63  ;;  %v5871_v30 = vpack.c.b16 %v729_v28, %v721_v29  ;;  %7612 = vst [vmem:[#allocation48_spill] sm:$0xff] %v5873_v60  ;;  %v348_v63 = vld [vmem:[%s5636_s16 + $0x1b0] sm:$0xff]  ;;  %v349_v8 = vld [vmem:[%s5636_s16 + $0x1b8] sm:$0xff]  ;;  %v4646_v29 = vor.u32 %v5168_v14, %v4645_v13  ;;  %v5167_v28 = vld [vmem:[#allocation6 + $0x2dc] sm:$0xf0] }
 0x111   : > { %7613 = vst [vmem:[#allocation49_spill] sm:$0xff] %v5876_v54  ;;  %v4647_v31 = vld [vmem:[#allocation6 + $0x2e8] sm:$0xf0]  ;;  %v5163_v14 = vld [vmem:[#allocation6 + $0x2c4] sm:$0xf]  ;;  %v736_v56 = vunpack.c.l.b16 %v448_v39 }
 0x112   : > { %7611 = vst [vmem:[#allocation47_spill] sm:$0xff] %v5871_v30  ;;  %2074 = vmatpush.bf16.xpose.msra.mxu2 %v4646_v29 }
 0x114   : > { %v1743_v61 = vpop.f32.mrf.mxu3  ;;  %v1599_v11 = vpop.f32.mrf.mxu0 }
 0x115   : > { %v1694_v59 = vpop.f32.mrf.mxu2  ;;  %v1600_v7 = vadd.f32 %v1599_v11, %v5817_v15  ;;  %v1648_v37 = vpop.f32.mrf.mxu1 }
 0x116   : > { %v1695_v43 = vadd.f32 %v1694_v59, %v1646_v19  ;;  %v354_v19 = vld [vmem:[%s5636_s16 + $0x1e0] sm:$0xff] }
 0x117   : > { %v1649_v62 = vadd.f32 %v1648_v37, %v1600_v7  ;;  %1794 = vmatmul.bf16.gmra.mxu0 %v5869_v53  ;;  %1843 = vmatmul.bf16.gmra.mxu1 %v5871_v30  ;;  %v452_v59 = vpack.c.bf16 %v355_v40, %v354_v19  ;;  %v453_v30 = vpack.c.bf16 %v357_v42, %v356_v10  ;;  %v737_v40 = vunpack.c.h.b16 %v448_v39  ;;  %v362_v39 = vld [vmem:[%s5636_s16 + $0x220] sm:$0xff] }
 0x118   : > { %v5878_v55 = vadd.f32 %v1743_v61, %v1695_v43  ;;  %v4638_v43 = vor.u32 %v5167_v28, %v4637_v36  ;;  %v4650_v61 = vor.u32 %v5164_v52, %v4647_v31  ;;  %v4642_v19 = vor.u32 %v5163_v14, %v4639_v18  ;;  %v373_v14 = vld [vmem:[%s5636_s16 + $0x278] sm:$0xff] }
 0x119   : > { %1941 = vmatmul.bf16.gmra.mxu3 %v5876_v54  ;;  %v744_v57 = vunpack.c.l.b16 %v452_v59  ;;  %v747_v10 = vunpack.c.h.b16 %v453_v30 }
 0x11a   : > { %1892 = vmatmul.bf16.gmra.mxu2 %v5873_v60  ;;  %v449_v60 = vpack.c.bf16 %v349_v8, %v348_v63  ;;  %1976 = vmatpush.bf16.xpose.msra.mxu0 %v4638_v43  ;;  %v746_v63 = vunpack.c.l.b16 %v453_v30 }
 0x11b   : > { %2123 = vmatpush.bf16.xpose.msra.mxu3 %v4650_v61  ;;  %2025 = vmatpush.bf16.xpose.msra.mxu1 %v4642_v19  ;;  %v5895_v29 = vpack.c.b16 %v744_v57, %v736_v56  ;;  %v371_v61 = vld [vmem:[%s5636_s16 + $0x268] sm:$0xff]  ;;  %v4605_v19 = vld [vmem:[#allocation6 + $0x280] sm:$0xf] }
 0x11c   : > { %v1746_v7 = vpop.f32.mrf.mxu3  ;;  %v1601_v37 = vpop.f32.mrf.mxu0  ;;  %v738_v36 = vunpack.c.l.b16 %v449_v60  ;;  %v739_v8 = vunpack.c.h.b16 %v449_v60  ;;  %v4613_v56 = vld [vmem:[#allocation6 + $0x288] sm:$0xf] }
 0x11d   : > { %v1697_v38 = vpop.f32.mrf.mxu2  ;;  %v1602_v54 = vadd.f32 %v1601_v37, %v5817_v15  ;;  %v1650_v53 = vpop.f32.mrf.mxu1  ;;  %7614 = vst [vmem:[#allocation50_spill] sm:$0xff] %v5895_v29  ;;  %v372_v37 = vld [vmem:[%s5636_s16 + $0x270] sm:$0xff]  ;;  %v5160_v57 = vld [vmem:[#allocation6 + $0x2a4] sm:$0xf0] }
 0x11e   : > { %v1698_v11 = vadd.f32 %v1697_v38, %v1649_v62  ;;  %v745_v62 = vunpack.c.h.b16 %v452_v59  ;;  %v5899_v52 = vpack.c.b16 %v746_v63, %v738_v36  ;;  %v5902_v31 = vpack.c.b16 %v747_v10, %v739_v8  ;;  %v363_v59 = vld [vmem:[%s5636_s16 + $0x228] sm:$0xff] }
 0x11f   : > { %v1651_v17 = vadd.f32 %v1650_v53, %v1602_v54  ;;  %v5156_v36 = vld [vmem:[#allocation6 + $0x28c] sm:$0xf]  ;;  %v456_v10 = vpack.c.bf16 %v363_v59, %v362_v39 }
 0x120   : > { %v5893_v13 = vadd.f32 %v1746_v7, %v1698_v11  ;;  %v5897_v18 = vpack.c.b16 %v745_v62, %v737_v40  ;;  %7616 = vst [vmem:[#allocation52_spill] sm:$0xff] %v5899_v52  ;;  %v364_v11 = vld [vmem:[%s5636_s16 + $0x230] sm:$0xff]  ;;  %v365_v7 = vld [vmem:[%s5636_s16 + $0x238] sm:$0xff]  ;;  %v4614_v40 = vor.u32 %v5160_v57, %v4613_v56  ;;  %v5159_v62 = vld [vmem:[#allocation6 + $0x29c] sm:$0xf0] }
 0x121   : > { %7617 = vst [vmem:[#allocation53_spill] sm:$0xff] %v5902_v31  ;;  %v4615_v63 = vld [vmem:[#allocation6 + $0x2a8] sm:$0xf0]  ;;  %v5155_v57 = vld [vmem:[#allocation6 + $0x284] sm:$0xf]  ;;  %v752_v39 = vunpack.c.l.b16 %v456_v10 }
 0x122   : > { %7615 = vst [vmem:[#allocation51_spill] sm:$0xff] %v5897_v18  ;;  %2075 = vmatpush.bf16.xpose.msra.mxu2 %v4614_v40 }
 0x124   : > { %v1748_v53 = vpop.f32.mrf.mxu3  ;;  %v1604_v54 = vpop.f32.mrf.mxu0 }
 0x125   : > { %v1699_v42 = vpop.f32.mrf.mxu2  ;;  %v1605_v60 = vadd.f32 %v1604_v54, %v5817_v15  ;;  %v1653_v30 = vpop.f32.mrf.mxu1 }
 0x126   : > { %v1700_v28 = vadd.f32 %v1699_v42, %v1651_v17  ;;  %v370_v17 = vld [vmem:[%s5636_s16 + $0x260] sm:$0xff] }
 0x127   : > { %v1654_v43 = vadd.f32 %v1653_v30, %v1605_v60  ;;  %1799 = vmatmul.bf16.gmra.mxu0 %v5895_v29  ;;  %1848 = vmatmul.bf16.gmra.mxu1 %v5897_v18  ;;  %v460_v42 = vpack.c.bf16 %v371_v61, %v370_v17  ;;  %v461_v18 = vpack.c.bf16 %v373_v14, %v372_v37  ;;  %v753_v61 = vunpack.c.h.b16 %v456_v10  ;;  %v378_v10 = vld [vmem:[%s5636_s16 + $0x2a0] sm:$0xff] }
 0x128   : > { %v5904_v38 = vadd.f32 %v1748_v53, %v1700_v28  ;;  %v4606_v28 = vor.u32 %v5159_v62, %v4605_v19  ;;  %v4618_v53 = vor.u32 %v5156_v36, %v4615_v63  ;;  %v4610_v17 = vor.u32 %v5155_v57, %v4607_v16  ;;  %v389_v57 = vld [vmem:[%s5636_s16 + $0x2f8] sm:$0xff] }
 0x129   : > { %1946 = vmatmul.bf16.gmra.mxu3 %v5902_v31  ;;  %v760_v59 = vunpack.c.l.b16 %v460_v42  ;;  %v763_v37 = vunpack.c.h.b16 %v461_v18 }
 0x12a   : > { %1897 = vmatmul.bf16.gmra.mxu2 %v5899_v52  ;;  %v457_v52 = vpack.c.bf16 %v365_v7, %v364_v11  ;;  %1977 = vmatpush.bf16.xpose.msra.mxu0 %v4606_v28  ;;  %v762_v11 = vunpack.c.l.b16 %v461_v18 }
 0x12b   : > { %2124 = vmatpush.bf16.xpose.msra.mxu3 %v4618_v53  ;;  %2026 = vmatpush.bf16.xpose.msra.mxu1 %v4610_v17  ;;  %v5921_v40 = vpack.c.b16 %v760_v59, %v752_v39  ;;  %v387_v53 = vld [vmem:[%s5636_s16 + $0x2e8] sm:$0xff]  ;;  %v4573_v17 = vld [vmem:[#allocation6 + $0x240] sm:$0xf] }
 0x12c   : > { %v1751_v60 = vpop.f32.mrf.mxu3  ;;  %v1606_v30 = vpop.f32.mrf.mxu0  ;;  %v754_v19 = vunpack.c.l.b16 %v457_v52  ;;  %v755_v7 = vunpack.c.h.b16 %v457_v52  ;;  %v4581_v39 = vld [vmem:[#allocation6 + $0x248] sm:$0xf] }
 0x12d   : > { %v1702_v8 = vpop.f32.mrf.mxu2  ;;  %v1607_v31 = vadd.f32 %v1606_v30, %v5817_v15  ;;  %v1655_v29 = vpop.f32.mrf.mxu1  ;;  %7618 = vst [vmem:[#allocation54_spill] sm:$0xff] %v5921_v40  ;;  %v388_v30 = vld [vmem:[%s5636_s16 + $0x2f0] sm:$0xff]  ;;  %v5152_v59 = vld [vmem:[#allocation6 + $0x264] sm:$0xf0] }
 0x12e   : > { %v1703_v54 = vadd.f32 %v1702_v8, %v1654_v43  ;;  %v761_v43 = vunpack.c.h.b16 %v460_v42  ;;  %v5925_v36 = vpack.c.b16 %v762_v11, %v754_v19  ;;  %v5928_v63 = vpack.c.b16 %v763_v37, %v755_v7  ;;  %v379_v42 = vld [vmem:[%s5636_s16 + $0x2a8] sm:$0xff] }
 0x12f   : > { %v1656_v23 = vadd.f32 %v1655_v29, %v1607_v31  ;;  %v5148_v19 = vld [vmem:[#allocation6 + $0x24c] sm:$0xf]  ;;  %v464_v37 = vpack.c.bf16 %v379_v42, %v378_v10 }
 0x130   : > { %v5919_v56 = vadd.f32 %v1751_v60, %v1703_v54  ;;  %v5923_v16 = vpack.c.b16 %v761_v43, %v753_v61  ;;  %7620 = vst [vmem:[#allocation56_spill] sm:$0xff] %v5925_v36  ;;  %v380_v54 = vld [vmem:[%s5636_s16 + $0x2b0] sm:$0xff]  ;;  %v381_v60 = vld [vmem:[%s5636_s16 + $0x2b8] sm:$0xff]  ;;  %v4582_v61 = vor.u32 %v5152_v59, %v4581_v39  ;;  %v5151_v43 = vld [vmem:[#allocation6 + $0x25c] sm:$0xf0] }
 0x131   : > { %7621 = vst [vmem:[#allocation57_spill] sm:$0xff] %v5928_v63  ;;  %v4583_v11 = vld [vmem:[#allocation6 + $0x268] sm:$0xf0]  ;;  %v5147_v59 = vld [vmem:[#allocation6 + $0x244] sm:$0xf]  ;;  %v768_v10 = vunpack.c.l.b16 %v464_v37 }
 0x132   : > { %7619 = vst [vmem:[#allocation55_spill] sm:$0xff] %v5923_v16  ;;  %2076 = vmatpush.bf16.xpose.msra.mxu2 %v4582_v61 }
 0x134   : > { %v1753_v29 = vpop.f32.mrf.mxu3  ;;  %v1609_v31 = vpop.f32.mrf.mxu0 }
 0x135   : > { %v1704_v14 = vpop.f32.mrf.mxu2  ;;  %v1610_v52 = vadd.f32 %v1609_v31, %v5817_v15  ;;  %v1658_v18 = vpop.f32.mrf.mxu1 }
 0x136   : > { %v1705_v62 = vadd.f32 %v1704_v14, %v1656_v23  ;;  %v386_v23 = vld [vmem:[%s5636_s16 + $0x2e0] sm:$0xff] }
 0x137   : > { %v1659_v28 = vadd.f32 %v1658_v18, %v1610_v52  ;;  %1804 = vmatmul.bf16.gmra.mxu0 %v5921_v40  ;;  %1853 = vmatmul.bf16.gmra.mxu1 %v5923_v16  ;;  %v468_v14 = vpack.c.bf16 %v387_v53, %v386_v23  ;;  %v465_v16 = vpack.c.bf16 %v381_v60, %v380_v54  ;;  %v769_v53 = vunpack.c.h.b16 %v464_v37  ;;  %v394_v37 = vld [vmem:[%s5636_s16 + $0x320] sm:$0xff] }
 0x138   : > { %v5930_v8 = vadd.f32 %v1753_v29, %v1705_v62  ;;  %v4574_v62 = vor.u32 %v5151_v43, %v4573_v17  ;;  %v4586_v29 = vor.u32 %v5148_v19, %v4583_v11  ;;  %v4578_v23 = vor.u32 %v5147_v59, %v4575_v22  ;;  %v405_v59 = vld [vmem:[%s5636_s16 + $0x378] sm:$0xff] }
 0x139   : > { %1951 = vmatmul.bf16.gmra.mxu3 %v5928_v63  ;;  %v776_v42 = vunpack.c.l.b16 %v468_v14  ;;  %v770_v17 = vunpack.c.l.b16 %v465_v16  ;;  %v771_v60 = vunpack.c.h.b16 %v465_v16 }
 0x13a   : > { %1902 = vmatmul.bf16.gmra.mxu2 %v5925_v36  ;;  %v469_v36 = vpack.c.bf16 %v389_v57, %v388_v30  ;;  %1978 = vmatpush.bf16.xpose.msra.mxu0 %v4574_v62 }
 0x13b   : > { %2125 = vmatpush.bf16.xpose.msra.mxu3 %v4586_v29  ;;  %2027 = vmatpush.bf16.xpose.msra.mxu1 %v4578_v23  ;;  %v5947_v61 = vpack.c.b16 %v776_v42, %v768_v10  ;;  %v403_v29 = vld [vmem:[%s5636_s16 + $0x368] sm:$0xff]  ;;  %v4541_v23 = vld [vmem:[#allocation6 + $0x200] sm:$0xf] }
 0x13c   : > { %v1756_v52 = vpop.f32.mrf.mxu3  ;;  %v1611_v18 = vpop.f32.mrf.mxu0  ;;  %v778_v54 = vunpack.c.l.b16 %v469_v36  ;;  %v779_v30 = vunpack.c.h.b16 %v469_v36  ;;  %v4549_v10 = vld [vmem:[#allocation6 + $0x208] sm:$0xf] }
 0x13d   : > { %v1707_v7 = vpop.f32.mrf.mxu2  ;;  %v1612_v63 = vadd.f32 %v1611_v18, %v5817_v15  ;;  %v1660_v40 = vpop.f32.mrf.mxu1  ;;  %7622 = vst [vmem:[#allocation58_spill] sm:$0xff] %v5947_v61  ;;  %v404_v18 = vld [vmem:[%s5636_s16 + $0x370] sm:$0xff]  ;;  %v5144_v42 = vld [vmem:[#allocation6 + $0x224] sm:$0xf0] }
 0x13e   : > { %v1708_v31 = vadd.f32 %v1707_v7, %v1659_v28  ;;  %v777_v28 = vunpack.c.h.b16 %v468_v14  ;;  %v5951_v19 = vpack.c.b16 %v778_v54, %v770_v17  ;;  %v5954_v11 = vpack.c.b16 %v779_v30, %v771_v60  ;;  %v395_v14 = vld [vmem:[%s5636_s16 + $0x328] sm:$0xff] }
 0x13f   : > { %v1661_v21 = vadd.f32 %v1660_v40, %v1612_v63  ;;  %v5140_v17 = vld [vmem:[#allocation6 + $0x20c] sm:$0xf]  ;;  %v472_v30 = vpack.c.bf16 %v395_v14, %v394_v37 }
 0x140   : > { %v5945_v39 = vadd.f32 %v1756_v52, %v1708_v31  ;;  %v5949_v22 = vpack.c.b16 %v777_v28, %v769_v53  ;;  %7624 = vst [vmem:[#allocation60_spill] sm:$0xff] %v5951_v19  ;;  %v396_v31 = vld [vmem:[%s5636_s16 + $0x330] sm:$0xff]  ;;  %v397_v52 = vld [vmem:[%s5636_s16 + $0x338] sm:$0xff]  ;;  %v4550_v53 = vor.u32 %v5144_v42, %v4549_v10  ;;  %v5143_v28 = vld [vmem:[#allocation6 + $0x21c] sm:$0xf0] }
 0x141   : > { %7625 = vst [vmem:[#allocation61_spill] sm:$0xff] %v5954_v11  ;;  %v4551_v54 = vld [vmem:[#allocation6 + $0x228] sm:$0xf0]  ;;  %v5139_v42 = vld [vmem:[#allocation6 + $0x204] sm:$0xf]  ;;  %v784_v37 = vunpack.c.l.b16 %v472_v30 }
 0x142   : > { %7623 = vst [vmem:[#allocation59_spill] sm:$0xff] %v5949_v22  ;;  %2077 = vmatpush.bf16.xpose.msra.mxu2 %v4550_v53 }
 0x144   : > { %v1758_v40 = vpop.f32.mrf.mxu3  ;;  %v1614_v63 = vpop.f32.mrf.mxu0 }
 0x145   : > { %v1709_v57 = vpop.f32.mrf.mxu2  ;;  %v1615_v16 = vadd.f32 %v1614_v63, %v5817_v15  ;;  %v1663_v36 = vpop.f32.mrf.mxu1 }
 0x146   : > { %v1710_v43 = vadd.f32 %v1709_v57, %v1661_v21  ;;  %v402_v21 = vld [vmem:[%s5636_s16 + $0x360] sm:$0xff] }
 0x147   : > { %v1664_v62 = vadd.f32 %v1663_v36, %v1615_v16  ;;  %1809 = vmatmul.bf16.gmra.mxu0 %v5947_v61  ;;  %1858 = vmatmul.bf16.gmra.mxu1 %v5949_v22  ;;  %v476_v57 = vpack.c.bf16 %v403_v29, %v402_v21  ;;  %v473_v22 = vpack.c.bf16 %v397_v52, %v396_v31  ;;  %v785_v29 = vunpack.c.h.b16 %v472_v30  ;;  %v410_v30 = vld [vmem:[%s5636_s16 + $0x3a0] sm:$0xff] }
 0x148   : > { %v5956_v7 = vadd.f32 %v1758_v40, %v1710_v43  ;;  %v4542_v43 = vor.u32 %v5143_v28, %v4541_v23  ;;  %v4554_v40 = vor.u32 %v5140_v17, %v4551_v54  ;;  %v4546_v21 = vor.u32 %v5139_v42, %v4543_v20  ;;  %v421_v42 = vld [vmem:[%s5636_s16 + $0x3f8] sm:$0xff] }
 0x149   : > { %1956 = vmatmul.bf16.gmra.mxu3 %v5954_v11  ;;  %v792_v14 = vunpack.c.l.b16 %v476_v57  ;;  %v786_v23 = vunpack.c.l.b16 %v473_v22  ;;  %v787_v52 = vunpack.c.h.b16 %v473_v22 }
 0x14a   : > { %1907 = vmatmul.bf16.gmra.mxu2 %v5951_v19  ;;  %v477_v19 = vpack.c.bf16 %v405_v59, %v404_v18  ;;  %1979 = vmatpush.bf16.xpose.msra.mxu0 %v4542_v43 }
 0x14b   : > { %2126 = vmatpush.bf16.xpose.msra.mxu3 %v4554_v40  ;;  %2028 = vmatpush.bf16.xpose.msra.mxu1 %v4546_v21  ;;  %v5973_v53 = vpack.c.b16 %v792_v14, %v784_v37  ;;  %v419_v40 = vld [vmem:[%s5636_s16 + $0x3e8] sm:$0xff]  ;;  %v4789_v37 = vld [vmem:[#allocation6 + $0x3d8] sm:$0xf]  ;;  %v4781_v21 = vld [vmem:[#allocation6 + $0x3d0] sm:$0xf] }
 0x14c   : > { %v1761_v16 = vpop.f32.mrf.mxu3  ;;  %v1616_v36 = vpop.f32.mrf.mxu0  ;;  %v794_v31 = vunpack.c.l.b16 %v477_v19  ;;  %v795_v18 = vunpack.c.h.b16 %v477_v19  ;;  %v5202_v14 = vld [vmem:[#allocation6 + $0x3f4] sm:$0xf0] }
 0x14d   : > { %v1712_v60 = vpop.f32.mrf.mxu2  ;;  %v1617_v11 = vadd.f32 %v1616_v36, %v5817_v15  ;;  %v1665_v61 = vpop.f32.mrf.mxu1  ;;  %7626 = vst [vmem:[#allocation62_spill] sm:$0xff] %v5973_v53  ;;  %v420_v36 = vld [vmem:[%s5636_s16 + $0x3f0] sm:$0xff] }
 0x14e   : > { %v1713_v63 = vadd.f32 %v1712_v60, %v1664_v62  ;;  %v793_v62 = vunpack.c.h.b16 %v476_v57  ;;  %v5977_v17 = vpack.c.b16 %v794_v31, %v786_v23  ;;  %v5980_v54 = vpack.c.b16 %v795_v18, %v787_v52  ;;  %v411_v57 = vld [vmem:[%s5636_s16 + $0x3a8] sm:$0xff]  ;;  %v5198_v23 = vld [vmem:[#allocation6 + $0x3dc] sm:$0xf] }
 0x14f   : > { %v1666_v35 = vadd.f32 %v1665_v61, %v1617_v11  ;;  %v4791_v31 = vld [vmem:[#allocation6 + $0x3f8] sm:$0xf0]  ;;  %v480_v18 = vpack.c.bf16 %v411_v57, %v410_v30 }
 0x150   : > { %v5971_v10 = vadd.f32 %v1761_v16, %v1713_v63  ;;  %v5975_v20 = vpack.c.b16 %v793_v62, %v785_v29  ;;  %7628 = vst [vmem:[#allocation64_spill] sm:$0xff] %v5977_v17  ;;  %v412_v63 = vld [vmem:[%s5636_s16 + $0x3b0] sm:$0xff]  ;;  %v413_v16 = vld [vmem:[%s5636_s16 + $0x3b8] sm:$0xff]  ;;  %v4790_v29 = vor.u32 %v5202_v14, %v4789_v37 }
 0x151   : > { %7629 = vst [vmem:[#allocation65_spill] sm:$0xff] %v5980_v54  ;;  %v5201_v62 = vld [vmem:[#allocation6 + $0x3ec] sm:$0xf0]  ;;  %v801_v30 = vunpack.c.h.b16 %v480_v18 }
 0x152   : > { %7627 = vst [vmem:[#allocation63_spill] sm:$0xff] %v5975_v20  ;;  %2266 = vmatpush.bf16.xpose.msrb.mxu2 %v4790_v29 }
 0x154   : > { %v1763_v61 = vpop.f32.mrf.mxu3  ;;  %v1619_v11 = vpop.f32.mrf.mxu0 }
 0x155   : > { %v1714_v59 = vpop.f32.mrf.mxu2  ;;  %v1620_v22 = vadd.f32 %v1619_v11, %v5817_v15  ;;  %v1668_v19 = vpop.f32.mrf.mxu1 }
 0x156   : > { %v1715_v28 = vadd.f32 %v1714_v59, %v1666_v35  ;;  %v418_v35 = vld [vmem:[%s5636_s16 + $0x3e0] sm:$0xff] }
 0x157   : > { %v1669_v43 = vadd.f32 %v1668_v19, %v1620_v22  ;;  %1814 = vmatmul.bf16.gmra.mxu0 %v5973_v53  ;;  %1863 = vmatmul.bf16.gmra.mxu1 %v5975_v20  ;;  %v484_v59 = vpack.c.bf16 %v419_v40, %v418_v35  ;;  %v481_v20 = vpack.c.bf16 %v413_v16, %v412_v63 }
 0x158   : > { %v5982_v60 = vadd.f32 %v1763_v61, %v1715_v28  ;;  %v4782_v28 = vor.u32 %v5201_v62, %v4781_v21  ;;  %v4794_v61 = vor.u32 %v5198_v23, %v4791_v31  ;;  %v4783_v21 = vld [vmem:[#allocation6 + $0x3f0] sm:$0xf0] }
 0x159   : > { %1961 = vmatmul.bf16.gmra.mxu3 %v5980_v54  ;;  %v808_v34 = vunpack.c.l.b16 %v484_v59  ;;  %v809_v57 = vunpack.c.h.b16 %v484_v59  ;;  %v802_v35 = vunpack.c.l.b16 %v481_v20  ;;  %v803_v62 = vunpack.c.h.b16 %v481_v20 }
 0x15a   : > { %7630 = vst [vmem:[#allocation66_spill] sm:$0xff] %v5982_v60  ;;  %1912 = vmatmul.bf16.gmra.mxu2 %v5977_v17  ;;  %v485_v17 = vpack.c.bf16 %v421_v42, %v420_v36  ;;  %2168 = vmatpush.bf16.xpose.msrb.mxu0 %v4782_v28  ;;  %v800_v60 = vunpack.c.l.b16 %v480_v18 }
 0x15b   : > { %2315 = vmatpush.bf16.xpose.msrb.mxu3 %v4794_v61 }
 0x15c   : > { %v1766_v22 = vpop.f32.mrf.mxu3  ;;  %v1621_v19 = vpop.f32.mrf.mxu0  ;;  %v810_v40 = vunpack.c.l.b16 %v485_v17  ;;  %v811_v63 = vunpack.c.h.b16 %v485_v17  ;;  %v5999_v42 = vpack.c.b16 %v808_v34, %v800_v60  ;;  %v4757_v34 = vld [vmem:[#allocation6 + $0x398] sm:$0xf]  ;;  %v4749_v60 = vld [vmem:[#allocation6 + $0x390] sm:$0xf] }
 0x15d   : > { %v1717_v52 = vpop.f32.mrf.mxu2  ;;  %v1622_v54 = vadd.f32 %v1621_v19, %v5817_v15  ;;  %v1670_v53 = vpop.f32.mrf.mxu1  ;;  %v5194_v17 = vld [vmem:[#allocation6 + $0x3b4] sm:$0xf0]  ;;  %v5190_v19 = vld [vmem:[#allocation6 + $0x39c] sm:$0xf] }
 0x15e   : > { %v1718_v11 = vadd.f32 %v1717_v52, %v1669_v43  ;;  %v5197_v43 = vld [vmem:[#allocation6 + $0x3d4] sm:$0xf]  ;;  %7631 = vst [vmem:[#allocation67_spill] sm:$0xff] %v5999_v42  ;;  %v6001_v52 = vpack.c.b16 %v809_v57, %v801_v30  ;;  %v6006_v59 = vpack.c.b16 %v811_v63, %v803_v62  ;;  %v4758_v61 = vor.u32 %v5194_v17, %v4757_v34  ;;  %v5186_v34 = vld [vmem:[#allocation6 + $0x374] sm:$0xf0] }
 0x15f   : > { %v1671_v14 = vadd.f32 %v1670_v53, %v1622_v54  ;;  %v4786_v16 = vor.u32 %v5197_v43, %v4783_v21  ;;  %v6003_v53 = vpack.c.b16 %v810_v40, %v802_v35 }
 0x160   : > { %v5997_v37 = vadd.f32 %v1766_v22, %v1718_v11  ;;  %7632 = vst [vmem:[#allocation68_spill] sm:$0xff] %v6001_v52  ;;  %v5193_v11 = vld [vmem:[#allocation6 + $0x3ac] sm:$0xf0]  ;;  %2267 = vmatpush.bf16.xpose.msrb.mxu2 %v4758_v61 }
 0x161   : > { %2217 = vmatpush.bf16.xpose.msrb.mxu1 %v4786_v16  ;;  %7633 = vst [vmem:[#allocation69_spill] sm:$0xff] %v6003_v53  ;;  %v4750_v22 = vor.u32 %v5193_v11, %v4749_v60 }
 0x162   : > { %7634 = vst [vmem:[#allocation70_spill] sm:$0xff] %v6006_v59 }
 0x163   : > { %2169 = vmatpush.bf16.xpose.msrb.mxu0 %v4750_v22 }
 0x164   : > { %v1768_v23 = vpop.f32.mrf.mxu3  ;;  %v1624_v31 = vpop.f32.mrf.mxu0 }
 0x165   : > { %v1719_v36 = vpop.f32.mrf.mxu2  ;;  %v1625_v54 = vadd.f32 %v1624_v31, %v5817_v15  ;;  %v1673_v18 = vpop.f32.mrf.mxu1  ;;  %v5189_v31 = vld [vmem:[#allocation6 + $0x394] sm:$0xf] }
 0x166   : > { %v1720_v29 = vadd.f32 %v1719_v36, %v1671_v14  ;;  %v4759_v14 = vld [vmem:[#allocation6 + $0x3b8] sm:$0xf0]  ;;  %v4717_v36 = vld [vmem:[#allocation6 + $0x350] sm:$0xf] }
 0x167   : > { %v1674_v20 = vadd.f32 %v1673_v18, %v1625_v54  ;;  %1819 = vmatmul.bf16.gmra.mxu0 %v5999_v42  ;;  %1868 = vmatmul.bf16.gmra.mxu1 %v6001_v52  ;;  %v4762_v30 = vor.u32 %v5190_v19, %v4759_v14  ;;  %v4751_v54 = vld [vmem:[#allocation6 + $0x3b0] sm:$0xf0] }
 0x168   : > { %v6008_v28 = vadd.f32 %v1768_v23, %v1720_v29  ;;  %v5185_v29 = vld [vmem:[#allocation6 + $0x36c] sm:$0xf0]  ;;  %v4725_v23 = vld [vmem:[#allocation6 + $0x358] sm:$0xf]  ;;  %v4754_v17 = vor.u32 %v5189_v31, %v4751_v54  ;;  %v4655_v52 = vld [vmem:[#allocation6 + $0x2f0] sm:$0xf0] }
 0x169   : > { %1966 = vmatmul.bf16.gmra.mxu3 %v6006_v59  ;;  %v4718_v18 = vor.u32 %v5185_v29, %v4717_v36  ;;  %v4726_v60 = vor.u32 %v5186_v34, %v4725_v23  ;;  %v5165_v59 = vld [vmem:[#allocation6 + $0x2d4] sm:$0xf] }
 0x16a   : > { %1917 = vmatmul.bf16.gmra.mxu2 %v6003_v53  ;;  %2316 = vmatpush.bf16.xpose.msrb.mxu3 %v4762_v30  ;;  %v4658_v53 = vor.u32 %v5165_v59, %v4655_v52 }
 0x16b   : > { %2218 = vmatpush.bf16.xpose.msrb.mxu1 %v4754_v17  ;;  %2170 = vmatpush.bf16.xpose.msrb.mxu0 %v4718_v18 }
 0x16c   : > { %v1771_v40 = vpop.f32.mrf.mxu3  ;;  %v1626_v43 = vpop.f32.mrf.mxu0  ;;  %2268 = vmatpush.bf16.xpose.msrb.mxu2 %v4726_v60 }
 0x16d   : > { %v1722_v57 = vpop.f32.mrf.mxu2  ;;  %v1627_v21 = vadd.f32 %v1626_v43, %v5817_v15  ;;  %v1675_v62 = vpop.f32.mrf.mxu1 }
 0x16e   : > { %v1723_v35 = vadd.f32 %v1722_v57, %v1674_v20  ;;  %v4685_v57 = vld [vmem:[#allocation6 + $0x310] sm:$0xf] }
 0x16f   : > { %v1676_v16 = vadd.f32 %v1675_v62, %v1627_v21  ;;  %v5178_v21 = vld [vmem:[#allocation6 + $0x334] sm:$0xf0] }
 0x170   : > { %v6015_v63 = vadd.f32 %v1771_v40, %v1723_v35  ;;  %v5177_v35 = vld [vmem:[#allocation6 + $0x32c] sm:$0xf0]  ;;  %v4693_v40 = vld [vmem:[#allocation6 + $0x318] sm:$0xf] }
 0x171   : > { %v4686_v43 = vor.u32 %v5177_v35, %v4685_v57  ;;  %v4694_v62 = vor.u32 %v5178_v21, %v4693_v40  ;;  %v5170_v35 = vld [vmem:[#allocation6 + $0x2f4] sm:$0xf0] }
 0x173   : > { %2171 = vmatpush.bf16.xpose.msrb.mxu0 %v4686_v43 }
 0x174   : > { %v1773_v11 = vpop.f32.mrf.mxu3  ;;  %v1785_v22 = vpop.f32.mrf.mxu0  ;;  %2269 = vmatpush.bf16.xpose.msrb.mxu2 %v4694_v62 }
 0x175   : > { %v1724_v61 = vpop.f32.mrf.mxu2  ;;  %v1786_v15 = vadd.f32 %v1785_v22, %v5841_v58  ;;  %v1834_v19 = vpop.f32.mrf.mxu1  ;;  %v4727_v58 = vld [vmem:[#allocation6 + $0x378] sm:$0xf0]  ;;  %v5181_v22 = vld [vmem:[#allocation6 + $0x354] sm:$0xf] }
 0x176   : > { %v1725_v20 = vadd.f32 %v1724_v61, %v1676_v16  ;;  %v5182_v16 = vld [vmem:[#allocation6 + $0x35c] sm:$0xf]  ;;  %v4653_v61 = vld [vmem:[#allocation6 + $0x2d0] sm:$0xf] }
 0x177   : > { %v1835_v30 = vadd.f32 %v1834_v19, %v1786_v15  ;;  %1980 = vmatmul.bf16.vlgmr.msra.gmra.mxu0 %v5654_v0  ;;  %2029 = vmatmul.bf16.vlgmr.msra.gmra.mxu1 %v5656_v4  ;;  %v4730_v36 = vor.u32 %v5182_v16, %v4727_v58  ;;  %v4719_v15 = vld [vmem:[#allocation6 + $0x370] sm:$0xf0]  ;;  %v4621_v58 = vld [vmem:[#allocation6 + $0x290] sm:$0xf] }
 0x178   : > { %v6018_v14 = vadd.f32 %v1773_v11, %v1725_v20  ;;  %v5169_v20 = vld [vmem:[#allocation6 + $0x2ec] sm:$0xf0]  ;;  %v4661_v11 = vld [vmem:[#allocation6 + $0x2d8] sm:$0xf]  ;;  %v4722_v57 = vor.u32 %v5181_v22, %v4719_v15 }
 0x179   : > { %2127 = vmatmul.bf16.vlgmr.msra.gmra.mxu3 %v5660_v9  ;;  %v4654_v19 = vor.u32 %v5169_v20, %v4653_v61  ;;  %v4662_v40 = vor.u32 %v5170_v35, %v4661_v11  ;;  %v4589_v15 = vld [vmem:[#allocation6 + $0x250] sm:$0xf]  ;;  %v5173_v35 = vld [vmem:[#allocation6 + $0x314] sm:$0xf] }
 0x17a   : > { %2078 = vmatmul.bf16.vlgmr.msra.gmra.mxu2 %v5658_v5  ;;  %2317 = vmatpush.bf16.xpose.msrb.mxu3 %v4730_v36  ;;  %v5161_v36 = vld [vmem:[#allocation6 + $0x2ac] sm:$0xf0]  ;;  %v4623_v5 = vld [vmem:[#allocation6 + $0x2b0] sm:$0xf0] }
 0x17b   : > { %2219 = vmatpush.bf16.xpose.msrb.mxu1 %v4722_v57  ;;  %2172 = vmatpush.bf16.xpose.msrb.mxu0 %v4654_v19  ;;  %v5153_v19 = vld [vmem:[#allocation6 + $0x26c] sm:$0xf0]  ;;  %v4597_v57 = vld [vmem:[#allocation6 + $0x258] sm:$0xf] }
 0x17c   : > { %v1932_v31 = vpop.f32.mrf.mxu3  ;;  %v1787_v54 = vpop.f32.mrf.mxu0  ;;  %2270 = vmatpush.bf16.xpose.msrb.mxu2 %v4662_v40  ;;  %v4687_v40 = vld [vmem:[#allocation6 + $0x330] sm:$0xf0] }
 0x17d   : > { %v1883_v29 = vpop.f32.mrf.mxu2  ;;  %v1788_v18 = vadd.f32 %v1787_v54, %v5852_v12  ;;  %v1836_v34 = vpop.f32.mrf.mxu1 }
 0x17e   : > { %v1884_v23 = vadd.f32 %v1883_v29, %v1835_v30  ;;  %v4629_v29 = vld [vmem:[#allocation6 + $0x298] sm:$0xf] }
 0x17f   : > { %v1837_v60 = vadd.f32 %v1836_v34, %v1788_v18  ;;  %v5174_v18 = vld [vmem:[#allocation6 + $0x31c] sm:$0xf] }
 0x180   : > { %v6025_v17 = vadd.f32 %v1932_v31, %v1884_v23  ;;  %v4622_v23 = vor.u32 %v5161_v36, %v4621_v58  ;;  %v5162_v31 = vld [vmem:[#allocation6 + $0x2b4] sm:$0xf0]  ;;  %v4695_v34 = vld [vmem:[#allocation6 + $0x338] sm:$0xf0] }
 0x181   : > { %v4630_v54 = vor.u32 %v5162_v31, %v4629_v29 }
 0x183   : > { %2173 = vmatpush.bf16.xpose.msrb.mxu0 %v4622_v23 }
 0x184   : > { %v1934_v21 = vpop.f32.mrf.mxu3  ;;  %v6027_v62 = vpop.f32.mrf.mxu0  ;;  %2271 = vmatpush.bf16.xpose.msrb.mxu2 %v4630_v54  ;;  %v4557_v54 = vld [vmem:[#allocation6 + $0x210] sm:$0xf] }
 0x185   : > { %v1885_v30 = vpop.f32.mrf.mxu2  ;;  %v6029_v12 = vpop.f32.mrf.mxu1 }
 0x186   : > { %v1886_v43 = vadd.f32 %v1885_v30, %v1837_v60  ;;  %v4698_v60 = vor.u32 %v5174_v18, %v4695_v34  ;;  %v4590_v30 = vor.u32 %v5153_v19, %v4589_v15  ;;  %v5145_v18 = vld [vmem:[#allocation6 + $0x22c] sm:$0xf0]  ;;  %v4565_v34 = vld [vmem:[#allocation6 + $0x218] sm:$0xf] }
 0x187   : > { %1985 = vmatmul.bf16.gmra.mxu0 %v5674_v48  ;;  %2034 = vmatmul.bf16.gmra.mxu1 %v5676_v49  ;;  %v5146_v15 = vld [vmem:[#allocation6 + $0x234] sm:$0xf0] }
 0x188   : > { %v6031_v16 = vadd.f32 %v1934_v21, %v1886_v43  ;;  %2318 = vmatpush.bf16.xpose.msrb.mxu3 %v4698_v60  ;;  %v4690_v43 = vor.u32 %v5173_v35, %v4687_v40  ;;  %v5154_v21 = vld [vmem:[#allocation6 + $0x274] sm:$0xf0]  ;;  %v4558_v60 = vor.u32 %v5145_v18, %v4557_v54  ;;  %v4566_v19 = vor.u32 %v5146_v15, %v4565_v34  ;;  %v4663_v35 = vld [vmem:[#allocation6 + $0x2f8] sm:$0xf0] }
 0x189   : > { %2132 = vmatmul.bf16.gmra.mxu3 %v5680_v51  ;;  %v4598_v58 = vor.u32 %v5154_v21, %v4597_v57  ;;  %v5166_v57 = vld [vmem:[#allocation6 + $0x2dc] sm:$0xf] }
 0x18a   : > { %2083 = vmatmul.bf16.gmra.mxu2 %v5678_v50  ;;  %2220 = vmatpush.bf16.xpose.msrb.mxu1 %v4690_v43  ;;  %v4666_v40 = vor.u32 %v5166_v57, %v4663_v35  ;;  %v5158_v34 = vld [vmem:[#allocation6 + $0x29c] sm:$0xf] }
 0x18b   : > { %2174 = vmatpush.bf16.xpose.msrb.mxu0 %v4590_v30 }
 0x18c   : > { %v6039_v20 = vpop.f32.mrf.mxu3  ;;  %v6041_v11 = vpop.f32.mrf.mxu0  ;;  %2272 = vmatpush.bf16.xpose.msrb.mxu2 %v4598_v58 }
 0x18d   : > { %v6037_v61 = vpop.f32.mrf.mxu2  ;;  %v6043_v22 = vpop.f32.mrf.mxu1 }
 0x190   : > { %2319 = vmatpush.bf16.xpose.msrb.mxu3 %v4666_v40  ;;  %v5157_v40 = vld [vmem:[#allocation6 + $0x294] sm:$0xf] }
 0x191   : > { %v4626_v9 = vor.u32 %v5157_v40, %v4623_v5 }
 0x192   : > { %2221 = vmatpush.bf16.xpose.msrb.mxu1 %v4658_v53 }
 0x193   : > { %2175 = vmatpush.bf16.xpose.msrb.mxu0 %v4558_v60  ;;  %v4631_v60 = vld [vmem:[#allocation6 + $0x2b8] sm:$0xf0] }
 0x194   : > { %v6047_v29 = vpop.f32.mrf.mxu3  ;;  %v1795_v23 = vpop.f32.mrf.mxu0  ;;  %2273 = vmatpush.bf16.xpose.msrb.mxu2 %v4566_v19  ;;  %v4634_v15 = vor.u32 %v5158_v34, %v4631_v60 }
 0x195   : > { %v6045_v36 = vpop.f32.mrf.mxu2  ;;  %v6049_v31 = vpop.f32.mrf.mxu1 }
 0x197   : > { %1990 = vmatmul.bf16.gmra.mxu0 %v5694_v24  ;;  %2039 = vmatmul.bf16.gmra.mxu1 %v5696_v25 }
 0x198   : > { %2320 = vmatpush.bf16.xpose.msrb.mxu3 %v4634_v15 }
 0x199   : > { %2137 = vmatmul.bf16.gmra.mxu3 %v5700_v27 }
 0x19a   : > { %2088 = vmatmul.bf16.gmra.mxu2 %v5698_v26  ;;  %2222 = vmatpush.bf16.xpose.msrb.mxu1 %v4626_v9  ;;  %v5150_v9 = vld [vmem:[#allocation6 + $0x25c] sm:$0xf] }
 0x19c   : > { %v6055_v43 = vpop.f32.mrf.mxu3  ;;  %v1797_v21 = vpop.f32.mrf.mxu0 }
 0x19d   : > { %v1893_v30 = vpop.f32.mrf.mxu2  ;;  %v1846_v58 = vpop.f32.mrf.mxu1  ;;  %v1798_v49 = vadd.f32 %v1797_v21, %v5904_v38 }
 0x1a4   : > { %v1944_v54 = vpop.f32.mrf.mxu3  ;;  %v1800_v18 = vpop.f32.mrf.mxu0 }
 0x1a5   : > { %v1895_v42 = vpop.f32.mrf.mxu2  ;;  %v1849_v4 = vpop.f32.mrf.mxu1  ;;  %v1801_v53 = vadd.f32 %v1800_v18, %v5919_v56  ;;  %v1796_v56 = vadd.f32 %v1795_v23, %v5893_v13  ;;  %v1847_v18 = vadd.f32 %v1846_v58, %v1798_v49 }
 0x1a7   : > { %1995 = vmatmul.bf16.gmra.mxu0 %v5714_v1  ;;  %2044 = vmatmul.bf16.gmra.mxu1 %v5716_v2  ;;  %v1850_v50 = vadd.f32 %v1849_v4, %v1801_v53  ;;  %v1896_v5 = vadd.f32 %v1895_v42, %v1847_v18  ;;  %v1845_v49 = vadd.f32 %v6049_v31, %v1796_v56  ;;  %v4591_v53 = vld [vmem:[#allocation6 + $0x270] sm:$0xf0] }
 0x1a9   : > { %2142 = vmatmul.bf16.gmra.mxu3 %v5720_v6 }
 0x1aa   : > { %2093 = vmatmul.bf16.gmra.mxu2 %v5718_v3 }
 0x1ac   : > { %v1947_v57 = vpop.f32.mrf.mxu3  ;;  %v1802_v35 = vpop.f32.mrf.mxu0 }
 0x1ad   : > { %v1898_v19 = vpop.f32.mrf.mxu2  ;;  %v1851_v52 = vpop.f32.mrf.mxu1  ;;  %v1803_v59 = vadd.f32 %v1802_v35, %v5930_v8 }
 0x1ae   : > { %v1899_v26 = vadd.f32 %v1898_v19, %v1850_v50  ;;  %v4599_v50 = vld [vmem:[#allocation6 + $0x278] sm:$0xf0]  ;;  %v1791_v19 = vadd.f32 %v6027_v62, %v5867_v41 }
 0x1af   : > { %v1852_v51 = vadd.f32 %v1851_v52, %v1803_v59  ;;  %v5149_v52 = vld [vmem:[#allocation6 + $0x254] sm:$0xf] }
 0x1b0   : > { %v1948_v38 = vadd.f32 %v1947_v57, %v1899_v26  ;;  %v1945_v26 = vadd.f32 %v1944_v54, %v1896_v5  ;;  %v4594_v59 = vor.u32 %v5149_v52, %v4591_v53  ;;  %v4567_v5 = vld [vmem:[#allocation6 + $0x238] sm:$0xf0]  ;;  %v7645_v53 = vld [vmem:[#allocation33_spill] sm:$0xff] }
 0x1b1   : > { %v7643_v52 = vld [vmem:[#allocation31_spill] sm:$0xff] }
 0x1b2   : > { %v2376_v13 = vmax.f32 %v1948_v38, 0.0  ;;  %v2374_v57 = vmax.f32 %v1945_v26, 0.0  ;;  %2223 = vmatpush.bf16.xpose.msrb.mxu1 %v4594_v59  ;;  %v5141_v26 = vld [vmem:[#allocation6 + $0x214] sm:$0xf] }
 0x1b4   : > { %v1949_v60 = vpop.f32.mrf.mxu3  ;;  %v1805_v27 = vpop.f32.mrf.mxu0 }
 0x1b5   : > { %v1900_v25 = vpop.f32.mrf.mxu2  ;;  %v1806_v15 = vadd.f32 %v1805_v27, %v5945_v39  ;;  %v1854_v2 = vpop.f32.mrf.mxu1 }
 0x1b6   : > { %v1901_v34 = vadd.f32 %v1900_v25, %v1852_v51  ;;  %v1793_v51 = vadd.f32 %v6041_v11, %v5878_v55  ;;  %v4602_v25 = vor.u32 %v5150_v9, %v4599_v50 }
 0x1b7   : > { %v1855_v35 = vadd.f32 %v1854_v2, %v1806_v15  ;;  %2000 = vmatmul.bf16.gmra.mxu0 %v5734_v44  ;;  %2049 = vmatmul.bf16.gmra.mxu1 %v5736_v45  ;;  %v1894_v2 = vadd.f32 %v1893_v30, %v1845_v49  ;;  %v7639_v49 = vld [vmem:[#allocation66_spill] sm:$0xff] }
 0x1b8   : > { %v1950_v8 = vadd.f32 %v1949_v60, %v1901_v34  ;;  %2321 = vmatpush.bf16.xpose.msrb.mxu3 %v4602_v25  ;;  %v1842_v55 = vadd.f32 %v6043_v22, %v1793_v51 }
 0x1b9   : > { %2147 = vmatmul.bf16.gmra.mxu3 %v5740_v47  ;;  %v1943_v54 = vadd.f32 %v6055_v43, %v1894_v2 }
 0x1ba   : > { %v2378_v4 = vmax.f32 %v1950_v8, 0.0  ;;  %2098 = vmatmul.bf16.gmra.mxu2 %v5738_v46  ;;  %v1891_v30 = vadd.f32 %v6045_v36, %v1842_v55 }
 0x1bb   : > { %v2372_v40 = vmax.f32 %v1943_v54, 0.0 }
 0x1bc   : > { %2421 = vmatpush.xpose.msra.mxu0 %v2378_v4  ;;  %5209 = vmatpush.xpose.msra.mxu2 %v2378_v4  ;;  %v1952_v42 = vpop.f32.mrf.mxu3  ;;  %v1807_v23 = vpop.f32.mrf.mxu0  ;;  %v1940_v22 = vadd.f32 %v6047_v29, %v1891_v30  ;;  %v7638_v29 = vld [vmem:[#allocation29_spill] sm:$0xff] }
 0x1bd   : > { %v1903_v27 = vpop.f32.mrf.mxu2  ;;  %v1808_v21 = vadd.f32 %v1807_v23, %v5956_v7  ;;  %v1856_v58 = vpop.f32.mrf.mxu1  ;;  %v1840_v7 = vadd.f32 %v6029_v12, %v1791_v19 }
 0x1be   : > { %v1904_v39 = vadd.f32 %v1903_v27, %v1855_v35  ;;  %v2370_v8 = vmax.f32 %v1940_v22, 0.0  ;;  %v5142_v35 = vld [vmem:[#allocation6 + $0x21c] sm:$0xf] }
 0x1bf   : > { %v1857_v31 = vadd.f32 %v1856_v58, %v1808_v21  ;;  %v1889_v62 = vadd.f32 %v6037_v61, %v1840_v7  ;;  %v7637_v61 = vld [vmem:[#allocation28_spill] sm:$0xff]  ;;  %v2364_v21 = vmax.f32 %v6025_v17, 0.0 }
 0x1c0   : > { %v6077_v11 = vadd.f32 %v1952_v42, %v1904_v39  ;;  %2422 = vmatpush.xpose.msra.mxu0 %v2376_v13  ;;  %5210 = vmatpush.xpose.msra.mxu2 %v2376_v13  ;;  %v4559_v13 = vld [vmem:[#allocation6 + $0x230] sm:$0xf0]  ;;  %v2366_v39 = vmax.f32 %v6031_v16, 0.0  ;;  %v7644_v17 = vld [vmem:[#allocation32_spill] sm:$0xff] }
 0x1c1   : > { %v1938_v18 = vadd.f32 %v6039_v20, %v1889_v62  ;;  %v4562_v42 = vor.u32 %v5141_v26, %v4559_v13 }
 0x1c2   : > { %7635 = vst [vmem:[#allocation71_spill] sm:$0xff] %v6077_v11 }
 0x1c3   : > { %v2368_v4 = vmax.f32 %v1938_v18, 0.0  ;;  %2224 = vmatpush.bf16.xpose.msrb.mxu1 %v4562_v42 }
 0x1c4   : > { %2423 = vmatpush.xpose.msra.mxu0 %v2374_v57  ;;  %5211 = vmatpush.xpose.msra.mxu2 %v2374_v57  ;;  %v1954_v60 = vpop.f32.mrf.mxu3  ;;  %v1810_v36 = vpop.f32.mrf.mxu0  ;;  %v7642_v57 = vld [vmem:[#allocation30_spill] sm:$0xff] }
 0x1c5   : > { %v1905_v41 = vpop.f32.mrf.mxu2  ;;  %v1811_v43 = vadd.f32 %v1810_v36, %v5971_v10  ;;  %v1859_v15 = vpop.f32.mrf.mxu1  ;;  %v4570_v10 = vor.u32 %v5142_v35, %v4567_v5  ;;  %v7651_v35 = vld [vmem:[#allocation37_spill] sm:$0xff] }
 0x1c6   : > { %v1906_v34 = vadd.f32 %v1905_v41, %v1857_v31 }
 0x1c7   : > { %v1860_v12 = vadd.f32 %v1859_v15, %v1811_v43  ;;  %2005 = vmatmul.bf16.gmra.mxu0 %v5754_v32  ;;  %2054 = vmatmul.bf16.gmra.mxu1 %v5756_v33 }
 0x1c8   : > { %v6085_v56 = vadd.f32 %v1954_v60, %v1906_v34  ;;  %2424 = vmatpush.xpose.msra.mxu0 %v2372_v40  ;;  %5212 = vmatpush.xpose.msra.mxu2 %v2372_v40 }
 0x1c9   : > { %2152 = vmatmul.bf16.gmra.mxu3 %v7638_v29 }
 0x1ca   : > { %7636 = vst [vmem:[#allocation72_spill] sm:$0xff] %v6085_v56  ;;  %2103 = vmatmul.bf16.gmra.mxu2 %v7637_v61  ;;  %2322 = vmatpush.bf16.xpose.msrb.mxu3 %v4570_v10 }
 0x1cb   : > { %2632 = vmatpush.bf16.msra.mxu1 %v5714_v1 }
 0x1cc   : > { %2425 = vmatpush.xpose.msra.mxu0 %v2370_v8  ;;  %5213 = vmatpush.xpose.msra.mxu2 %v2370_v8  ;;  %v1957_v50 = vpop.f32.mrf.mxu3  ;;  %v1812_v51 = vpop.f32.mrf.mxu0  ;;  %v7648_v8 = vld [vmem:[#allocation34_spill] sm:$0xff] }
 0x1cd   : > { %v1908_v38 = vpop.f32.mrf.mxu2  ;;  %v1813_v20 = vadd.f32 %v1812_v51, %v7639_v49  ;;  %v1861_v25 = vpop.f32.mrf.mxu1  ;;  %v5352_v51 = vld [vmem:[%s7459_s3] sm:$0x3] }
 0x1ce   : > { %v1909_v9 = vadd.f32 %v1908_v38, %v1860_v12  ;;  %v6128_v49 = vperm.slane %v5352_v51, 1 }
 0x1cf   : > { %v1862_v2 = vadd.f32 %v1861_v25, %v1813_v20  ;;  %2633 = vmatpush.bf16.msra.mxu1 %v5694_v24 }
 0x1d0   : > { %v6094_v27 = vadd.f32 %v1957_v50, %v1909_v9  ;;  %2426 = vmatpush.xpose.msra.mxu0 %v2368_v4  ;;  %5214 = vmatpush.xpose.msra.mxu2 %v2368_v4 }
 0x1d2   : > { %5217 = vmatpush.bf16.msra.mxu3 %v5714_v1  ;;  %7640 = vst [vmem:[#allocation66_spill] sm:$0xff] %v6094_v27 }
 0x1d3   : > { %2634 = vmatpush.bf16.msra.mxu1 %v5674_v48 }
 0x1d4   : > { %2427 = vmatpush.xpose.msra.mxu0 %v2366_v39  ;;  %5215 = vmatpush.xpose.msra.mxu2 %v2366_v39  ;;  %v1959_v19 = vpop.f32.mrf.mxu3  ;;  %v1815_v55 = vpop.f32.mrf.mxu0 }
 0x1d5   : > { %v1910_v23 = vpop.f32.mrf.mxu2  ;;  %v1816_v31 = vadd.f32 %v1815_v55, %v5997_v37  ;;  %v1864_v30 = vpop.f32.mrf.mxu1  ;;  %v7658_v55 = vld [vmem:[#allocation50_spill] sm:$0xff] }
 0x1d6   : > { %5218 = vmatpush.bf16.msra.mxu3 %v5694_v24  ;;  %v1911_v58 = vadd.f32 %v1910_v23, %v1862_v2  ;;  %v7654_v23 = vld [vmem:[#allocation38_spill] sm:$0xff] }
 0x1d7   : > { %v1865_v54 = vadd.f32 %v1864_v30, %v1816_v31  ;;  %2010 = vmatmul.bf16.gmra.mxu0 %v7642_v57  ;;  %2059 = vmatmul.bf16.gmra.mxu1 %v7643_v52  ;;  %v7659_v30 = vld [vmem:[#allocation21_spill] sm:$0xff] }
 0x1d8   : > { %v6102_v16 = vadd.f32 %v1959_v19, %v1911_v58  ;;  %2428 = vmatpush.xpose.msra.mxu0 %v2364_v21  ;;  %5216 = vmatpush.xpose.msra.mxu2 %v2364_v21  ;;  %v7655_v21 = vld [vmem:[#allocation39_spill] sm:$0xff]  ;;  %v7656_v58 = vld [vmem:[#allocation40_spill] sm:$0xff]  ;;  %v7657_v19 = vld [vmem:[#allocation41_spill] sm:$0xff] }
 0x1d9   : > { %2157 = vmatmul.bf16.gmra.mxu3 %v7645_v53  ;;  %2635 = vmatpush.bf16.msra.mxu1 %v5654_v0  ;;  %v7693_v53 = vld [vmem:[#allocation67_spill] sm:$0xff] }
 0x1da   : > { %5219 = vmatpush.bf16.msra.mxu3 %v5674_v48  ;;  %7641 = vst [vmem:[#allocation73_spill] sm:$0xff] %v6102_v16  ;;  %2108 = vmatmul.bf16.gmra.mxu2 %v7644_v17  ;;  %v7650_v48 = vld [vmem:[#allocation36_spill] sm:$0xff] }
 0x1dc   : > { %v1962_v59 = vpop.f32.mrf.mxu3  ;;  %v1817_v7 = vpop.f32.mrf.mxu0 }
 0x1dd   : > { %v1913_v1 = vpop.f32.mrf.mxu2  ;;  %v1818_v41 = vadd.f32 %v1817_v7, %v6008_v28  ;;  %v1866_v62 = vpop.f32.mrf.mxu1  ;;  %v7649_v28 = vld [vmem:[#allocation35_spill] sm:$0xff] }
 0x1de   : > { %5220 = vmatpush.bf16.msra.mxu3 %v5654_v0  ;;  %v1914_v37 = vadd.f32 %v1913_v1, %v1865_v54 }
 0x1df   : > { %v1867_v40 = vadd.f32 %v1866_v62, %v1818_v41  ;;  %v7660_v41 = vld [vmem:[#allocation20_spill] sm:$0xff] }
 0x1e0   : > { %v6112_v22 = vadd.f32 %v1962_v59, %v1914_v37 }
 0x1e2   : > { %7646 = vst [vmem:[#allocation74_spill] sm:$0xff] %v6112_v22 }
 0x1e4   : > { %v1964_v36 = vpop.f32.mrf.mxu3  ;;  %v1820_v24 = vpop.f32.mrf.mxu0 }
 0x1e5   : > { %v1915_v34 = vpop.f32.mrf.mxu2  ;;  %v1821_v43 = vadd.f32 %v1820_v24, %v6015_v63  ;;  %v1869_v15 = vpop.f32.mrf.mxu1  ;;  %v7666_v24 = vld [vmem:[#allocation42_spill] sm:$0xff] }
 0x1e6   : > { %v1916_v60 = vadd.f32 %v1915_v34, %v1867_v40  ;;  %v7661_v40 = vld [vmem:[#allocation19_spill] sm:$0xff]  ;;  %v7663_v34 = vld [vmem:[#allocation18_spill] sm:$0xff] }
 0x1e7   : > { %v1870_v18 = vadd.f32 %v1869_v15, %v1821_v43  ;;  %2015 = vmatmul.bf16.gmra.mxu0 %v7648_v8  ;;  %2064 = vmatmul.bf16.gmra.mxu1 %v7649_v28  ;;  %v7667_v15 = vld [vmem:[#allocation15_spill] sm:$0xff] }
 0x1e8   : > { %v6116_v12 = vadd.f32 %v1964_v36, %v1916_v60  ;;  %v7664_v60 = vld [vmem:[#allocation17_spill] sm:$0xff]  ;;  %v7665_v36 = vld [vmem:[#allocation16_spill] sm:$0xff] }
 0x1e9   : > { %2162 = vmatmul.bf16.gmra.mxu3 %v7651_v35 }
 0x1ea   : > { %7647 = vst [vmem:[#allocation75_spill] sm:$0xff] %v6116_v12  ;;  %2113 = vmatmul.bf16.gmra.mxu2 %v7650_v48 }
 0x1ec   : > { %v1967_v10 = vpop.f32.mrf.mxu3  ;;  %v1822_v38 = vpop.f32.mrf.mxu0 }
 0x1ed   : > { %v1918_v5 = vpop.f32.mrf.mxu2  ;;  %v1823_v4 = vadd.f32 %v1822_v38, %v6018_v14  ;;  %v1871_v9 = vpop.f32.mrf.mxu1 }
 0x1ee   : > { %v1919_v0 = vadd.f32 %v1918_v5, %v1870_v18 }
 0x1ef   : > { %v1872_v50 = vadd.f32 %v1871_v9, %v1823_v4  ;;  %v7668_v4 = vld [vmem:[#allocation14_spill] sm:$0xff] }
 0x1f0   : > { %v6123_v63 = vadd.f32 %v1967_v10, %v1919_v0 }
 0x1f2   : > { %7652 = vst [vmem:[#allocation76_spill] sm:$0xff] %v6123_v63 }
 0x1f4   : > { %v1969_v2 = vpop.f32.mrf.mxu3  ;;  %v1981_v26 = vpop.f32.mrf.mxu0 }
 0x1f5   : > { %v1920_v20 = vpop.f32.mrf.mxu2  ;;  %v1982_v13 = vadd.f32 %v1981_v26, %v6128_v49  ;;  %v2030_v39 = vpop.f32.mrf.mxu1  ;;  %v7673_v26 = vld [vmem:[#allocation45_spill] sm:$0xff] }
 0x1f6   : > { %v1921_v25 = vadd.f32 %v1920_v20, %v1872_v50  ;;  %v7669_v50 = vld [vmem:[#allocation13_spill] sm:$0xff]  ;;  %v7670_v20 = vld [vmem:[#allocation12_spill] sm:$0xff] }
 0x1f7   : > { %v2031_v14 = vadd.f32 %v2030_v39, %v1982_v13  ;;  %2176 = vmatmul.bf16.vlgmr.msrb.gmra.mxu0 %v7654_v23  ;;  %2225 = vmatmul.bf16.vlgmr.msrb.gmra.mxu1 %v7655_v21 }
 0x1f8   : > { %v6131_v42 = vadd.f32 %v1969_v2, %v1921_v25  ;;  %2719 = vmatpush.bf16.msrb.mxu0 %v5720_v6  ;;  %2748 = vmatpush.bf16.msrb.mxu1 %v7658_v55  ;;  %v7662_v6 = vld [vmem:[#allocation46_spill] sm:$0xff]  ;;  %v7671_v25 = vld [vmem:[#allocation43_spill] sm:$0xff]  ;;  %v7672_v2 = vld [vmem:[#allocation44_spill] sm:$0xff] }
 0x1f9   : > { %2323 = vmatmul.bf16.vlgmr.msrb.gmra.mxu3 %v7657_v19 }
 0x1fa   : > { %7653 = vst [vmem:[#allocation77_spill] sm:$0xff] %v6131_v42  ;;  %2274 = vmatmul.bf16.vlgmr.msrb.gmra.mxu2 %v7656_v58  ;;  %2690 = vmatpush.bf16.msrb.mxu3 %v5718_v3 }
 0x1fb   : > { %2661 = vmatpush.bf16.msrb.mxu2 %v7659_v30 }
 0x1fc   : > { %v2128_v1 = vpop.f32.mrf.mxu3  ;;  %v1983_v37 = vpop.f32.mrf.mxu0  ;;  %2720 = vmatpush.bf16.msrb.mxu0 %v7660_v41  ;;  %2749 = vmatpush.bf16.msrb.mxu1 %v7662_v6 }
 0x1fd   : > { %v2079_v31 = vpop.f32.mrf.mxu2  ;;  %v1984_v59 = vadd.f32 %v1983_v37, %v6128_v49  ;;  %v2032_v7 = vpop.f32.mrf.mxu1 }
 0x1fe   : > { %v2080_v54 = vadd.f32 %v2079_v31, %v2031_v14  ;;  %2691 = vmatpush.bf16.msrb.mxu3 %v7661_v40 }
 0x1ff   : > { %v2033_v3 = vadd.f32 %v2032_v7, %v1984_v59  ;;  %2662 = vmatpush.bf16.msrb.mxu2 %v7663_v34 }
 0x200   : > { %v6143_v62 = vadd.f32 %v2128_v1, %v2080_v54  ;;  %2721 = vmatpush.bf16.msrb.mxu0 %v7664_v60  ;;  %2750 = vmatpush.bf16.msrb.mxu1 %v7666_v24 }
 0x202   : > { %2692 = vmatpush.bf16.msrb.mxu3 %v7665_v36  ;;  %v7674_v36 = vld [vmem:[#allocation47_spill] sm:$0xff] }
 0x203   : > { %2663 = vmatpush.bf16.msrb.mxu2 %v7667_v15 }
 0x204   : > { %v2130_v5 = vpop.f32.mrf.mxu3  ;;  %v1986_v0 = vpop.f32.mrf.mxu0  ;;  %2722 = vmatpush.bf16.msrb.mxu0 %v7668_v4  ;;  %2751 = vmatpush.bf16.msrb.mxu1 %v7654_v23 }
 0x205   : > { %v2081_v43 = vpop.f32.mrf.mxu2  ;;  %v1987_v10 = vadd.f32 %v1986_v0, %v6128_v49  ;;  %v2035_v38 = vpop.f32.mrf.mxu1 }
 0x206   : > { %v2082_v18 = vadd.f32 %v2081_v43, %v2033_v3  ;;  %2693 = vmatpush.bf16.msrb.mxu3 %v7669_v50  ;;  %v7676_v43 = vld [vmem:[#allocation49_spill] sm:$0xff] }
 0x207   : > { %v2036_v51 = vadd.f32 %v2035_v38, %v1987_v10  ;;  %2181 = vmatmul.bf16.gmra.mxu0 %v7666_v24  ;;  %2664 = vmatpush.bf16.msrb.mxu2 %v7670_v20  ;;  %v7675_v24 = vld [vmem:[#allocation48_spill] sm:$0xff] }
 0x208   : > { %v6154_v9 = vadd.f32 %v2130_v5, %v2082_v18  ;;  %2230 = vmatmul.bf16.gmra.mxu1 %v7671_v25 }
 0x209   : > { %2328 = vmatmul.bf16.gmra.mxu3 %v7673_v26 }
 0x20a   : > { %2279 = vmatmul.bf16.gmra.mxu2 %v7672_v2 }
 0x20c   : > { %v2133_v14 = vpop.f32.mrf.mxu3  ;;  %v1988_v31 = vpop.f32.mrf.mxu0 }
 0x20d   : > { %v2084_v13 = vpop.f32.mrf.mxu2  ;;  %v1989_v30 = vadd.f32 %v1988_v31, %v6128_v49  ;;  %v2037_v54 = vpop.f32.mrf.mxu1 }
 0x20e   : > { %v2085_v39 = vadd.f32 %v2084_v13, %v2036_v51 }
 0x20f   : > { %v2038_v23 = vadd.f32 %v2037_v54, %v1989_v30  ;;  %v7677_v54 = vld [vmem:[#allocation51_spill] sm:$0xff] }
 0x210   : > { %v6164_v1 = vadd.f32 %v2133_v14, %v2085_v39 }
 0x214   : > { %v2135_v7 = vpop.f32.mrf.mxu3  ;;  %v1991_v41 = vpop.f32.mrf.mxu0 }
 0x215   : > { %v2086_v37 = vpop.f32.mrf.mxu2  ;;  %v1992_v40 = vadd.f32 %v1991_v41, %v6128_v49  ;;  %v2040_v3 = vpop.f32.mrf.mxu1 }
 0x216   : > { %v2087_v59 = vadd.f32 %v2086_v37, %v2038_v23  ;;  %v7678_v23 = vld [vmem:[#allocation52_spill] sm:$0xff]  ;;  %v7679_v37 = vld [vmem:[#allocation53_spill] sm:$0xff] }
 0x217   : > { %v2041_v60 = vadd.f32 %v2040_v3, %v1992_v40  ;;  %2186 = vmatmul.bf16.gmra.mxu0 %v7662_v6 }
 0x218   : > { %v6167_v34 = vadd.f32 %v2135_v7, %v2087_v59  ;;  %2235 = vmatmul.bf16.gmra.mxu1 %v7674_v36 }
 0x219   : > { %2333 = vmatmul.bf16.gmra.mxu3 %v7676_v43 }
 0x21a   : > { %2284 = vmatmul.bf16.gmra.mxu2 %v7675_v24 }
 0x21c   : > { %v2138_v5 = vpop.f32.mrf.mxu3  ;;  %v1993_v0 = vpop.f32.mrf.mxu0 }
 0x21d   : > { %v2089_v15 = vpop.f32.mrf.mxu2  ;;  %v1994_v10 = vadd.f32 %v1993_v0, %v6128_v49  ;;  %v2042_v38 = vpop.f32.mrf.mxu1 }
 0x21e   : > { %v2090_v18 = vadd.f32 %v2089_v15, %v2041_v60 }
 0x21f   : > { %v2043_v50 = vadd.f32 %v2042_v38, %v1994_v10 }
 0x220   : > { %v6174_v4 = vadd.f32 %v2138_v5, %v2090_v18 }
 0x224   : > { %v2140_v13 = vpop.f32.mrf.mxu3  ;;  %v1996_v6 = vpop.f32.mrf.mxu0 }
 0x225   : > { %v2091_v51 = vpop.f32.mrf.mxu2  ;;  %v1997_v39 = vadd.f32 %v1996_v6, %v6128_v49  ;;  %v2045_v14 = vpop.f32.mrf.mxu1  ;;  %v7681_v6 = vld [vmem:[#allocation56_spill] sm:$0xff] }
 0x226   : > { %v2092_v20 = vadd.f32 %v2091_v51, %v2043_v50 }
 0x227   : > { %v2046_v30 = vadd.f32 %v2045_v14, %v1997_v39  ;;  %2191 = vmatmul.bf16.gmra.mxu0 %v7658_v55  ;;  %v7682_v39 = vld [vmem:[#allocation55_spill] sm:$0xff]  ;;  %v7683_v14 = vld [vmem:[#allocation57_spill] sm:$0xff] }
 0x228   : > { %v6177_v31 = vadd.f32 %v2140_v13, %v2092_v20  ;;  %2240 = vmatmul.bf16.gmra.mxu1 %v7677_v54  ;;  %v7680_v20 = vld [vmem:[#allocation54_spill] sm:$0xff] }
 0x229   : > { %2338 = vmatmul.bf16.gmra.mxu3 %v7679_v37 }
 0x22a   : > { %2289 = vmatmul.bf16.gmra.mxu2 %v7678_v23 }
 0x22c   : > { %v2143_v41 = vpop.f32.mrf.mxu3  ;;  %v1998_v40 = vpop.f32.mrf.mxu0 }
 0x22d   : > { %v2094_v59 = vpop.f32.mrf.mxu2  ;;  %v1999_v3 = vadd.f32 %v1998_v40, %v6128_v49  ;;  %v2047_v60 = vpop.f32.mrf.mxu1 }
 0x22e   : > { %v2095_v7 = vadd.f32 %v2094_v59, %v2046_v30 }
 0x22f   : > { %v2048_v18 = vadd.f32 %v2047_v60, %v1999_v3 }
 0x230   : > { %v6184_v15 = vadd.f32 %v2143_v41, %v2095_v7 }
 0x234   : > { %v2145_v10 = vpop.f32.mrf.mxu3  ;;  %v2001_v55 = vpop.f32.mrf.mxu0 }
 0x235   : > { %v2096_v5 = vpop.f32.mrf.mxu2  ;;  %v2002_v38 = vadd.f32 %v2001_v55, %v6128_v49  ;;  %v2050_v50 = vpop.f32.mrf.mxu1 }
 0x236   : > { %v2097_v0 = vadd.f32 %v2096_v5, %v2048_v18 }
 0x237   : > { %2196 = vmatmul.bf16.gmra.mxu0 %v7680_v20  ;;  %v2051_v13 = vadd.f32 %v2050_v50, %v2002_v38 }
 0x238   : > { %v6187_v51 = vadd.f32 %v2145_v10, %v2097_v0  ;;  %2245 = vmatmul.bf16.gmra.mxu1 %v7682_v39  ;;  %v7686_v39 = vld [vmem:[#allocation59_spill] sm:$0xff] }
 0x239   : > { %2343 = vmatmul.bf16.gmra.mxu3 %v7683_v14  ;;  %v7684_v14 = vld [vmem:[#allocation58_spill] sm:$0xff] }
 0x23a   : > { %2294 = vmatmul.bf16.gmra.mxu2 %v7681_v6 }
 0x23c   : > { %v2148_v7 = vpop.f32.mrf.mxu3  ;;  %v2003_v41 = vpop.f32.mrf.mxu0 }
 0x23d   : > { %v2099_v30 = vpop.f32.mrf.mxu2  ;;  %v2052_v40 = vpop.f32.mrf.mxu1  ;;  %v2004_v60 = vadd.f32 %v2003_v41, %v6128_v49 }
 0x23e   : > { %v2100_v59 = vadd.f32 %v2099_v30, %v2051_v13  ;;  %v7685_v30 = vld [vmem:[#allocation60_spill] sm:$0xff] }
 0x23f   : > { %v2053_v18 = vadd.f32 %v2052_v40, %v2004_v60 }
 0x240   : > { %v6193_v3 = vadd.f32 %v2148_v7, %v2100_v59  ;;  %v7687_v59 = vld [vmem:[#allocation61_spill] sm:$0xff] }
 0x244   : > { %v2150_v10 = vpop.f32.mrf.mxu3  ;;  %v2006_v55 = vpop.f32.mrf.mxu0 }
 0x245   : > { %v2101_v5 = vpop.f32.mrf.mxu2  ;;  %v2007_v38 = vadd.f32 %v2006_v55, %v6128_v49  ;;  %v2055_v50 = vpop.f32.mrf.mxu1 }
 0x246   : > { %v2102_v0 = vadd.f32 %v2101_v5, %v2053_v18 }
 0x247   : > { %2201 = vmatmul.bf16.gmra.mxu0 %v7684_v14  ;;  %v2056_v13 = vadd.f32 %v2055_v50, %v2007_v38  ;;  %v7688_v14 = vld [vmem:[#allocation62_spill] sm:$0xff] }
 0x248   : > { %v6197_v6 = vadd.f32 %v2150_v10, %v2102_v0  ;;  %2250 = vmatmul.bf16.gmra.mxu1 %v7686_v39 }
 0x249   : > { %2348 = vmatmul.bf16.gmra.mxu3 %v7687_v59 }
 0x24a   : > { %2299 = vmatmul.bf16.gmra.mxu2 %v7685_v30 }
 0x24c   : > { %v2153_v40 = vpop.f32.mrf.mxu3  ;;  %v2008_v60 = vpop.f32.mrf.mxu0 }
 0x24d   : > { %v2104_v7 = vpop.f32.mrf.mxu2  ;;  %v2057_v18 = vpop.f32.mrf.mxu1  ;;  %v2009_v55 = vadd.f32 %v2008_v60, %v6128_v49 }
 0x24e   : > { %v2105_v41 = vadd.f32 %v2104_v7, %v2056_v13  ;;  %v7689_v13 = vld [vmem:[#allocation64_spill] sm:$0xff]  ;;  %v7690_v7 = vld [vmem:[#allocation63_spill] sm:$0xff] }
 0x24f   : > { %v2058_v0 = vadd.f32 %v2057_v18, %v2009_v55 }
 0x250   : > { %v6203_v5 = vadd.f32 %v2153_v40, %v2105_v41  ;;  %v7691_v41 = vld [vmem:[#allocation65_spill] sm:$0xff] }
 0x254   : > { %v2155_v47 = vpop.f32.mrf.mxu3  ;;  %v2011_v38 = vpop.f32.mrf.mxu0 }
 0x255   : > { %v2106_v10 = vpop.f32.mrf.mxu2  ;;  %v2012_v50 = vadd.f32 %v2011_v38, %v6128_v49  ;;  %v2060_v30 = vpop.f32.mrf.mxu1 }
 0x256   : > { %v2107_v20 = vadd.f32 %v2106_v10, %v2058_v0 }
 0x257   : > { %v2061_v59 = vadd.f32 %v2060_v30, %v2012_v50  ;;  %2206 = vmatmul.bf16.gmra.mxu0 %v7688_v14 }
 0x258   : > { %v6207_v39 = vadd.f32 %v2155_v47, %v2107_v20  ;;  %2255 = vmatmul.bf16.gmra.mxu1 %v7690_v7 }
 0x259   : > { %2353 = vmatmul.bf16.gmra.mxu3 %v7691_v41 }
 0x25a   : > { %2304 = vmatmul.bf16.gmra.mxu2 %v7689_v13 }
 0x25c   : > { %v2158_v18 = vpop.f32.mrf.mxu3  ;;  %v2013_v55 = vpop.f32.mrf.mxu0 }
 0x25d   : > { %v2109_v40 = vpop.f32.mrf.mxu2  ;;  %v2062_v0 = vpop.f32.mrf.mxu1  ;;  %v2014_v38 = vadd.f32 %v2013_v55, %v6128_v49 }
 0x25e   : > { %v2110_v60 = vadd.f32 %v2109_v40, %v2061_v59  ;;  %v7694_v59 = vld [vmem:[#allocation69_spill] sm:$0xff]  ;;  %v7695_v40 = vld [vmem:[#allocation68_spill] sm:$0xff] }
 0x25f   : > { %v2063_v47 = vadd.f32 %v2062_v0, %v2014_v38 }
 0x260   : > { %v6213_v10 = vadd.f32 %v2158_v18, %v2110_v60  ;;  %v7696_v60 = vld [vmem:[#allocation70_spill] sm:$0xff] }
 0x264   : > { %v2160_v50 = vpop.f32.mrf.mxu3  ;;  %v2016_v29 = vpop.f32.mrf.mxu0 }
 0x265   : > { %v2111_v20 = vpop.f32.mrf.mxu2  ;;  %v2017_v13 = vadd.f32 %v2016_v29, %v6128_v49  ;;  %v2065_v14 = vpop.f32.mrf.mxu1 }
 0x266   : > { %v2112_v30 = vadd.f32 %v2111_v20, %v2063_v47 }
 0x267   : > { %v2066_v41 = vadd.f32 %v2065_v14, %v2017_v13  ;;  %2211 = vmatmul.bf16.gmra.mxu0 %v7693_v53 }
 0x268   : > { %v6217_v7 = vadd.f32 %v2160_v50, %v2112_v30  ;;  %2260 = vmatmul.bf16.gmra.mxu1 %v7695_v40 }
 0x269   : > { %2358 = vmatmul.bf16.gmra.mxu3 %v7696_v60 }
 0x26a   : > { %7692 = vst [vmem:[#allocation38_spill] sm:$0xff] %v6217_v7  ;;  %2309 = vmatmul.bf16.gmra.mxu2 %v7694_v59  ;;  %v6229_v59 = vld [vmem:[%s7460_s4] sm:$0xff] }
 0x26c   : > { %v2163_v0 = vpop.f32.mrf.mxu3  ;;  %v2018_v38 = vpop.f32.mrf.mxu0 }
 0x26d   : > { %v2114_v18 = vpop.f32.mrf.mxu2  ;;  %v2067_v47 = vpop.f32.mrf.mxu1  ;;  %v2019_v29 = vadd.f32 %v2018_v38, %v6128_v49 }
 0x26e   : > { %v2115_v55 = vadd.f32 %v2114_v18, %v2066_v41  ;;  %v6234_v41 = vld [vmem:[%s7460_s4 + $0x10] sm:$0xff] }
 0x26f   : > { %v2068_v30 = vadd.f32 %v2067_v47, %v2019_v29 }
 0x270   : > { %v6223_v20 = vadd.f32 %v2163_v0, %v2115_v55 }
 0x274   : > { %v2165_v13 = vpop.f32.mrf.mxu3  ;;  %v2177_v7 = vpop.f32.mrf.mxu0 }
 0x275   : > { %v2116_v50 = vpop.f32.mrf.mxu2  ;;  %v2226_v60 = vpop.f32.mrf.mxu1  ;;  %v2178_v49 = vadd.f32 %v2177_v7, %v6143_v62 }
 0x276   : > { %v2117_v14 = vadd.f32 %v2116_v50, %v2068_v30 }
 0x277   : > { %v2227_v55 = vadd.f32 %v2226_v60, %v2178_v49 }
 0x278   : > { %v6236_v18 = vadd.f32 %v2165_v13, %v2117_v14  ;;  %4811 = vmatmul.msk.bf16.vlgmr.msra.gmra.mxu1 %vm2454_vm0, %v6229_v59 }
 0x279   : > { %4813 = vmatmul.msk.bf16.vlgmr.msra.gmra.mxu3 %vm2454_vm0, %v6234_v41 }
 0x27a   : > { %7697 = vst [vmem:[#allocation39_spill] sm:$0xff] %v6236_v18  ;;  %2806 = vmatpush.bf16.msra.mxu3 %v7678_v23 }
 0x27c   : > { %v2324_v47 = vpop.f32.mrf.mxu3  ;;  %v2179_v29 = vpop.f32.mrf.mxu0 }
 0x27d   : > { %v2275_v0 = vpop.f32.mrf.mxu2  ;;  %v2228_v30 = vpop.f32.mrf.mxu1  ;;  %v2180_v14 = vadd.f32 %v2179_v29, %v6154_v9  ;;  %v6256_v9 = vld [vmem:[%s7460_s4 + $0x18] sm:$0xff] }
 0x27e   : > { %v2276_v38 = vadd.f32 %v2275_v0, %v2227_v55  ;;  %2807 = vmatpush.bf16.msra.mxu3 %v7675_v24  ;;  %v6251_v55 = vld [vmem:[%s7460_s4 + $0x8] sm:$0xff] }
 0x27f   : > { %v2229_v7 = vadd.f32 %v2228_v30, %v2180_v14 }
 0x280   : > { %v2325_v50 = vadd.f32 %v2324_v47, %v2276_v38 }
 0x282   : > { %v2365_v62 = vmax.f32 %v2325_v50, 0.0  ;;  %2808 = vmatpush.bf16.msra.mxu3 %v7672_v2 }
 0x284   : > { %2429 = vmatmul.f32.vlgmr.msra.gmra.mxu0 %v2365_v62  ;;  %v2326_v23 = vpop.f32.mrf.mxu3  ;;  %v2182_v49 = vpop.f32.mrf.mxu0 }
 0x285   : > { %v2277_v13 = vpop.f32.mrf.mxu2  ;;  %2835 = vmatpush.bf16.msra.mxu0 %v7679_v37  ;;  %v2231_v0 = vpop.f32.mrf.mxu1  ;;  %v2183_v2 = vadd.f32 %v2182_v49, %v6164_v1 }
 0x286   : > { %v2278_v60 = vadd.f32 %v2277_v13, %v2229_v7  ;;  %2809 = vmatpush.bf16.msra.mxu3 %v7656_v58 }
 0x287   : > { %v2232_v38 = vadd.f32 %v2231_v0, %v2183_v2 }
 0x288   : > { %v2327_v24 = vadd.f32 %v2326_v23, %v2278_v60  ;;  %4812 = vmatmul.msk.bf16.gmra.mxu1 %vm2454_vm0, %v6251_v55 }
 0x289   : > { %2836 = vmatpush.bf16.msra.mxu0 %v7676_v43  ;;  %4814 = vmatmul.msk.bf16.gmra.mxu3 %vm2454_vm0, %v6256_v9 }
 0x28a   : > { %v2367_v37 = vmax.f32 %v2327_v24, 0.0 }
 0x28c   : > { %2432 = vmatmul.f32.gmra.mxu0 %v2367_v37  ;;  %v2329_v30 = vpop.f32.mrf.mxu3  ;;  %v2184_v50 = vpop.f32.mrf.mxu0 }
 0x28d   : > { %v2280_v47 = vpop.f32.mrf.mxu2  ;;  %2837 = vmatpush.bf16.msra.mxu0 %v7673_v26  ;;  %v2233_v1 = vpop.f32.mrf.mxu1  ;;  %v2185_v58 = vadd.f32 %v2184_v50, %v6167_v34 }
 0x28e   : > { %v2281_v29 = vadd.f32 %v2280_v47, %v2232_v38 }
 0x28f   : > { %v2234_v62 = vadd.f32 %v2233_v1, %v2185_v58 }
 0x290   : > { %v2330_v14 = vadd.f32 %v2329_v30, %v2281_v29 }
 0x291   : > { %2838 = vmatpush.bf16.msra.mxu0 %v7657_v19 }
 0x292   : > { %v2369_v43 = vmax.f32 %v2330_v14, 0.0 }
 0x294   : > { %2435 = vmatmul.f32.gmra.mxu0 %v2369_v43  ;;  %v2331_v60 = vpop.f32.mrf.mxu3  ;;  %v2187_v23 = vpop.f32.mrf.mxu0 }
 0x295   : > { %v2282_v7 = vpop.f32.mrf.mxu2  ;;  %v2236_v49 = vpop.f32.mrf.mxu1  ;;  %v2188_v26 = vadd.f32 %v2187_v23, %v6174_v4 }
 0x296   : > { %v2283_v13 = vadd.f32 %v2282_v7, %v2234_v62 }
 0x297   : > { %v2237_v34 = vadd.f32 %v2236_v49, %v2188_v26 }
 0x298   : > { %v2332_v0 = vadd.f32 %v2331_v60, %v2283_v13  ;;  %4827 = vmatmul.msk.bf16.vlgmr.msrb.gmra.mxu1 %vm2454_vm0, %v6229_v59 }
 0x299   : > { %4819 = vmatmul.msk.bf16.vlgmr.msrb.gmra.mxu3 %vm2454_vm0, %v6229_v59 }
 0x29a   : > { %v2371_v24 = vmax.f32 %v2332_v0, 0.0 }
 0x29c   : > { %2438 = vmatmul.f32.gmra.mxu0 %v2371_v24  ;;  %v2334_v37 = vpop.f32.mrf.mxu3  ;;  %v2189_v38 = vpop.f32.mrf.mxu0 }
 0x29d   : > { %v2285_v19 = vpop.f32.mrf.mxu2  ;;  %v2238_v47 = vpop.f32.mrf.mxu1  ;;  %v2190_v30 = vadd.f32 %v2189_v38, %v6177_v31 }
 0x29e   : > { %v2286_v2 = vadd.f32 %v2285_v19, %v2237_v34 }
 0x29f   : > { %v2239_v1 = vadd.f32 %v2238_v47, %v2190_v30 }
 0x2a0   : > { %v2335_v29 = vadd.f32 %v2334_v37, %v2286_v2 }
 0x2a2   : > { %v2373_v50 = vmax.f32 %v2335_v29, 0.0 }
 0x2a4   : > { %2441 = vmatmul.f32.vlgmr.msra.gmra.mxu2 %v2373_v50  ;;  %4823 = vmatmul.msk.bf16.vlgmr.msrb.gmra.mxu0 %vm2454_vm0, %v6229_v59  ;;  %v2336_v58 = vpop.f32.mrf.mxu3  ;;  %v2192_v43 = vpop.f32.mrf.mxu0 }
 0x2a5   : > { %v2287_v4 = vpop.f32.mrf.mxu2  ;;  %2777 = vmatpush.bf16.msra.mxu2 %v7677_v54  ;;  %v2241_v62 = vpop.f32.mrf.mxu1  ;;  %v2193_v13 = vadd.f32 %v2192_v43, %v6184_v15 }
 0x2a6   : > { %v2288_v14 = vadd.f32 %v2287_v4, %v2239_v1 }
 0x2a7   : > { %v2242_v31 = vadd.f32 %v2241_v62, %v2193_v13 }
 0x2a8   : > { %v2337_v7 = vadd.f32 %v2336_v58, %v2288_v14  ;;  %4828 = vmatmul.msk.bf16.gmra.mxu1 %vm2454_vm0, %v6251_v55 }
 0x2a9   : > { %2778 = vmatpush.bf16.msra.mxu2 %v7674_v36  ;;  %4820 = vmatmul.msk.bf16.gmra.mxu3 %vm2454_vm0, %v6251_v55 }
 0x2aa   : > { %v2375_v60 = vmax.f32 %v2337_v7, 0.0 }
 0x2ac   : > { %2444 = vmatmul.f32.gmra.mxu2 %v2375_v60  ;;  %v2339_v49 = vpop.f32.mrf.mxu3  ;;  %v2194_v0 = vpop.f32.mrf.mxu0 }
 0x2ad   : > { %v2290_v23 = vpop.f32.mrf.mxu2  ;;  %2779 = vmatpush.bf16.msra.mxu2 %v7671_v25  ;;  %v2243_v26 = vpop.f32.mrf.mxu1  ;;  %v2195_v15 = vadd.f32 %v2194_v0, %v6187_v51  ;;  %v5494_v0 = vmov 0  }
 0x2ae   : > { %v2291_v54 = vadd.f32 %v2290_v23, %v2242_v31  ;;  %5286 = vset.pattern.permute.xlu1 %v5494_v0  ;;  %5287 = vset.pattern.permute.xlu2 %v5494_v0 }
 0x2af   : > { %v2244_v34 = vadd.f32 %v2243_v26, %v2195_v15  ;;  %5285 = vset.pattern.permute.xlu0 %v5494_v0 }
 0x2b0   : > { %v2340_v24 = vadd.f32 %v2339_v49, %v2291_v54 }
 0x2b1   : > { %2780 = vmatpush.bf16.msra.mxu2 %v7655_v21 }
 0x2b2   : > { %v2377_v36 = vmax.f32 %v2340_v24, 0.0 }
 0x2b4   : > { %2447 = vmatmul.f32.gmra.mxu2 %v2377_v36  ;;  %4824 = vmatmul.msk.bf16.gmra.mxu0 %vm2454_vm0, %v6251_v55  ;;  %v2341_v37 = vpop.f32.mrf.mxu3  ;;  %v2197_v38 = vpop.f32.mrf.mxu0 }
 0x2b5   : > { %v2292_v19 = vpop.f32.mrf.mxu2  ;;  %v2198_v25 = vadd.f32 %v2197_v38, %v6193_v3  ;;  %v2246_v47 = vpop.f32.mrf.mxu1 }
 0x2b6   : > { %v2293_v2 = vadd.f32 %v2292_v19, %v2244_v34 }
 0x2b7   : > { %v2247_v30 = vadd.f32 %v2246_v47, %v2198_v25 }
 0x2b8   : > { %v2342_v29 = vadd.f32 %v2341_v37, %v2293_v2  ;;  %4829 = vmatmul.msk.bf16.gmra.mxu1 %vm2454_vm0, %v6234_v41 }
 0x2b9   : > { %4821 = vmatmul.msk.bf16.gmra.mxu3 %vm2454_vm0, %v6234_v41 }
 0x2ba   : > { %v2379_v50 = vmax.f32 %v2342_v29, 0.0 }
 0x2bc   : > { %2450 = vmatmul.f32.gmra.mxu2 %v2379_v50  ;;  %v2344_v1 = vpop.f32.mrf.mxu3  ;;  %v2199_v4 = vpop.f32.mrf.mxu0 }
 0x2bd   : > { %v2295_v21 = vpop.f32.mrf.mxu2  ;;  %v2248_v14 = vpop.f32.mrf.mxu1  ;;  %v2200_v3 = vadd.f32 %v2199_v4, %v6197_v6  ;;  %v2412_v6 = vld [vmem:[%s7461_s5 + $0x38] sm:$0xff] }
 0x2be   : > { %v2296_v51 = vadd.f32 %v2295_v21, %v2247_v30  ;;  %2593 = vperm.xlu1 %5286, %v2412_v6  }
 0x2bf   : > { %v2249_v43 = vadd.f32 %v2248_v14, %v2200_v3  ;;  %v2409_v14 = vld [vmem:[%s7461_s5 + $0x20] sm:$0xff] }
 0x2c0   : > { %v6293_v58 = vadd.f32 %v2344_v1, %v2296_v51  ;;  %2578 = vperm.xlu2 %5287, %v2409_v14   ;;  %v2410_v14 = vld [vmem:[%s7461_s5 + $0x28] sm:$0xff] }
 0x2c2   : > { %7698 = vst [vmem:[#allocation40_spill] sm:$0xff] %v6293_v58 }
 0x2c4   : > { %4815 = vmatmul.msk.bf16.vlgmr.msrb.gmra.mxu2 %vm2454_vm0, %v6229_v59  ;;  %4825 = vmatmul.msk.bf16.gmra.mxu0 %vm2454_vm0, %v6234_v41  ;;  %v2346_v13 = vpop.f32.mrf.mxu3  ;;  %v2202_v60 = vpop.f32.mrf.mxu0 }
 0x2c5   : > { %v2297_v62 = vpop.f32.mrf.mxu2  ;;  %v2203_v31 = vadd.f32 %v2202_v60, %v6203_v5  ;;  %v2251_v23 = vpop.f32.mrf.mxu1 }
 0x2c6   : > { %v2298_v7 = vadd.f32 %v2297_v62, %v2249_v43 }
 0x2c7   : > { %v2252_v49 = vadd.f32 %v2251_v23, %v2203_v31 }
 0x2c8   : > { %v6301_v54 = vadd.f32 %v2346_v13, %v2298_v7  ;;  %4830 = vmatmul.msk.bf16.gmra.mxu1 %vm2454_vm0, %v6256_v9 }
 0x2c9   : > { %4822 = vmatmul.msk.bf16.gmra.mxu3 %vm2454_vm0, %v6256_v9 }
 0x2ca   : > { %7699 = vst [vmem:[#allocation41_spill] sm:$0xff] %v6301_v54 }
 0x2cc   : > { %v2349_v24 = vpop.f32.mrf.mxu3  ;;  %v2204_v15 = vpop.f32.mrf.mxu0 }
 0x2cd   : > { %v2300_v5 = vpop.f32.mrf.mxu2  ;;  %v2253_v36 = vpop.f32.mrf.mxu1  ;;  %v2205_v19 = vadd.f32 %v2204_v15, %v6207_v39 }
 0x2ce   : > { %v2301_v26 = vadd.f32 %v2300_v5, %v2252_v49 }
 0x2cf   : > { %v2254_v2 = vadd.f32 %v2253_v36, %v2205_v19 }
 0x2d0   : > { %v6310_v34 = vadd.f32 %v2349_v24, %v2301_v26 }
 0x2d2   : > { %7700 = vst [vmem:[#allocation50_spill] sm:$0xff] %v6310_v34 }
 0x2d4   : > { %4816 = vmatmul.msk.bf16.gmra.mxu2 %vm2454_vm0, %v6251_v55  ;;  %4826 = vmatmul.msk.bf16.gmra.mxu0 %vm2454_vm0, %v6256_v9  ;;  %v2351_v25 = vpop.f32.mrf.mxu3  ;;  %v2207_v47 = vpop.f32.mrf.mxu0 }
 0x2d5   : > { %v2302_v37 = vpop.f32.mrf.mxu2  ;;  %v2208_v29 = vadd.f32 %v2207_v47, %v6213_v10  ;;  %v2256_v30 = vpop.f32.mrf.mxu1  ;;  %v2411_v47 = vld [vmem:[%s7461_s5 + $0x30] sm:$0xff] }
 0x2d6   : > { %v2303_v38 = vadd.f32 %v2302_v37, %v2254_v2 }
 0x2d7   : > { %v2257_v21 = vadd.f32 %v2256_v30, %v2208_v29 }
 0x2d8   : > { %v6318_v50 = vadd.f32 %v2351_v25, %v2303_v38 }
 0x2d9   : > { %4835 = vmatmul.msk.bf16.vlgmr.msra.gmra.mxu3 %vm2454_vm0, %v6229_v59 }
 0x2da   : > { %7701 = vst [vmem:[#allocation21_spill] sm:$0xff] %v6318_v50 }
 0x2dc   : > { %v2354_v1 = vpop.f32.mrf.mxu3  ;;  %v6322_v4 = vpop.f32.mrf.mxu0 }
 0x2dd   : > { %v2305_v39 = vpop.f32.mrf.mxu2  ;;  %7702 = vst [vmem:[#allocation20_spill] sm:$0xff] %v6322_v4  ;;  %v6327_v3 = vpop.f32.mrf.mxu1 }
 0x2de   : > { %v2306_v51 = vadd.f32 %v2305_v39, %v2257_v21  ;;  %7703 = vst [vmem:[#allocation19_spill] sm:$0xff] %v6327_v3 }
 0x2e0   : > { %v6329_v10 = vadd.f32 %v2354_v1, %v2306_v51 }
 0x2e2   : > { %7704 = vst [vmem:[#allocation46_spill] sm:$0xff] %v6329_v10 }
 0x2e4   : > { %4817 = vmatmul.msk.bf16.gmra.mxu2 %vm2454_vm0, %v6234_v41  ;;  %4839 = vmatmul.msk.bf16.vlgmr.msra.gmra.mxu0 %vm2454_vm0, %v6229_v59  ;;  %v6337_v62 = vpop.f32.mrf.mxu3  ;;  %v2212_v7 = vpop.f32.mrf.mxu0 }
 0x2e5   : > { %v6335_v43 = vpop.f32.mrf.mxu2  ;;  %7706 = vst [vmem:[#allocation17_spill] sm:$0xff] %v6337_v62  ;;  %v2213_v13 = vadd.f32 %v2212_v7, %v6223_v20  ;;  %v2261_v60 = vpop.f32.mrf.mxu1 }
 0x2e6   : > { %7705 = vst [vmem:[#allocation18_spill] sm:$0xff] %v6335_v43  ;;  %v2406_v43 = vld [vmem:[%s7461_s5 + $0x8] sm:$0xff] }
 0x2e7   : > { %v2262_v31 = vadd.f32 %v2261_v60, %v2213_v13 }
 0x2e9   : > { %4836 = vmatmul.msk.bf16.gmra.mxu3 %vm2454_vm0, %v6251_v55 }
 0x2ec   : > { %v2359_v0 = vpop.f32.mrf.mxu3  ;;  %v6348_v5 = vpop.f32.mrf.mxu0 }
 0x2ed   : > { %v2310_v23 = vpop.f32.mrf.mxu2  ;;  %7708 = vst [vmem:[#allocation42_spill] sm:$0xff] %v6348_v5  ;;  %v2405_v5 = vld [vmem:[%s7461_s5] sm:$0xff] }
 0x2ee   : > { %v2311_v49 = vadd.f32 %v2310_v23, %v2262_v31 }
 0x2f0   : > { %v6342_v6 = vadd.f32 %v2359_v0, %v2311_v49 }
 0x2f2   : > { %7707 = vst [vmem:[#allocation16_spill] sm:$0xff] %v6342_v6 }
 0x2f4   : > { %4818 = vmatmul.msk.bf16.gmra.mxu2 %vm2454_vm0, %v6256_v9  ;;  %4840 = vmatmul.msk.bf16.gmra.mxu0 %vm2454_vm0, %v6251_v55  ;;  %v6356_v24 = vpop.f32.mrf.mxu3 }
 0x2f5   : > { %7709 = vst [vmem:[#allocation15_spill] sm:$0xff] %v6356_v24  ;;  %v6387_v29 = vpop.f32.mrf.mxu2 }
 0x2f6   : > { %7710 = vst [vmem:[#allocation14_spill] sm:$0xff] %v6387_v29  ;;  %v2408_v29 = vld [vmem:[%s7461_s5 + $0x18] sm:$0xff] }
 0x2f9   : > { %4837 = vmatmul.msk.bf16.gmra.mxu3 %vm2454_vm0, %v6234_v41 }
 0x2fc   : > { %v6368_v19 = vpop.f32.mrf.mxu3 }
 0x301   : > { %v6352_v20 = vpop.f32.mrf.mxu0 }
 0x302   : > { %v2455_v26 = vsel %vm2454_vm0, %v6352_v20, inf }
 0x303   : > { %2456 = vmin.xlane.f32.xlu0 %v2455_v26 }
 0x304   : > { %4831 = vmatmul.msk.bf16.vlgmr.msra.gmra.mxu2 %vm2454_vm0, %v6229_v59  ;;  %4841 = vmatmul.msk.bf16.gmra.mxu0 %vm2454_vm0, %v6234_v41  ;;  %v6378_v59 = vpop.f32.mrf.mxu3 }
 0x309   : > { %v6362_v15 = vpop.f32.mrf.mxu0  ;;  %4838 = vmatmul.msk.bf16.gmra.mxu3 %vm2454_vm0, %v6256_v9 }
 0x30a   : > { %v2458_v36 = vsel %vm2454_vm0, %v6362_v15, inf }
 0x30b   : > { %2459 = vmin.xlane.f32.xlu0 %v2458_v36 }
 0x30c   : > { %v6389_v30 = vpop.f32.mrf.mxu3 }
 0x311   : > { %v6370_v2 = vpop.f32.mrf.mxu0 }
 0x312   : > { %v2461_v37 = vsel %vm2454_vm0, %v6370_v2, inf }
 0x313   : > { %2462 = vmin.xlane.f32.xlu1 %v2461_v37 }
 0x314   : > { %4832 = vmatmul.msk.bf16.gmra.mxu2 %vm2454_vm0, %v6251_v55  ;;  %4842 = vmatmul.msk.bf16.gmra.mxu0 %vm2454_vm0, %v6256_v9  ;;  %v6397_v39 = vpop.f32.mrf.mxu3 }
 0x319   : > { %v6380_v38 = vpop.f32.mrf.mxu0 }
 0x31a   : > { %v2464_v25 = vsel %vm2454_vm0, %v6380_v38, inf }
 0x31b   : > { %2465 = vmin.xlane.f32.xlu1 %v2464_v25  ;;  %v6432_v25 = vpop.f32.mrf.mxu1 }
 0x31c   : > { %7711 = vst [vmem:[#allocation13_spill] sm:$0xff] %v6432_v25 }
 0x31f   : > { %2588 = vperm.xlu0 %5285, %v2411_v47  }
 0x321   : > { %v6410_v7 = vpop.f32.mrf.mxu0 }
 0x324   : > { %4833 = vmatmul.msk.bf16.gmra.mxu2 %vm2454_vm0, %v6234_v41  ;;  %v6408_v41 = vpop.f32.mrf.mxu3 }
 0x327   : > { %v6393_v55 = vpop.f32.mrf.mxu2 }
 0x328   : > { %v2467_v21 = vsel %vm2454_vm0, %v6393_v55, inf }
 0x329   : > { %2468 = vmin.xlane.f32.xlu2 %v2467_v21  ;;  %v6420_v49 = vpop.f32.mrf.mxu0 }
 0x32c   : > { %v6416_v31 = vpop.f32.mrf.mxu3 }
 0x32f   : > { %v6399_v51 = vpop.f32.mrf.mxu2 }
 0x330   : > { %v2470_v1 = vsel %vm2454_vm0, %v6399_v51, inf  ;;  %v6475_v35 = vpop.permute.xlu1 %2593 }
 0x331   : > { %2471 = vmin.xlane.f32.xlu2 %v2470_v1  ;;  %v6428_v36 = vpop.f32.mrf.mxu0  ;;  %v2407_v1 = vld [vmem:[%s7461_s5 + $0x10] sm:$0xff] }
 0x334   : > { %4834 = vmatmul.msk.bf16.gmra.mxu2 %vm2454_vm0, %v6256_v9  ;;  %2583 = vperm.xlu1 %5286, %v2410_v14   ;;  %v6426_v26 = vpop.f32.mrf.mxu3 }
 0x337   : > { %v6412_v13 = vpop.f32.mrf.mxu2 }
 0x338   : > { %v2473_v60 = vsel %vm2454_vm0, %v6412_v13, inf }
 0x339   : > { %2474 = vmin.xlane.f32.xlu2 %v2473_v60  ;;  %v6436_v21 = vpop.f32.mrf.mxu0  ;;  %v6443_v60 = vpop.f32.mrf.mxu1 }
 0x33c   : > { %v6434_v47 = vpop.f32.mrf.mxu3 }
 0x33f   : > { %v6418_v23 = vpop.f32.mrf.mxu2 }
 0x340   : > { %v2476_v9 = vsel %vm2454_vm0, %v6418_v23, inf }
 0x341   : > { %2477 = vmin.xlane.f32.xlu2 %v2476_v9  ;;  %v6447_v24 = vpop.f32.mrf.mxu0  ;;  %v6454_v25 = vpop.f32.mrf.mxu1 }
 0x344   : > { %v6445_v9 = vpop.f32.mrf.mxu3 }
 0x347   : > { %v6424_v0 = vpop.f32.mrf.mxu2 }
 0x349   : > { %v6463_v62 = vpop.f32.mrf.mxu0  ;;  %v6468_v10 = vpop.f32.mrf.mxu1 }
 0x34f   : > { %v6430_v37 = vpop.f32.mrf.mxu2 }
 0x351   : > { %v2739_v4 = vpop.f32.mrf.mxu0  ;;  %v6473_v58 = vpop.f32.mrf.mxu1 }
 0x357   : > { %v6441_v14 = vpop.f32.mrf.mxu2 }
 0x359   : > { %2568 = vperm.xlu2 %5287, %v2407_v1   ;;  %v6459_v1 = vpop.f32.mrf.mxu3 }
 0x35f   : > { %v6452_v6 = vpop.f32.mrf.mxu2 }
 0x361   : > { %2573 = vperm.xlu2 %5287, %v2408_v29   ;;  %v2710_v3 = vpop.f32.mrf.mxu3 }
 0x367   : > { %v6461_v18 = vpop.f32.mrf.mxu2 }
 0x369   : > { %2558 = vperm.xlu2 %5287, %v2405_v5   ;;  %v2712_v53 = vpop.f32.mrf.mxu3  ;;  %v2741_v5 = vpop.f32.mrf.mxu0 }
 0x36a   : > { %v2742_v17 = vadd.f32 %v2741_v5, %v6475_v35 }
 0x36c   : > { %v2919_v5 = vmax.f32 %v2742_v17, 0.0 }
 0x36f   : > { %v6470_v29 = vpop.f32.mrf.mxu2 }
 0x371   : > { %2563 = vperm.xlu2 %5287, %v2406_v43  }
 0x376   : > { %v2457_v50 = vpop.xlane.xlu0 %2456 }
 0x377   : > { %v2479_v34 = vsub.f32 %v2457_v50, %v6352_v20  ;;  %v2681_v54 = vpop.f32.mrf.mxu2  ;;  %v6482_v50 = vpop.f32.mrf.mxu1 }
 0x379   : > { %v2487_v40 = vmul.f32 1.442695, %v2479_v34  ;;  %v6484_v34 = vpop.f32.mrf.mxu3 }
 0x37a   : > { %7713 = vst [vmem:[#allocation43_spill] sm:$0xff] %v6484_v34 }
 0x37b   : > { %5288 = vpow2.f32 %v2487_v40  ;;  %v6486_v40 = vpop.f32.mrf.mxu0 }
 0x37c   : > { %7714 = vst [vmem:[#allocation44_spill] sm:$0xff] %v6486_v40 }
 0x37e   : > { %v2460_v11 = vpop.xlane.xlu0 %2459 }
 0x37f   : > { %v2480_v56 = vsub.f32 %v2460_v11, %v6362_v15  ;;  %v2683_v27 = vpop.f32.mrf.mxu2  ;;  %v6495_v22 = vpop.f32.mrf.mxu1 }
 0x380   : > { %v2684_v32 = vadd.f32 %v2683_v27, %v6475_v35 }
 0x381   : > { %v6478_v16 = vpop.eup %5288  ;;  %v2489_v43 = vmul.f32 1.442695, %v2480_v56 }
 0x382   : > { %7712 = vst [vmem:[#allocation12_spill] sm:$0xff] %v6478_v16  ;;  %v2503_v46 = vsel %vm2454_vm0, %v6478_v16, 0.0 }
 0x383   : > { %5290 = vpow2.f32 %v2489_v43  ;;  %2504 = vadd.xlane.f32.xlu1 %v2503_v46  ;;  %v6497_v46 = vpop.f32.mrf.mxu3  ;;  %v6500_v33 = vpop.f32.mrf.mxu0 }
 0x386   : > { %v2463_v20 = vpop.xlane.xlu1 %2462 }
 0x387   : > { %v6488_v45 = vpop.f32.mrf.mxu2  ;;  %v2481_v11 = vsub.f32 %v2463_v20, %v6370_v2  ;;  %v2655_v2 = vadd.f32 %v6397_v39, %v6475_v35  ;;  %v6516_v39 = vpop.permute.xlu2 %2578 }
 0x389   : > { %v6491_v15 = vpop.eup %5290  ;;  %v2491_v44 = vmul.f32 1.442695, %v2481_v11  ;;  %v2713_v11 = vadd.f32 %v2712_v53, %v6475_v35  ;;  %v2916_v57 = vmax.f32 %v2655_v2, 0.0 }
 0x38a   : > { %7715 = vst [vmem:[#allocation45_spill] sm:$0xff] %v6491_v15  ;;  %v2506_v56 = vsel %vm2454_vm0, %v6491_v15, 0.0 }
 0x38b   : > { %2507 = vadd.xlane.f32.xlu0 %v2506_v56  ;;  %5292 = vpow2.f32 %v2491_v44  ;;  %v2918_v53 = vmax.f32 %v2713_v11, 0.0  ;;  %v6528_v17 = vpop.f32.mrf.mxu0  ;;  %v2648_v11 = vadd.f32 %v6368_v19, %v6516_v39  ;;  %v2735_v19 = vadd.f32 %v6447_v24, %v6516_v39 }
 0x38e   : > { %v2466_v43 = vpop.xlane.xlu1 %2465 }
 0x38f   : > { %v2482_v61 = vsub.f32 %v2466_v43, %v6380_v38  ;;  %v6505_v12 = vpop.f32.mrf.mxu2 }
 0x391   : > { %v2493_v20 = vmul.f32 1.442695, %v2482_v61  ;;  %v6507_v56 = vpop.permute.xlu0 %2588  ;;  %v2917_v61 = vmax.f32 %v2684_v32, 0.0  ;;  %v6518_v8 = vpop.eup %5292 }
 0x392   : > { %v2653_v38 = vadd.f32 %v6389_v30, %v6507_v56  ;;  %v2682_v43 = vadd.f32 %v2681_v54, %v6507_v56  ;;  %v2711_v44 = vadd.f32 %v2710_v3, %v6507_v56  ;;  %v2740_v27 = vadd.f32 %v2739_v4, %v6507_v56  ;;  %7716 = vst [vmem:[#allocation47_spill] sm:$0xff] %v6518_v8  ;;  %v6520_v54 = vpop.f32.mrf.mxu1  ;;  %v6524_v32 = vpop.f32.mrf.mxu3 }
 0x393   : > { %5294 = vpow2.f32 %v2493_v20  ;;  %v2509_v2 = vsel %vm2454_vm0, %v6518_v8, 0.0 }
 0x394   : > { %v2908_v52 = vmax.f32 %v2653_v38, 0.0  ;;  %v2909_v63 = vmax.f32 %v2682_v43, 0.0  ;;  %v2910_v48 = vmax.f32 %v2711_v44, 0.0  ;;  %v2911_v28 = vmax.f32 %v2740_v27, 0.0  ;;  %v6543_v44 = vpop.f32.mrf.mxu0 }
 0x395   : > { %v2677_v43 = vadd.f32 %v6461_v18, %v6516_v39 }
 0x396   : > { %v2948_v30 = vpack.c.bf16 %v2916_v57, %v2908_v52  ;;  %v2949_v42 = vpack.c.bf16 %v2917_v61, %v2909_v63  ;;  %v2950_v20 = vpack.c.bf16 %v2918_v53, %v2910_v48  ;;  %v2951_v3 = vpack.c.bf16 %v2919_v5, %v2911_v28 }
 0x397   : > { %v6532_v52 = vpop.f32.mrf.mxu2  ;;  %v2706_v61 = vadd.f32 %v6445_v9, %v6516_v39 }
 0x398   : > { %3036 = vmatpush.bf16.msra.mxu1 %v2948_v30  ;;  %3065 = vmatpush.bf16.msrb.mxu2 %v2949_v42  ;;  %v2892_v30 = vmax.f32 %v2648_v11, 0.0 }
 0x399   : > { %v6522_v4 = vpop.eup %5294  ;;  %3094 = vmatpush.bf16.msrb.mxu3 %v2950_v20  ;;  %3123 = vmatpush.bf16.msrb.mxu0 %v2951_v3 }
 0x39a   : > { %7717 = vst [vmem:[#allocation48_spill] sm:$0xff] %v6522_v4  ;;  %2510 = vadd.xlane.f32.xlu2 %v2509_v2  ;;  %v2512_v57 = vsel %vm2454_vm0, %v6522_v4, 0.0  ;;  %v6535_v42 = vpop.f32.mrf.mxu1  ;;  %v6539_v38 = vpop.f32.mrf.mxu3 }
 0x39b   : > { %2513 = vadd.xlane.f32.xlu1 %v2512_v57  ;;  %v2893_v57 = vmax.f32 %v2677_v43, 0.0 }
 0x39c   : > { %v2469_v28 = vpop.xlane.xlu2 %2468 }
 0x39d   : > { %v2483_v48 = vsub.f32 %v2469_v28, %v6393_v55  ;;  %v2894_v28 = vmax.f32 %v2706_v61, 0.0 }
 0x39f   : > { %v2495_v63 = vmul.f32 1.442695, %v2483_v48  ;;  %v6547_v53 = vpop.f32.mrf.mxu2 }
 0x3a1   : > { %5296 = vpow2.f32 %v2495_v63 }
 0x3a2   : > { %v2821_v15 = vpop.f32.mrf.mxu3 }
 0x3a4   : > { %v2472_v27 = vpop.xlane.xlu2 %2471 }
 0x3a5   : > { %v2484_v55 = vsub.f32 %v2472_v27, %v6399_v51 }
 0x3a6   : > { %v6550_v5 = vpop.permute.xlu1 %2583 }
 0x3a7   : > { %v6554_v20 = vpop.eup %5296  ;;  %v2497_v3 = vmul.f32 1.442695, %v2484_v55  ;;  %v2650_v18 = vadd.f32 %v6378_v59, %v6550_v5  ;;  %v2679_v2 = vadd.f32 %v6470_v29, %v6550_v5  ;;  %v2708_v9 = vadd.f32 %v6459_v1, %v6550_v5  ;;  %v6566_v55 = vpop.f32.mrf.mxu1 }
 0x3a8   : > { %7718 = vst [vmem:[#allocation49_spill] sm:$0xff] %v6554_v20  ;;  %v2515_v51 = vsel %vm2454_vm0, %v6554_v20, 0.0  ;;  %v2737_v24 = vadd.f32 %v6463_v62, %v6550_v5  ;;  %v2895_v59 = vmax.f32 %v2735_v19, 0.0  ;;  %v6569_v62 = vpop.f32.mrf.mxu0  ;;  %v6573_v19 = vpop.f32.mrf.mxu2 }
 0x3a9   : > { %5298 = vpow2.f32 %v2497_v3  ;;  %2516 = vadd.xlane.f32.xlu0 %v2515_v51  ;;  %v2900_v48 = vmax.f32 %v2650_v18, 0.0  ;;  %v2901_v63 = vmax.f32 %v2679_v2, 0.0  ;;  %v2902_v11 = vmax.f32 %v2708_v9, 0.0 }
 0x3aa   : > { %v2903_v27 = vmax.f32 %v2737_v24, 0.0 }
 0x3ab   : > { %v2940_v29 = vpack.c.bf16 %v2900_v48, %v2892_v30  ;;  %v2941_v4 = vpack.c.bf16 %v2901_v63, %v2893_v57  ;;  %v2942_v1 = vpack.c.bf16 %v2902_v11, %v2894_v28 }
 0x3ac   : > { %v2475_v43 = vpop.xlane.xlu2 %2474  ;;  %v2943_v8 = vpack.c.bf16 %v2903_v27, %v2895_v59 }
 0x3ad   : > { %v2485_v61 = vsub.f32 %v2475_v43, %v6412_v13  ;;  %3037 = vmatpush.bf16.msra.mxu1 %v2940_v29  ;;  %3066 = vmatpush.bf16.msrb.mxu2 %v2941_v4  ;;  %v6580_v4 = vpop.f32.mrf.mxu3 }
 0x3ae   : > { %3095 = vmatpush.bf16.msrb.mxu3 %v2942_v1  ;;  %3124 = vmatpush.bf16.msrb.mxu0 %v2943_v8 }
 0x3af   : > { %v6571_v3 = vpop.eup %5298  ;;  %v2499_v18 = vmul.f32 1.442695, %v2485_v61  ;;  %v2765_v9 = vpop.f32.mrf.mxu1 }
 0x3b0   : > { %7719 = vst [vmem:[#allocation51_spill] sm:$0xff] %v6571_v3  ;;  %v2518_v30 = vsel %vm2454_vm0, %v6571_v3, 0.0  ;;  %v6582_v8 = vpop.f32.mrf.mxu0  ;;  %v6586_v24 = vpop.f32.mrf.mxu2 }
 0x3b1   : > { %5300 = vpow2.f32 %v2499_v18  ;;  %2519 = vadd.xlane.f32.xlu1 %v2518_v30 }
 0x3b4   : > { %v2478_v2 = vpop.xlane.xlu2 %2477 }
 0x3b5   : > { %v2486_v13 = vsub.f32 %v2478_v2, %v6418_v23  ;;  %v2826_v59 = vpop.f32.mrf.mxu3 }
 0x3b7   : > { %v6578_v57 = vpop.eup %5300  ;;  %v2501_v51 = vmul.f32 1.442695, %v2486_v13  ;;  %v2768_v11 = vpop.f32.mrf.mxu1 }
 0x3b8   : > { %7720 = vst [vmem:[#allocation52_spill] sm:$0xff] %v6578_v57  ;;  %v2521_v28 = vsel %vm2454_vm0, %v6578_v57, 0.0  ;;  %v2855_v27 = vpop.f32.mrf.mxu0  ;;  %v2797_v18 = vpop.f32.mrf.mxu2 }
 0x3b9   : > { %5302 = vpow2.f32 %v2501_v51  ;;  %2522 = vadd.xlane.f32.xlu0 %v2521_v28 }
 0x3bc   : > { %v6588_v48 = vpop.permute.xlu2 %2568 }
 0x3bd   : > { %v2643_v29 = vadd.f32 %v6468_v10, %v6588_v48  ;;  %v2672_v1 = vadd.f32 %v6441_v14, %v6588_v48  ;;  %v2701_v43 = vadd.f32 %v6426_v26, %v6588_v48  ;;  %v2730_v61 = vadd.f32 %v6428_v36, %v6588_v48 }
 0x3bf   : > { %v6590_v63 = vpop.eup %5302  ;;  %v2876_v51 = vmax.f32 %v2643_v29, 0.0  ;;  %v2877_v26 = vmax.f32 %v2672_v1, 0.0  ;;  %v2878_v28 = vmax.f32 %v2701_v43, 0.0  ;;  %v2770_v20 = vpop.f32.mrf.mxu1  ;;  %v6616_v29 = vadd.f32 %v2821_v15, %v6516_v39 }
 0x3c0   : > { %7721 = vst [vmem:[#allocation53_spill] sm:$0xff] %v6590_v63  ;;  %v2524_v23 = vsel %vm2454_vm0, %v6590_v63, 0.0  ;;  %v2857_v1 = vpop.f32.mrf.mxu0 }
 0x3c1   : > { %2525 = vadd.xlane.f32.xlu1 %v2524_v23  ;;  %v2879_v23 = vmax.f32 %v2730_v61, 0.0 }
 0x3c4   : > { %v6602_v30 = vpop.permute.xlu2 %2573 }
 0x3c5   : > { %v2645_v2 = vadd.f32 %v6473_v58, %v6602_v30  ;;  %v2674_v13 = vadd.f32 %v6452_v6, %v6602_v30  ;;  %v2703_v10 = vadd.f32 %v6434_v47, %v6602_v30  ;;  %v2732_v14 = vadd.f32 %v6436_v21, %v6602_v30  ;;  %v2828_v6 = vpop.f32.mrf.mxu3 }
 0x3c6   : > { %v2764_v47 = vadd.f32 %v6566_v55, %v6516_v39  ;;  %v2771_v21 = vadd.f32 %v2770_v20, %v6475_v35  ;;  %v2829_v61 = vadd.f32 %v2828_v6, %v6475_v35  ;;  %v2858_v55 = vadd.f32 %v2857_v1, %v6475_v35 }
 0x3c7   : > { %v2884_v36 = vmax.f32 %v2645_v2, 0.0  ;;  %v2885_v63 = vmax.f32 %v2674_v13, 0.0  ;;  %v2886_v57 = vmax.f32 %v2703_v10, 0.0  ;;  %v2887_v3 = vmax.f32 %v2732_v14, 0.0 }
 0x3c8   : > { %v2766_v20 = vadd.f32 %v2765_v9, %v6550_v5  ;;  %v2896_v15 = vmax.f32 %v2764_v47, 0.0  ;;  %v2920_v2 = vmax.f32 %v2771_v21, 0.0 }
 0x3c9   : > { %v2932_v16 = vpack.c.bf16 %v2884_v36, %v2876_v51  ;;  %v2933_v58 = vpack.c.bf16 %v2885_v63, %v2877_v26  ;;  %v2934_v40 = vpack.c.bf16 %v2886_v57, %v2878_v28  ;;  %v2935_v34 = vpack.c.bf16 %v2887_v3, %v2879_v23  ;;  %v2799_v57 = vpop.f32.mrf.mxu2 }
 0x3ca   : > { %v2856_v63 = vadd.f32 %v2855_v27, %v6507_v56  ;;  %v2827_v3 = vadd.f32 %v2826_v59, %v6507_v56  ;;  %v2800_v13 = vadd.f32 %v2799_v57, %v6475_v35  ;;  %v2851_v59 = vadd.f32 %v6569_v62, %v6516_v39 }
 0x3cb   : > { %3038 = vmatpush.bf16.msra.mxu1 %v2932_v16  ;;  %3067 = vmatpush.bf16.msrb.mxu2 %v2933_v58  ;;  %v2769_v16 = vadd.f32 %v2768_v11, %v6507_v56  ;;  %v2922_v26 = vmax.f32 %v2829_v61, 0.0  ;;  %v2923_v28 = vmax.f32 %v2858_v55, 0.0  ;;  %v2904_v23 = vmax.f32 %v2766_v20, 0.0 }
 0x3cc   : > { %3096 = vmatpush.bf16.msrb.mxu3 %v2934_v40  ;;  %3125 = vmatpush.bf16.msrb.mxu0 %v2935_v34  ;;  %v6618_v43 = vpop.permute.xlu2 %2558  ;;  %v2898_v40 = vmax.f32 %v6616_v29, 0.0  ;;  %v2798_v34 = vadd.f32 %v2797_v18, %v6507_v56  ;;  %v2915_v27 = vmax.f32 %v2856_v63, 0.0  ;;  %v2914_v10 = vmax.f32 %v2827_v3, 0.0 }
 0x3cd   : > { %v2912_v11 = vmax.f32 %v2769_v16, 0.0  ;;  %v2638_v14 = vadd.f32 %v6443_v60, %v6618_v43  ;;  %v2667_v9 = vadd.f32 %v6424_v0, %v6618_v43  ;;  %v2696_v51 = vadd.f32 %v6408_v41, %v6618_v43 }
 0x3ce   : > { %v2725_v18 = vadd.f32 %v6410_v7, %v6618_v43  ;;  %v2824_v62 = vadd.f32 %v6580_v4, %v6550_v5  ;;  %v2795_v36 = vadd.f32 %v6586_v24, %v6550_v5  ;;  %v2913_v58 = vmax.f32 %v2798_v34, 0.0 }
 0x3cf   : > { %v2921_v60 = vmax.f32 %v2800_v13, 0.0  ;;  %v2853_v0 = vadd.f32 %v6582_v8, %v6550_v5  ;;  %v2860_v24 = vmax.f32 %v2638_v14, 0.0  ;;  %v2861_v21 = vmax.f32 %v2667_v9, 0.0 }
 0x3d0   : > { %v2862_v29 = vmax.f32 %v2696_v51, 0.0  ;;  %v2863_v1 = vmax.f32 %v2725_v18, 0.0  ;;  %v2952_v16 = vpack.c.bf16 %v2920_v2, %v2912_v11  ;;  %v2906_v61 = vmax.f32 %v2824_v62, 0.0 }
 0x3d1   : > { %v2954_v13 = vpack.c.bf16 %v2922_v26, %v2914_v10  ;;  %v2905_v14 = vmax.f32 %v2795_v36, 0.0  ;;  %v2944_v9 = vpack.c.bf16 %v2904_v23, %v2896_v15  ;;  %v2899_v51 = vmax.f32 %v2851_v59, 0.0 }
 0x3d2   : > { %v2953_v18 = vpack.c.bf16 %v2921_v60, %v2913_v58  ;;  %v2946_v11 = vpack.c.bf16 %v2906_v61, %v2898_v40  ;;  %v2819_v10 = vadd.f32 %v6539_v38, %v6602_v30  ;;  %v2848_v15 = vadd.f32 %v6543_v44, %v6602_v30 }
 0x3d3   : > { %v2817_v40 = vadd.f32 %v6524_v32, %v6588_v48  ;;  %v2846_v38 = vadd.f32 %v6528_v17, %v6588_v48  ;;  %v2754_v58 = vadd.f32 %v6482_v50, %v6618_v43 }
 0x3d4   : > { %v6643_v6 = vpop.permute.xlu2 %2563  ;;  %v2890_v23 = vmax.f32 %v2819_v10, 0.0  ;;  %v2891_v62 = vmax.f32 %v2848_v15, 0.0 }
 0x3d5   : > { %v2640_v41 = vadd.f32 %v6454_v25, %v6643_v6  ;;  %v2669_v7 = vadd.f32 %v6430_v37, %v6643_v6  ;;  %v2698_v47 = vadd.f32 %v6416_v31, %v6643_v6  ;;  %v2727_v4 = vadd.f32 %v6420_v49, %v6643_v6 }
 0x3d6   : > { %v2793_v25 = vadd.f32 %v6573_v19, %v6516_v39  ;;  %v2907_v37 = vmax.f32 %v2853_v0, 0.0  ;;  %v2955_v49 = vpack.c.bf16 %v2923_v28, %v2915_v27  ;;  %v2790_v19 = vadd.f32 %v6547_v53, %v6602_v30  ;;  %v7722_v0 = vld [vmem:[#allocation43_spill] sm:$0xff] }
 0x3d7   : > { %v2868_v63 = vmax.f32 %v2640_v41, 0.0  ;;  %v2869_v3 = vmax.f32 %v2669_v7, 0.0  ;;  %v2870_v57 = vmax.f32 %v2698_v47, 0.0  ;;  %v2871_v8 = vmax.f32 %v2727_v4, 0.0  ;;  %v7723_v7 = vld [vmem:[#allocation44_spill] sm:$0xff] }
 0x3d8   : > { %v2761_v41 = vadd.f32 %v6535_v42, %v6602_v30  ;;  %v2897_v2 = vmax.f32 %v2793_v25, 0.0  ;;  %v2947_v59 = vpack.c.bf16 %v2907_v37, %v2899_v51  ;;  %v2759_v27 = vadd.f32 %v6520_v54, %v6588_v48 }
 0x3d9   : > { %v2924_v55 = vpack.c.bf16 %v2868_v63, %v2860_v24  ;;  %v2925_v20 = vpack.c.bf16 %v2869_v3, %v2861_v21  ;;  %v2926_v31 = vpack.c.bf16 %v2870_v57, %v2862_v29  ;;  %v2927_v34 = vpack.c.bf16 %v2871_v8, %v2863_v1 }
 0x3da   : > { %v2788_v42 = vadd.f32 %v6532_v52, %v6588_v48  ;;  %v2945_v53 = vpack.c.bf16 %v2905_v14, %v2897_v2  ;;  %v2888_v26 = vmax.f32 %v2761_v41, 0.0  ;;  %v2889_v44 = vmax.f32 %v2790_v19, 0.0  ;;  %v7726_v2 = vld [vmem:[#allocation77_spill] sm:$0xff] }
 0x3db   : > { %3039 = vmatpush.bf16.msra.mxu1 %v2924_v55  ;;  %3068 = vmatpush.bf16.msrb.mxu2 %v2925_v20  ;;  %v2756_v28 = vadd.f32 %v6495_v22, %v6643_v6  ;;  %v2785_v54 = vadd.f32 %v6505_v12, %v6643_v6  ;;  %v2814_v52 = vadd.f32 %v6497_v46, %v6643_v6  ;;  %v2880_v32 = vmax.f32 %v2759_v27, 0.0  ;;  %v7728_v27 = vld [vmem:[#allocation35_spill] sm:$0xff] }
 0x3dc   : > { %3097 = vmatpush.bf16.msrb.mxu3 %v2926_v31  ;;  %3126 = vmatpush.bf16.msrb.mxu0 %v2927_v34  ;;  %v2843_v36 = vadd.f32 %v6500_v33, %v6643_v6  ;;  %v2881_v17 = vmax.f32 %v2788_v42, 0.0  ;;  %v2783_v22 = vadd.f32 %v6488_v45, %v6618_v43  ;;  %v2882_v12 = vmax.f32 %v2817_v40, 0.0  ;;  %v7729_v42 = vld [vmem:[#allocation36_spill] sm:$0xff] }
 0x3dd   : > { %v2883_v60 = vmax.f32 %v2846_v38, 0.0  ;;  %v2812_v46 = vadd.f32 %v7722_v0, %v6618_v43  ;;  %v2841_v33 = vadd.f32 %v7723_v7, %v6618_v43  ;;  %v2936_v47 = vpack.c.bf16 %v2888_v26, %v2880_v32  ;;  %v7731_v38 = vld [vmem:[#allocation30_spill] sm:$0xff]  ;;  %v7732_v26 = vld [vmem:[#allocation31_spill] sm:$0xff] }
 0x3de   : > { %v2937_v4 = vpack.c.bf16 %v2889_v44, %v2881_v17  ;;  %v2872_v24 = vmax.f32 %v2756_v28, 0.0  ;;  %v2873_v21 = vmax.f32 %v2785_v54, 0.0  ;;  %v2938_v29 = vpack.c.bf16 %v2890_v23, %v2882_v12  ;;  %v7733_v44 = vld [vmem:[#allocation32_spill] sm:$0xff]  ;;  %v7734_v54 = vld [vmem:[#allocation75_spill] sm:$0xff]  ;;  %v7735_v32 = vld [vmem:[#allocation26_spill] sm:$0xff] }
 0x3df   : > { %3152 = vmatpush.bf16.msrb.mxu1 %v2952_v16  ;;  %3181 = vmatpush.bf16.msra.mxu2 %v2953_v18  ;;  %v2939_v1 = vpack.c.bf16 %v2891_v62, %v2883_v60  ;;  %v2874_v50 = vmax.f32 %v2814_v52, 0.0  ;;  %v2875_v63 = vmax.f32 %v2843_v36, 0.0  ;;  %v2864_v45 = vmax.f32 %v2754_v58, 0.0  ;;  %v7725_v18 = vld [vmem:[#allocation45_spill] sm:$0xff]  ;;  %v7736_v17 = vld [vmem:[#allocation47_spill] sm:$0xff]  ;;  %v7738_v12 = vld [vmem:[#allocation28_spill] sm:$0xff] }
 0x3e0   : > { %3210 = vmatpush.bf16.msra.mxu3 %v2954_v13  ;;  %3239 = vmatpush.bf16.msra.mxu0 %v2955_v49  ;;  %v2865_v3 = vmax.f32 %v2783_v22, 0.0  ;;  %v2866_v57 = vmax.f32 %v2812_v46, 0.0  ;;  %v2867_v8 = vmax.f32 %v2841_v33, 0.0  ;;  %v6689_v34 = vstv %s2396_s7  ;;  %v7737_v22 = vld [vmem:[#allocation27_spill] sm:$0xff]  ;;  %v7739_v60 = vld [vmem:[#allocation74_spill] sm:$0xff]  ;;  %v7740_v46 = vld [vmem:[#allocation48_spill] sm:$0xff] }
 0x3e1   : > { %v2928_v25 = vpack.c.bf16 %v2872_v24, %v2864_v45  ;;  %v2390_v23 = vmax.f32 %v7734_v54, 0.0  ;;  %v2388_v0 = vmax.f32 %v7739_v60, 0.0  ;;  %v7743_v24 = vld [vmem:[#allocation24_spill] sm:$0xff]  ;;  %v7758_v54 = vld [vmem:[#allocation63_spill] sm:$0xff]  ;;  %s4187_s7 = sshll.u32 %s4184_s9, 4  ;;  %s4188_s7 = int_to_ptr.hbm [resolvable:$true] %s4187_s7 }
 0x3e2   : > { %v2929_v16 = vpack.c.bf16 %v2873_v21, %v2865_v3  ;;  %v2930_v61 = vpack.c.bf16 %v2874_v50, %v2866_v57  ;;  %v2931_v37 = vpack.c.bf16 %v2875_v63, %v2867_v8  ;;  %v7744_v21 = vld [vmem:[#allocation73_spill] sm:$0xff]  ;;  %v7745_v50 = vld [vmem:[#allocation66_spill] sm:$0xff]  ;;  %v7746_v45 = vld [vmem:[#allocation72_spill] sm:$0xff]  ;;  %s5431_s11 = sshra.s32 %s4188_s7, 4  ;;  %s5432_s11 = int_to_ptr.hbm [resolvable:$true] %s5431_s11 }
 0x3e3   : > { %3153 = vmatpush.bf16.msrb.mxu1 %v2944_v9  ;;  %3182 = vmatpush.bf16.msra.mxu2 %v2945_v53  ;;  %v7724_v9 = vld [vmem:[#allocation12_spill] sm:$0xff]  ;;  %v2384_v63 = vmax.f32 %v7745_v50, 0.0  ;;  %v2382_v3 = vmax.f32 %v7746_v45, 0.0  ;;  %v2959_v60 = vld [vmem:[%s5636_s16 + $0x18] sm:$0xff]  ;;  %s5433_s13 = scalar_lea.hbm %s5432_s11, 1024  ;;  %p5438_p11 = scmp.lt.s32.totalorder %s5432_s11, %s7462_s6 }
 0x3e4   : > { %3211 = vmatpush.bf16.msra.mxu3 %v2946_v11  ;;  %3240 = vmatpush.bf16.msra.mxu0 %v2947_v59  ;;  %v2394_v11 = vmax.f32 %v7726_v2, 0.0  ;;  %v7727_v59 = vld [vmem:[#allocation34_spill] sm:$0xff]  ;;  %v7730_v53 = vld [vmem:[#allocation76_spill] sm:$0xff]  ;;  %v2967_v45 = vld [vmem:[%s5636_s16 + $0x58] sm:$0xff]  ;;  %p5434_p1 = scmp.ne.s32.totalorder %s5432_s11, %s5433_s13  ;;  %p5439_p9 = scmp.lt.s32.totalorder %s5437_s21, %s5433_s13 }
 0x3e5   : > { %v2392_v40 = vmax.f32 %v7730_v53, 0.0  ;;  %v7752_v53 = vld [vmem:[#allocation37_spill] sm:$0xff] }
 0x3e6   : > { %p5435_p4 = pnand %p5434_p1, %p5602_p7  ;;  %p5440_p2 = por %p5439_p9, %p5438_p11 }
 0x3e7   : > { %3154 = vmatpush.bf16.msrb.mxu1 %v2936_v47  ;;  %3183 = vmatpush.bf16.msra.mxu2 %v2937_v4  ;;  %v7741_v47 = vld [vmem:[#allocation22_spill] sm:$0xff]  ;;  %v7742_v4 = vld [vmem:[#allocation23_spill] sm:$0xff] }
 0x3e8   : > { %3212 = vmatpush.bf16.msra.mxu3 %v2938_v29  ;;  %3241 = vmatpush.bf16.msra.mxu0 %v2939_v1  ;;  %v2386_v29 = vmax.f32 %v7744_v21, 0.0  ;;  %v2964_v21 = vld [vmem:[%s5636_s16 + $0x40] sm:$0xff]  ;;  %p5436_p8 = pneg %p5435_p4 }
 0x3ea   : > { %p5441_p10 = pnand %p5440_p2, %p5436_p8 }
 0x3eb   : > { %3155 = vmatpush.bf16.msrb.mxu1 %v2928_v25  ;;  %3184 = vmatpush.bf16.msra.mxu2 %v2929_v16  ;;  %v7747_v25 = vld [vmem:[#allocation71_spill] sm:$0xff] }
 0x3ec   : > { %3213 = vmatpush.bf16.msra.mxu3 %v2930_v61  ;;  %3242 = vmatpush.bf16.msra.mxu0 %v2931_v37  ;;  %v2380_v16 = vmax.f32 %v7747_v25, 0.0 }
 0x3f6   : > { %v2505_v55 = vpop.xlane.xlu1 %2504 }
 0x3f7   : > { %5304 = vrcp.f32 %v2505_v55 }
 0x3fd   : > { %v5305_v31 = vpop.eup %5304 }
 0x3fe   : > { %v2508_v20 = vpop.xlane.xlu0 %2507  ;;  %v2536_v13 = vmul.f32 %v5305_v31, %v6689_v34 }
 0x3ff   : > { %5306 = vrcp.f32 %v2508_v20  ;;  %v7748_v20 = vld [vmem:[#allocation49_spill] sm:$0xff] }
 0x400   : > { %v2544_v51 = vmul.f32 %v7724_v9, %v2536_v13  ;;  %v7749_v13 = vld [vmem:[#allocation51_spill] sm:$0xff] }
 0x405   : > { %v5307_v49 = vpop.eup %5306 }
 0x406   : > { %v2537_v14 = vmul.f32 %v5307_v49, %v6689_v34 }
 0x408   : > { %v2545_v41 = vmul.f32 %v7725_v18, %v2537_v14 }
 0x40a   : > { %v6695_v19 = vpack.c.bf16 %v2545_v41, %v2544_v51 }
 0x40c   : > { %4843 = vmatmul.msk.bf16.vlgmr.msra.gmra.mxu1 %vm2454_vm0, %v6695_v19  ;;  %4847 = vmatmul.msk.bf16.vlgmr.msrb.gmra.mxu2 %vm2454_vm0, %v6695_v19 }
 0x40d   : > { %4851 = vmatmul.msk.bf16.vlgmr.msrb.gmra.mxu3 %vm2454_vm0, %v6695_v19  ;;  %4855 = vmatmul.msk.bf16.vlgmr.msrb.gmra.mxu0 %vm2454_vm0, %v6695_v19  ;;  %v2511_v10 = vpop.xlane.xlu2 %2510 }
 0x40e   : > { %3336 = vmatpush.xpose.msra.mxu1 %v2394_v11  ;;  %5308 = vrcp.f32 %v2511_v10  ;;  %v2514_v15 = vpop.xlane.xlu1 %2513  ;;  %3473 = vmatpush.bf16.msrb.mxu2 %v7727_v59  ;;  %v7750_v10 = vld [vmem:[#allocation52_spill] sm:$0xff]  ;;  %v7751_v59 = vld [vmem:[#allocation53_spill] sm:$0xff] }
 0x40f   : > { %5310 = vrcp.f32 %v2514_v15  ;;  %3502 = vmatpush.bf16.msrb.mxu3 %v7728_v27  ;;  %3531 = vmatpush.bf16.msrb.mxu0 %v7729_v42 }
 0x412   : > { %3337 = vmatpush.xpose.msra.mxu1 %v2392_v40  ;;  %3474 = vmatpush.bf16.msrb.mxu2 %v7731_v38  ;;  %v7753_v40 = vld [vmem:[#allocation67_spill] sm:$0xff]  ;;  %v7754_v38 = vld [vmem:[#allocation68_spill] sm:$0xff] }
 0x413   : > { %3503 = vmatpush.bf16.msrb.mxu3 %v7732_v26  ;;  %3532 = vmatpush.bf16.msrb.mxu0 %v7733_v44  ;;  %v7755_v26 = vld [vmem:[#allocation69_spill] sm:$0xff] }
 0x414   : > { %v5309_v28 = vpop.eup %5308  ;;  %v7756_v44 = vld [vmem:[#allocation33_spill] sm:$0xff] }
 0x415   : > { %v5311_v62 = vpop.eup %5310  ;;  %v2538_v52 = vmul.f32 %v5309_v28, %v6689_v34  ;;  %v7757_v28 = vld [vmem:[#allocation62_spill] sm:$0xff] }
 0x416   : > { %v2539_v36 = vmul.f32 %v5311_v62, %v6689_v34  ;;  %3338 = vmatpush.xpose.msra.mxu1 %v2390_v23  ;;  %3475 = vmatpush.bf16.msrb.mxu2 %v7735_v32  ;;  %v7759_v23 = vld [vmem:[#allocation64_spill] sm:$0xff]  ;;  %v7760_v62 = vld [vmem:[#allocation29_spill] sm:$0xff] }
 0x417   : > { %v2546_v58 = vmul.f32 %v7736_v17, %v2538_v52  ;;  %3504 = vmatpush.bf16.msrb.mxu3 %v7737_v22  ;;  %3533 = vmatpush.bf16.msrb.mxu0 %v7738_v12  ;;  %v7761_v52 = vld [vmem:[#allocation58_spill] sm:$0xff]  ;;  %v7764_v32 = vld [vmem:[#allocation25_spill] sm:$0xff]  ;;  %v7767_v22 = vld [vmem:[#allocation56_spill] sm:$0xff] }
 0x418   : > { %v2547_v7 = vmul.f32 %v7740_v46, %v2539_v36  ;;  %v7763_v36 = vld [vmem:[#allocation60_spill] sm:$0xff]  ;;  %v7765_v17 = vld [vmem:[#allocation54_spill] sm:$0xff] }
 0x419   : > { %v2956_v12 = vld [vmem:[%s5636_s16] sm:$0xff] }
 0x41a   : > { %v6722_v33 = vpack.c.bf16 %v2547_v7, %v2546_v58  ;;  %3339 = vmatpush.xpose.msra.mxu1 %v2388_v0  ;;  %3476 = vmatpush.bf16.msrb.mxu2 %v7741_v47  ;;  %v7766_v58 = vld [vmem:[#allocation55_spill] sm:$0xff]  ;;  %v2957_v47 = vld [vmem:[%s5636_s16 + $0x8] sm:$0xff] }
 0x41b   : > { %3505 = vmatpush.bf16.msrb.mxu3 %v7742_v4  ;;  %3534 = vmatpush.bf16.msrb.mxu0 %v7743_v24  ;;  %v2958_v4 = vld [vmem:[%s5636_s16 + $0x10] sm:$0xff] }
 0x41c   : > { %4844 = vmatmul.msk.bf16.gmra.mxu1 %vm2454_vm0, %v6722_v33  ;;  %4848 = vmatmul.msk.bf16.gmra.mxu2 %vm2454_vm0, %v6722_v33  ;;  %v2517_v1 = vpop.xlane.xlu0 %2516 }
 0x41d   : > { %4852 = vmatmul.msk.bf16.gmra.mxu3 %vm2454_vm0, %v6722_v33  ;;  %4856 = vmatmul.msk.bf16.gmra.mxu0 %vm2454_vm0, %v6722_v33  ;;  %5312 = vrcp.f32 %v2517_v1 }
 0x41e   : > { %3340 = vmatpush.xpose.msra.mxu1 %v2386_v29  ;;  %v7768_v29 = vld [vmem:[#allocation40_spill] sm:$0xff] }
 0x41f   : > { %v2381_v1 = vmax.f32 %v7768_v29, 0.0  ;;  %v2988_v29 = vld [vmem:[%s5636_s16 + $0x100] sm:$0xff] }
 0x422   : > { %3341 = vmatpush.xpose.msra.mxu1 %v2384_v63 }
 0x423   : > { %v5313_v8 = vpop.eup %5312 }
 0x424   : > { %v2520_v57 = vpop.xlane.xlu1 %2519  ;;  %v2540_v61 = vmul.f32 %v5313_v8, %v6689_v34 }
 0x425   : > { %5314 = vrcp.f32 %v2520_v57 }
 0x426   : > { %3342 = vmatpush.xpose.msra.mxu1 %v2382_v3  ;;  %v2548_v31 = vmul.f32 %v7748_v20, %v2540_v61  ;;  %v2966_v20 = vld [vmem:[%s5636_s16 + $0x50] sm:$0xff] }
 0x42a   : > { %3343 = vmatpush.xpose.msra.mxu1 %v2380_v16  ;;  %v6812_v16 = vld [vmem:[%s7460_s4] sm:$0xff] }
 0x42b   : > { %v5315_v37 = vpop.eup %5314 }
 0x42c   : > { %v2541_v55 = vmul.f32 %v5315_v37, %v6689_v34  ;;  %v2523_v14 = vpop.xlane.xlu0 %2522  ;;  %v7769_v37 = vld [vmem:[#allocation70_spill] sm:$0xff] }
 0x42d   : > { %5316 = vrcp.f32 %v2523_v14 }
 0x42e   : > { %v2549_v49 = vmul.f32 %v7749_v13, %v2541_v55  ;;  %v2965_v55 = vld [vmem:[%s5636_s16 + $0x48] sm:$0xff]  ;;  %v2972_v13 = vld [vmem:[%s5636_s16 + $0x80] sm:$0xff] }
 0x430   : > { %v2554_v9 = vpack.c.bf16 %v2549_v49, %v2548_v31  ;;  %v7770_v49 = vld [vmem:[#allocation41_spill] sm:$0xff] }
 0x431   : > { %v2383_v14 = vmax.f32 %v7770_v49, 0.0 }
 0x432   : > { %4845 = vmatmul.msk.bf16.gmra.mxu1 %vm2454_vm0, %v2554_v9  ;;  %4849 = vmatmul.msk.bf16.gmra.mxu2 %vm2454_vm0, %v2554_v9 }
 0x433   : > { %4853 = vmatmul.msk.bf16.gmra.mxu3 %vm2454_vm0, %v2554_v9  ;;  %4857 = vmatmul.msk.bf16.gmra.mxu0 %vm2454_vm0, %v2554_v9  ;;  %v5317_v18 = vpop.eup %5316 }
 0x434   : > { %v2526_v51 = vpop.xlane.xlu1 %2525  ;;  %v2542_v41 = vmul.f32 %v5317_v18, %v6689_v34  ;;  %v2975_v18 = vld [vmem:[%s5636_s16 + $0x98] sm:$0xff] }
 0x435   : > { %5318 = vrcp.f32 %v2526_v51 }
 0x436   : > { %v2550_v15 = vmul.f32 %v7750_v10, %v2542_v41  ;;  %v7771_v41 = vld [vmem:[#allocation65_spill] sm:$0xff] }
 0x43b   : > { %v5319_v2 = vpop.eup %5318 }
 0x43c   : > { %v2543_v11 = vmul.f32 %v5319_v2, %v6689_v34 }
 0x43e   : > { %v2551_v27 = vmul.f32 %v7751_v59, %v2543_v11 }
 0x440   : > { %v2555_v42 = vpack.c.bf16 %v2551_v27, %v2550_v15  ;;  %v7772_v27 = vld [vmem:[#allocation61_spill] sm:$0xff] }
 0x442   : > { %4846 = vmatmul.msk.bf16.gmra.mxu1 %vm2454_vm0, %v2555_v42  ;;  %4850 = vmatmul.msk.bf16.gmra.mxu2 %vm2454_vm0, %v2555_v42 }
 0x443   : > { %4854 = vmatmul.msk.bf16.gmra.mxu3 %vm2454_vm0, %v2555_v42  ;;  %4858 = vmatmul.msk.bf16.gmra.mxu0 %vm2454_vm0, %v2555_v42 }
 0x452   : > { %4859 = vmatmul.msk.bf16.vlgmr.msrb.gmra.mxu1 %vm2454_vm0, %v6695_v19  ;;  %4863 = vmatmul.msk.bf16.vlgmr.msra.gmra.mxu2 %vm2454_vm0, %v6695_v19 }
 0x453   : > { %4867 = vmatmul.msk.bf16.vlgmr.msra.gmra.mxu3 %vm2454_vm0, %v6695_v19  ;;  %4871 = vmatmul.msk.bf16.vlgmr.msra.gmra.mxu0 %vm2454_vm0, %v6695_v19  ;;  %v7762_v19 = vld [vmem:[#allocation59_spill] sm:$0xff] }
 0x454   : > { %3560 = vmatpush.bf16.msrb.mxu1 %v7752_v53  ;;  %3589 = vmatpush.bf16.msra.mxu2 %v7753_v40  ;;  %v2974_v53 = vld [vmem:[%s5636_s16 + $0x90] sm:$0xff] }
 0x455   : > { %3618 = vmatpush.bf16.msra.mxu3 %v7754_v38  ;;  %3647 = vmatpush.bf16.msra.mxu0 %v7755_v26  ;;  %v2980_v38 = vld [vmem:[%s5636_s16 + $0xc0] sm:$0xff]  ;;  %v7773_v26 = vld [vmem:[#allocation50_spill] sm:$0xff] }
 0x458   : > { %3561 = vmatpush.bf16.msrb.mxu1 %v7756_v44  ;;  %3590 = vmatpush.bf16.msra.mxu2 %v7757_v28  ;;  %v2385_v44 = vmax.f32 %v7773_v26, 0.0  ;;  %v2997_v26 = vld [vmem:[%s5636_s16 + $0x148] sm:$0xff] }
 0x459   : > { %3619 = vmatpush.bf16.msra.mxu3 %v7758_v54  ;;  %3648 = vmatpush.bf16.msra.mxu0 %v7759_v23  ;;  %v2983_v23 = vld [vmem:[%s5636_s16 + $0xd8] sm:$0xff] }
 0x45c   : > { %3562 = vmatpush.bf16.msrb.mxu1 %v7760_v62  ;;  %3591 = vmatpush.bf16.msra.mxu2 %v7761_v52  ;;  %v7774_v62 = vld [vmem:[#allocation57_spill] sm:$0xff] }
 0x45d   : > { %3620 = vmatpush.bf16.msra.mxu3 %v7762_v19  ;;  %3649 = vmatpush.bf16.msra.mxu0 %v7763_v36 }
 0x460   : > { %3563 = vmatpush.bf16.msrb.mxu1 %v7764_v32  ;;  %3592 = vmatpush.bf16.msra.mxu2 %v7765_v17  ;;  %v6845_v17 = vld [vmem:[%s7460_s4 + $0x8] sm:$0xff] }
 0x461   : > { %3621 = vmatpush.bf16.msra.mxu3 %v7766_v58  ;;  %3650 = vmatpush.bf16.msra.mxu0 %v7767_v22  ;;  %v2981_v22 = vld [vmem:[%s5636_s16 + $0xc8] sm:$0xff] }
 0x462   : > { %4860 = vmatmul.msk.bf16.gmra.mxu1 %vm2454_vm0, %v6722_v33  ;;  %4864 = vmatmul.msk.bf16.gmra.mxu2 %vm2454_vm0, %v6722_v33 }
 0x463   : > { %4868 = vmatmul.msk.bf16.gmra.mxu3 %vm2454_vm0, %v6722_v33  ;;  %4872 = vmatmul.msk.bf16.gmra.mxu0 %vm2454_vm0, %v6722_v33 }
 0x472   : > { %4861 = vmatmul.msk.bf16.gmra.mxu1 %vm2454_vm0, %v2554_v9  ;;  %4865 = vmatmul.msk.bf16.gmra.mxu2 %vm2454_vm0, %v2554_v9 }
 0x473   : > { %4869 = vmatmul.msk.bf16.gmra.mxu3 %vm2454_vm0, %v2554_v9  ;;  %4873 = vmatmul.msk.bf16.gmra.mxu0 %vm2454_vm0, %v2554_v9 }
 0x482   : > { %4862 = vmatmul.msk.bf16.gmra.mxu1 %vm2454_vm0, %v2555_v42  ;;  %4866 = vmatmul.msk.bf16.gmra.mxu2 %vm2454_vm0, %v2555_v42 }
 0x483   : > { %4870 = vmatmul.msk.bf16.gmra.mxu3 %vm2454_vm0, %v2555_v42  ;;  %4874 = vmatmul.msk.bf16.gmra.mxu0 %vm2454_vm0, %v2555_v42  ;;  %v2973_v42 = vld [vmem:[%s5636_s16 + $0x88] sm:$0xff] }
 0x489   : > { %v3041_v0 = vpop.f32.mrf.mxu1 }
 0x48a   : > { %v3042_v46 = vadd.f32 %v3041_v0, %v2956_v12  ;;  %v3128_v7 = vpop.f32.mrf.mxu0  ;;  %v2982_v12 = vld [vmem:[%s5636_s16 + $0xd0] sm:$0xff]  ;;  %v7775_v0 = vld [vmem:[#allocation21_spill] sm:$0xff] }
 0x48b   : > { %v3129_v33 = vadd.f32 %v3128_v7, %v2959_v60 }
 0x48c   : > { %3264 = vst [vmem:[%s6799_s10] sm:$0xff] %v3042_v46  ;;  %v2387_v46 = vmax.f32 %v7775_v0, 0.0 }
 0x48d   : > { %3267 = vst [vmem:[%s6799_s10 + $0x18] sm:$0xff] %v3129_v33 }
 0x48f   : > { %v3070_v24 = vpop.f32.mrf.mxu2 }
 0x490   : > { %v3071_v50 = vadd.f32 %v3070_v24, %v2957_v47  ;;  %v3099_v63 = vpop.f32.mrf.mxu3  ;;  %v7777_v24 = vld [vmem:[#allocation20_spill] sm:$0xff] }
 0x491   : > { %v3100_v3 = vadd.f32 %v3099_v63, %v2958_v4  ;;  %v3043_v57 = vpop.f32.mrf.mxu1  ;;  %v7776_v4 = vld [vmem:[#allocation38_spill] sm:$0xff]  ;;  %v2991_v63 = vld [vmem:[%s5636_s16 + $0x118] sm:$0xff] }
 0x492   : > { %3265 = vst [vmem:[%s6799_s10 + $0x8] sm:$0xff] %v3071_v50  ;;  %v3044_v8 = vadd.f32 %v3043_v57, %v2964_v21  ;;  %v3130_v25 = vpop.f32.mrf.mxu0  ;;  %3344 = vmatmul.f32.vlgmr.msra.gmra.mxu1 %v2381_v1  ;;  %4875 = vmatmul.msk.bf16.vlgmr.msrb.gmra.mxu2 %vm2454_vm0, %v6812_v16  ;;  %v2210_v21 = vadd.f32 %v7777_v24, %v7776_v4  ;;  %v7778_v1 = vld [vmem:[#allocation19_spill] sm:$0xff]  ;;  %v3005_v4 = vld [vmem:[%s5636_s16 + $0x188] sm:$0xff] }
 0x493   : > { %3266 = vst [vmem:[%s6799_s10 + $0x10] sm:$0xff] %v3100_v3  ;;  %v3131_v61 = vadd.f32 %v3130_v25, %v2967_v45  ;;  %4879 = vmatmul.msk.bf16.vlgmr.msrb.gmra.mxu3 %vm2454_vm0, %v6812_v16  ;;  %4883 = vmatmul.msk.bf16.vlgmr.msrb.gmra.mxu0 %vm2454_vm0, %v6812_v16  ;;  %v7779_v3 = vld [vmem:[#allocation46_spill] sm:$0xff]  ;;  %v7787_v24 = vld [vmem:[#allocation15_spill] sm:$0xff] }
 0x494   : > { %3272 = vst [vmem:[%s6799_s10 + $0x40] sm:$0xff] %v3044_v8  ;;  %3676 = vmatpush.bf16.msra.mxu1 %v7769_v37  ;;  %v2259_v50 = vadd.f32 %v7778_v1, %v2210_v21  ;;  %v2389_v57 = vmax.f32 %v7779_v3, 0.0  ;;  %v7780_v8 = vld [vmem:[#allocation18_spill] sm:$0xff]  ;;  %v3015_v3 = vld [vmem:[%s5636_s16 + $0x1d8] sm:$0xff] }
 0x495   : > { %3275 = vst [vmem:[%s6799_s10 + $0x58] sm:$0xff] %v3131_v61 }
 0x496   : > { %v2308_v25 = vadd.f32 %v7780_v8, %v2259_v50  ;;  %v3012_v50 = vld [vmem:[%s5636_s16 + $0x1c0] sm:$0xff] }
 0x497   : > { %v3072_v31 = vpop.f32.mrf.mxu2 }
 0x498   : > { %v3073_v9 = vadd.f32 %v3072_v31, %v2965_v55  ;;  %v3101_v51 = vpop.f32.mrf.mxu3  ;;  %3677 = vmatpush.bf16.msra.mxu1 %v7771_v41  ;;  %v2989_v31 = vld [vmem:[%s5636_s16 + $0x108] sm:$0xff] }
 0x499   : > { %v3102_v2 = vadd.f32 %v3101_v51, %v2966_v20  ;;  %v3046_v11 = vpop.f32.mrf.mxu1  ;;  %v6872_v20 = vld [vmem:[%s7460_s4 + $0x10] sm:$0xff]  ;;  %v2996_v51 = vld [vmem:[%s5636_s16 + $0x140] sm:$0xff] }
 0x49a   : > { %3273 = vst [vmem:[%s6799_s10 + $0x48] sm:$0xff] %v3073_v9  ;;  %v3047_v10 = vadd.f32 %v3046_v11, %v2972_v13  ;;  %v3133_v15 = vpop.f32.mrf.mxu0  ;;  %3347 = vmatmul.f32.gmra.mxu1 %v2383_v14  ;;  %v7781_v13 = vld [vmem:[#allocation17_spill] sm:$0xff]  ;;  %v2990_v14 = vld [vmem:[%s5636_s16 + $0x110] sm:$0xff] }
 0x49b   : > { %3274 = vst [vmem:[%s6799_s10 + $0x50] sm:$0xff] %v3102_v2  ;;  %v3134_v59 = vadd.f32 %v3133_v15, %v2975_v18  ;;  %v2357_v49 = vadd.f32 %v7781_v13, %v2308_v25  ;;  %v2999_v2 = vld [vmem:[%s5636_s16 + $0x158] sm:$0xff]  ;;  %v3014_v13 = vld [vmem:[%s5636_s16 + $0x1d0] sm:$0xff] }
 0x49c   : > { %3280 = vst [vmem:[%s6799_s10 + $0x80] sm:$0xff] %v3047_v10  ;;  %3678 = vmatpush.bf16.msra.mxu1 %v7772_v27 }
 0x49d   : > { %3283 = vst [vmem:[%s6799_s10 + $0x98] sm:$0xff] %v3134_v59  ;;  %v2391_v15 = vmax.f32 %v2357_v49, 0.0 }
 0x49f   : > { %v3075_v40 = vpop.f32.mrf.mxu2 }
 0x4a0   : > { %v3076_v28 = vadd.f32 %v3075_v40, %v2973_v42  ;;  %v3104_v54 = vpop.f32.mrf.mxu3  ;;  %3679 = vmatpush.bf16.msra.mxu1 %v7774_v62  ;;  %v7783_v40 = vld [vmem:[#allocation42_spill] sm:$0xff] }
 0x4a1   : > { %v3105_v52 = vadd.f32 %v3104_v54, %v2974_v53  ;;  %v3048_v19 = vpop.f32.mrf.mxu1  ;;  %v7782_v53 = vld [vmem:[#allocation39_spill] sm:$0xff]  ;;  %v3004_v54 = vld [vmem:[%s5636_s16 + $0x180] sm:$0xff] }
 0x4a2   : > { %3281 = vst [vmem:[%s6799_s10 + $0x88] sm:$0xff] %v3076_v28  ;;  %v3049_v36 = vadd.f32 %v3048_v19, %v2980_v38  ;;  %v3135_v32 = vpop.f32.mrf.mxu0  ;;  %3350 = vmatmul.f32.gmra.mxu1 %v2385_v44  ;;  %4876 = vmatmul.msk.bf16.gmra.mxu2 %vm2454_vm0, %v6845_v17  ;;  %v2215_v38 = vadd.f32 %v7783_v40, %v7782_v53  ;;  %v2998_v44 = vld [vmem:[%s5636_s16 + $0x150] sm:$0xff]  ;;  %v2968_v53 = vld [vmem:[%s5636_s16 + $0x60] sm:$0xff] }
 0x4a3   : > { %3282 = vst [vmem:[%s6799_s10 + $0x90] sm:$0xff] %v3105_v52  ;;  %v3136_v58 = vadd.f32 %v3135_v32, %v2983_v23  ;;  %4880 = vmatmul.msk.bf16.gmra.mxu3 %vm2454_vm0, %v6845_v17  ;;  %4884 = vmatmul.msk.bf16.gmra.mxu0 %vm2454_vm0, %v6845_v17  ;;  %v7784_v23 = vld [vmem:[#allocation13_spill] sm:$0xff] }
 0x4a4   : > { %3288 = vst [vmem:[%s6799_s10 + $0xc0] sm:$0xff] %v3049_v36  ;;  %v2264_v62 = vadd.f32 %v7784_v23, %v2215_v38  ;;  %v3007_v36 = vld [vmem:[%s5636_s16 + $0x198] sm:$0xff] }
 0x4a5   : > { %3291 = vst [vmem:[%s6799_s10 + $0xd8] sm:$0xff] %v3136_v58 }
 0x4a7   : > { %v3077_v60 = vpop.f32.mrf.mxu2 }
 0x4a8   : > { %v3078_v7 = vadd.f32 %v3077_v60, %v2981_v22  ;;  %v3106_v33 = vpop.f32.mrf.mxu3  ;;  %v7785_v22 = vld [vmem:[#allocation16_spill] sm:$0xff]  ;;  %v7786_v60 = vld [vmem:[#allocation14_spill] sm:$0xff] }
 0x4a9   : > { %v3107_v47 = vadd.f32 %v3106_v33, %v2982_v12  ;;  %v2393_v12 = vmax.f32 %v7785_v22, 0.0  ;;  %v2313_v0 = vadd.f32 %v7786_v60, %v2264_v62 }
 0x4aa   : > { %3289 = vst [vmem:[%s6799_s10 + $0xc8] sm:$0xff] %v3078_v7  ;;  %3353 = vmatmul.f32.gmra.mxu1 %v2387_v46 }
 0x4ab   : > { %3290 = vst [vmem:[%s6799_s10 + $0xd0] sm:$0xff] %v3107_v47  ;;  %v6905_v47 = vld [vmem:[%s7460_s4 + $0x18] sm:$0xff]  ;;  %v2362_v21 = vadd.f32 %v7787_v24, %v2313_v0  ;;  %v2978_v24 = vld [vmem:[%s5636_s16 + $0xb0] sm:$0xff] }
 0x4ad   : > { %v2395_v25 = vmax.f32 %v2362_v21, 0.0 }
 0x4af   : > { %v3051_v45 = vpop.f32.mrf.mxu1 }
 0x4b0   : > { %v3052_v61 = vadd.f32 %v3051_v45, %v2988_v29  ;;  %v3138_v37 = vpop.f32.mrf.mxu0  ;;  %v3006_v29 = vld [vmem:[%s5636_s16 + $0x190] sm:$0xff] }
 0x4b1   : > { %v3139_v55 = vadd.f32 %v3138_v37, %v2991_v63 }
 0x4b2   : > { %3296 = vst [vmem:[%s6799_s10 + $0x100] sm:$0xff] %v3052_v61  ;;  %3356 = vmatmul.f32.gmra.mxu1 %v2389_v57  ;;  %4877 = vmatmul.msk.bf16.gmra.mxu2 %vm2454_vm0, %v6872_v20 }
 0x4b3   : > { %3299 = vst [vmem:[%s6799_s10 + $0x118] sm:$0xff] %v3139_v55  ;;  %4881 = vmatmul.msk.bf16.gmra.mxu3 %vm2454_vm0, %v6872_v20  ;;  %4885 = vmatmul.msk.bf16.gmra.mxu0 %vm2454_vm0, %v6872_v20 }
 0x4b5   : > { %v3080_v9 = vpop.f32.mrf.mxu2 }
 0x4b6   : > { %v3081_v18 = vadd.f32 %v3080_v9, %v2989_v31  ;;  %v3109_v41 = vpop.f32.mrf.mxu3  ;;  %v3013_v31 = vld [vmem:[%s5636_s16 + $0x1c8] sm:$0xff] }
 0x4b7   : > { %v3110_v11 = vadd.f32 %v3109_v41, %v2990_v14  ;;  %v3053_v10 = vpop.f32.mrf.mxu1  ;;  %v2960_v14 = vld [vmem:[%s5636_s16 + $0x20] sm:$0xff] }
 0x4b8   : > { %3297 = vst [vmem:[%s6799_s10 + $0x108] sm:$0xff] %v3081_v18  ;;  %v3054_v59 = vadd.f32 %v3053_v10, %v2996_v51  ;;  %v3140_v27 = vpop.f32.mrf.mxu0  ;;  %v2963_v18 = vld [vmem:[%s5636_s16 + $0x38] sm:$0xff] }
 0x4b9   : > { %3298 = vst [vmem:[%s6799_s10 + $0x110] sm:$0xff] %v3110_v11  ;;  %v3141_v42 = vadd.f32 %v3140_v27, %v2999_v2  ;;  %v2962_v27 = vld [vmem:[%s5636_s16 + $0x30] sm:$0xff] }
 0x4ba   : > { %3304 = vst [vmem:[%s6799_s10 + $0x140] sm:$0xff] %v3054_v59  ;;  %3359 = vmatmul.f32.gmra.mxu1 %v2391_v15  ;;  %v2961_v59 = vld [vmem:[%s5636_s16 + $0x28] sm:$0xff] }
 0x4bb   : > { %3307 = vst [vmem:[%s6799_s10 + $0x158] sm:$0xff] %v3141_v42 }
 0x4bd   : > { %v3082_v28 = vpop.f32.mrf.mxu2 }
 0x4be   : > { %v3083_v52 = vadd.f32 %v3082_v28, %v2997_v26  ;;  %v3111_v19 = vpop.f32.mrf.mxu3  ;;  %v2971_v26 = vld [vmem:[%s5636_s16 + $0x78] sm:$0xff] }
 0x4bf   : > { %v3112_v32 = vadd.f32 %v3111_v19, %v2998_v44  ;;  %v3056_v58 = vpop.f32.mrf.mxu1  ;;  %v2970_v19 = vld [vmem:[%s5636_s16 + $0x70] sm:$0xff] }
 0x4c0   : > { %3305 = vst [vmem:[%s6799_s10 + $0x148] sm:$0xff] %v3083_v52  ;;  %v3057_v46 = vadd.f32 %v3056_v58, %v3004_v54  ;;  %v3143_v7 = vpop.f32.mrf.mxu0  ;;  %v2969_v52 = vld [vmem:[%s5636_s16 + $0x68] sm:$0xff] }
 0x4c1   : > { %3306 = vst [vmem:[%s6799_s10 + $0x150] sm:$0xff] %v3112_v32  ;;  %v3144_v33 = vadd.f32 %v3143_v7, %v3007_v36  ;;  %v2976_v32 = vld [vmem:[%s5636_s16 + $0xa0] sm:$0xff] }
 0x4c2   : > { %3312 = vst [vmem:[%s6799_s10 + $0x180] sm:$0xff] %v3057_v46  ;;  %3362 = vmatmul.f32.gmra.mxu1 %v2393_v12  ;;  %4878 = vmatmul.msk.bf16.gmra.mxu2 %vm2454_vm0, %v6905_v47  ;;  %v2979_v12 = vld [vmem:[%s5636_s16 + $0xb8] sm:$0xff] }
 0x4c3   : > { %3315 = vst [vmem:[%s6799_s10 + $0x198] sm:$0xff] %v3144_v33  ;;  %4882 = vmatmul.msk.bf16.gmra.mxu3 %vm2454_vm0, %v6905_v47  ;;  %4886 = vmatmul.msk.bf16.gmra.mxu0 %vm2454_vm0, %v6905_v47 }
 0x4c5   : > { %v3085_v1 = vpop.f32.mrf.mxu2 }
 0x4c6   : > { %v3086_v63 = vadd.f32 %v3085_v1, %v3005_v4  ;;  %v3114_v45 = vpop.f32.mrf.mxu3  ;;  %v2977_v4 = vld [vmem:[%s5636_s16 + $0xa8] sm:$0xff] }
 0x4c7   : > { %v3115_v57 = vadd.f32 %v3114_v45, %v3006_v29  ;;  %v3058_v8 = vpop.f32.mrf.mxu1  ;;  %v2984_v29 = vld [vmem:[%s5636_s16 + $0xe0] sm:$0xff] }
 0x4c8   : > { %3313 = vst [vmem:[%s6799_s10 + $0x188] sm:$0xff] %v3086_v63  ;;  %v3059_v61 = vadd.f32 %v3058_v8, %v3012_v50  ;;  %v3145_v37 = vpop.f32.mrf.mxu0  ;;  %v2987_v63 = vld [vmem:[%s5636_s16 + $0xf8] sm:$0xff] }
 0x4c9   : > { %3314 = vst [vmem:[%s6799_s10 + $0x190] sm:$0xff] %v3115_v57  ;;  %v3146_v55 = vadd.f32 %v3145_v37, %v3015_v3  ;;  %v2986_v37 = vld [vmem:[%s5636_s16 + $0xf0] sm:$0xff] }
 0x4ca   : > { %3320 = vst [vmem:[%s6799_s10 + $0x1c0] sm:$0xff] %v3059_v61  ;;  %3365 = vmatmul.f32.gmra.mxu1 %v2395_v25  ;;  %v2985_v61 = vld [vmem:[%s5636_s16 + $0xe8] sm:$0xff] }
 0x4cb   : > { %3323 = vst [vmem:[%s6799_s10 + $0x1d8] sm:$0xff] %v3146_v55 }
 0x4cd   : > { %v3087_v49 = vpop.f32.mrf.mxu2 }
 0x4ce   : > { %v3088_v9 = vadd.f32 %v3087_v49, %v3013_v31  ;;  %v3116_v51 = vpop.f32.mrf.mxu3  ;;  %v2992_v31 = vld [vmem:[%s5636_s16 + $0x120] sm:$0xff] }
 0x4cf   : > { %v3117_v41 = vadd.f32 %v3116_v51, %v3014_v13  ;;  %v3157_v2 = vpop.f32.mrf.mxu1 }
 0x4d0   : > { %3321 = vst [vmem:[%s6799_s10 + $0x1c8] sm:$0xff] %v3088_v9  ;;  %v3158_v11 = vadd.f32 %v3157_v2, %v2960_v14  ;;  %v3244_v10 = vpop.f32.mrf.mxu0  ;;  %v2995_v14 = vld [vmem:[%s5636_s16 + $0x138] sm:$0xff] }
 0x4d1   : > { %3322 = vst [vmem:[%s6799_s10 + $0x1d0] sm:$0xff] %v3117_v41  ;;  %v3245_v15 = vadd.f32 %v3244_v10, %v2963_v18  ;;  %v2994_v10 = vld [vmem:[%s5636_s16 + $0x130] sm:$0xff] }
 0x4d2   : > { %3268 = vst [vmem:[%s6799_s10 + $0x20] sm:$0xff] %v3158_v11  ;;  %4887 = vmatmul.msk.bf16.vlgmr.msrb.gmra.mxu1 %vm2454_vm0, %v6812_v16  ;;  %4891 = vmatmul.msk.bf16.vlgmr.msra.gmra.mxu2 %vm2454_vm0, %v6812_v16  ;;  %v2993_v11 = vld [vmem:[%s5636_s16 + $0x128] sm:$0xff] }
 0x4d3   : > { %3271 = vst [vmem:[%s6799_s10 + $0x38] sm:$0xff] %v3245_v15  ;;  %4895 = vmatmul.msk.bf16.vlgmr.msra.gmra.mxu3 %vm2454_vm0, %v6812_v16  ;;  %4899 = vmatmul.msk.bf16.vlgmr.msra.gmra.mxu0 %vm2454_vm0, %v6812_v16 }
 0x4d5   : > { %v3186_v42 = vpop.f32.mrf.mxu2 }
 0x4d6   : > { %v3187_v40 = vadd.f32 %v3186_v42, %v2961_v59  ;;  %v3215_v38 = vpop.f32.mrf.mxu3  ;;  %v3000_v59 = vld [vmem:[%s5636_s16 + $0x160] sm:$0xff] }
 0x4d7   : > { %v3216_v44 = vadd.f32 %v3215_v38, %v2962_v27  ;;  %v3159_v28 = vpop.f32.mrf.mxu1 }
 0x4d8   : > { %3269 = vst [vmem:[%s6799_s10 + $0x28] sm:$0xff] %v3187_v40  ;;  %v3160_v54 = vadd.f32 %v3159_v28, %v2968_v53  ;;  %v3246_v23 = vpop.f32.mrf.mxu0  ;;  %v3003_v53 = vld [vmem:[%s5636_s16 + $0x178] sm:$0xff] }
 0x4d9   : > { %3270 = vst [vmem:[%s6799_s10 + $0x30] sm:$0xff] %v3216_v44  ;;  %v3247_v62 = vadd.f32 %v3246_v23, %v2971_v26  ;;  %v3002_v23 = vld [vmem:[%s5636_s16 + $0x170] sm:$0xff] }
 0x4da   : > { %3276 = vst [vmem:[%s6799_s10 + $0x60] sm:$0xff] %v3160_v54  ;;  %v3001_v54 = vld [vmem:[%s5636_s16 + $0x168] sm:$0xff] }
 0x4db   : > { %3279 = vst [vmem:[%s6799_s10 + $0x78] sm:$0xff] %v3247_v62 }
 0x4dd   : > { %v3188_v36 = vpop.f32.mrf.mxu2 }
 0x4de   : > { %v3189_v58 = vadd.f32 %v3188_v36, %v2969_v52  ;;  %v3217_v22 = vpop.f32.mrf.mxu3  ;;  %v3008_v52 = vld [vmem:[%s5636_s16 + $0x1a0] sm:$0xff] }
 0x4df   : > { %v3218_v60 = vadd.f32 %v3217_v22, %v2970_v19  ;;  %v3162_v0 = vpop.f32.mrf.mxu1 }
 0x4e0   : > { %3277 = vst [vmem:[%s6799_s10 + $0x68] sm:$0xff] %v3189_v58  ;;  %v3163_v46 = vadd.f32 %v3162_v0, %v2976_v32  ;;  %v3249_v7 = vpop.f32.mrf.mxu0  ;;  %v3011_v32 = vld [vmem:[%s5636_s16 + $0x1b8] sm:$0xff] }
 0x4e1   : > { %3278 = vst [vmem:[%s6799_s10 + $0x70] sm:$0xff] %v3218_v60  ;;  %v3250_v33 = vadd.f32 %v3249_v7, %v2979_v12  ;;  %v3010_v7 = vld [vmem:[%s5636_s16 + $0x1b0] sm:$0xff] }
 0x4e2   : > { %3284 = vst [vmem:[%s6799_s10 + $0xa0] sm:$0xff] %v3163_v46  ;;  %4888 = vmatmul.msk.bf16.gmra.mxu1 %vm2454_vm0, %v6845_v17  ;;  %4892 = vmatmul.msk.bf16.gmra.mxu2 %vm2454_vm0, %v6845_v17  ;;  %v3009_v46 = vld [vmem:[%s5636_s16 + $0x1a8] sm:$0xff] }
 0x4e3   : > { %3287 = vst [vmem:[%s6799_s10 + $0xb8] sm:$0xff] %v3250_v33  ;;  %4896 = vmatmul.msk.bf16.gmra.mxu3 %vm2454_vm0, %v6845_v17  ;;  %4900 = vmatmul.msk.bf16.gmra.mxu0 %vm2454_vm0, %v6845_v17 }
 0x4e5   : > { %v3191_v21 = vpop.f32.mrf.mxu2 }
 0x4e6   : > { %v3192_v1 = vadd.f32 %v3191_v21, %v2977_v4  ;;  %v3220_v50 = vpop.f32.mrf.mxu3  ;;  %v3016_v4 = vld [vmem:[%s5636_s16 + $0x1e0] sm:$0xff] }
 0x4e7   : > { %v3221_v45 = vadd.f32 %v3220_v50, %v2978_v24  ;;  %v3164_v3 = vpop.f32.mrf.mxu1 }
 0x4e8   : > { %3285 = vst [vmem:[%s6799_s10 + $0xa8] sm:$0xff] %v3192_v1  ;;  %v3165_v57 = vadd.f32 %v3164_v3, %v2984_v29  ;;  %v3251_v8 = vpop.f32.mrf.mxu0  ;;  %v3019_v29 = vld [vmem:[%s5636_s16 + $0x1f8] sm:$0xff] }
 0x4e9   : > { %3286 = vst [vmem:[%s6799_s10 + $0xb0] sm:$0xff] %v3221_v45  ;;  %v3252_v25 = vadd.f32 %v3251_v8, %v2987_v63  ;;  %v3018_v8 = vld [vmem:[%s5636_s16 + $0x1f0] sm:$0xff] }
 0x4ea   : > { %3292 = vst [vmem:[%s6799_s10 + $0xe0] sm:$0xff] %v3165_v57  ;;  %v3017_v57 = vld [vmem:[%s5636_s16 + $0x1e8] sm:$0xff] }
 0x4eb   : > { %3295 = vst [vmem:[%s6799_s10 + $0xf8] sm:$0xff] %v3252_v25 }
 0x4ed   : > { %v3193_v55 = vpop.f32.mrf.mxu2 }
 0x4ee   : > { %v3194_v13 = vadd.f32 %v3193_v55, %v2985_v61  ;;  %v3222_v49 = vpop.f32.mrf.mxu3 }
 0x4ef   : > { %v3223_v9 = vadd.f32 %v3222_v49, %v2986_v37  ;;  %v3167_v51 = vpop.f32.mrf.mxu1 }
 0x4f0   : > { %3293 = vst [vmem:[%s6799_s10 + $0xe8] sm:$0xff] %v3194_v13  ;;  %v3168_v18 = vadd.f32 %v3167_v51, %v2992_v31  ;;  %v3254_v41 = vpop.f32.mrf.mxu0 }
 0x4f1   : > { %3294 = vst [vmem:[%s6799_s10 + $0xf0] sm:$0xff] %v3223_v9  ;;  %v3255_v2 = vadd.f32 %v3254_v41, %v2995_v14 }
 0x4f2   : > { %3300 = vst [vmem:[%s6799_s10 + $0x120] sm:$0xff] %v3168_v18  ;;  %4889 = vmatmul.msk.bf16.gmra.mxu1 %vm2454_vm0, %v6872_v20  ;;  %4893 = vmatmul.msk.bf16.gmra.mxu2 %vm2454_vm0, %v6872_v20 }
 0x4f3   : > { %3303 = vst [vmem:[%s6799_s10 + $0x138] sm:$0xff] %v3255_v2  ;;  %4897 = vmatmul.msk.bf16.gmra.mxu3 %vm2454_vm0, %v6872_v20  ;;  %4901 = vmatmul.msk.bf16.gmra.mxu0 %vm2454_vm0, %v6872_v20 }
 0x4f5   : > { %v3196_v15 = vpop.f32.mrf.mxu2 }
 0x4f6   : > { %v3197_v27 = vadd.f32 %v3196_v15, %v2993_v11  ;;  %v3225_v42 = vpop.f32.mrf.mxu3 }
 0x4f7   : > { %v3226_v40 = vadd.f32 %v3225_v42, %v2994_v10  ;;  %v3169_v38 = vpop.f32.mrf.mxu1 }
 0x4f8   : > { %3301 = vst [vmem:[%s6799_s10 + $0x128] sm:$0xff] %v3197_v27  ;;  %v3170_v26 = vadd.f32 %v3169_v38, %v3000_v59  ;;  %v3256_v44 = vpop.f32.mrf.mxu0 }
 0x4f9   : > { %3302 = vst [vmem:[%s6799_s10 + $0x130] sm:$0xff] %v3226_v40  ;;  %v3257_v28 = vadd.f32 %v3256_v44, %v3003_v53 }
 0x4fa   : > { %3308 = vst [vmem:[%s6799_s10 + $0x160] sm:$0xff] %v3170_v26 }
 0x4fb   : > { %3311 = vst [vmem:[%s6799_s10 + $0x178] sm:$0xff] %v3257_v28 }
 0x4fd   : > { %v3198_v62 = vpop.f32.mrf.mxu2 }
 0x4fe   : > { %v3199_v19 = vadd.f32 %v3198_v62, %v3001_v54  ;;  %v3227_v36 = vpop.f32.mrf.mxu3 }
 0x4ff   : > { %v3228_v58 = vadd.f32 %v3227_v36, %v3002_v23  ;;  %v3172_v22 = vpop.f32.mrf.mxu1 }
 0x500   : > { %3309 = vst [vmem:[%s6799_s10 + $0x168] sm:$0xff] %v3199_v19  ;;  %v3173_v12 = vadd.f32 %v3172_v22, %v3008_v52  ;;  %v3259_v60 = vpop.f32.mrf.mxu0 }
 0x501   : > { %3310 = vst [vmem:[%s6799_s10 + $0x170] sm:$0xff] %v3228_v58  ;;  %v3260_v0 = vadd.f32 %v3259_v60, %v3011_v32 }
 0x502   : > { %3316 = vst [vmem:[%s6799_s10 + $0x1a0] sm:$0xff] %v3173_v12  ;;  %4890 = vmatmul.msk.bf16.gmra.mxu1 %vm2454_vm0, %v6905_v47  ;;  %4894 = vmatmul.msk.bf16.gmra.mxu2 %vm2454_vm0, %v6905_v47 }
 0x503   : > { %3319 = vst [vmem:[%s6799_s10 + $0x1b8] sm:$0xff] %v3260_v0  ;;  %4898 = vmatmul.msk.bf16.gmra.mxu3 %vm2454_vm0, %v6905_v47  ;;  %4902 = vmatmul.msk.bf16.gmra.mxu0 %vm2454_vm0, %v6905_v47 }
 0x505   : > { %v3201_v33 = vpop.f32.mrf.mxu2 }
 0x506   : > { %v3202_v24 = vadd.f32 %v3201_v33, %v3009_v46  ;;  %v3230_v21 = vpop.f32.mrf.mxu3 }
 0x507   : > { %v3231_v1 = vadd.f32 %v3230_v21, %v3010_v7  ;;  %v3174_v50 = vpop.f32.mrf.mxu1 }
 0x508   : > { %3317 = vst [vmem:[%s6799_s10 + $0x1a8] sm:$0xff] %v3202_v24  ;;  %v3175_v63 = vadd.f32 %v3174_v50, %v3016_v4  ;;  %v3261_v45 = vpop.f32.mrf.mxu0 }
 0x509   : > { %3318 = vst [vmem:[%s6799_s10 + $0x1b0] sm:$0xff] %v3231_v1  ;;  %v3262_v3 = vadd.f32 %v3261_v45, %v3019_v29 }
 0x50a   : > { %3324 = vst [vmem:[%s6799_s10 + $0x1e0] sm:$0xff] %v3175_v63 }
 0x50b   : > { %3327 = vst [vmem:[%s6799_s10 + $0x1f8] sm:$0xff] %v3262_v3 }
 0x50d   : > { %v3203_v25 = vpop.f32.mrf.mxu2 }
 0x50e   : > { %v3204_v61 = vadd.f32 %v3203_v25, %v3017_v57  ;;  %v3232_v37 = vpop.f32.mrf.mxu3 }
 0x50f   : > { %v3233_v55 = vadd.f32 %v3232_v37, %v3018_v8  ;;  %v7021_v31 = vpop.f32.mrf.mxu1 }
 0x510   : > { %3325 = vst [vmem:[%s6799_s10 + $0x1e8] sm:$0xff] %v3204_v61  ;;  %v7024_v13 = vpop.f32.mrf.mxu0  ;;  %v3369_v49 = vsel %vm2454_vm0, %v7021_v31, inf }
 0x511   : > { %3326 = vst [vmem:[%s6799_s10 + $0x1f0] sm:$0xff] %v3233_v55  ;;  %3370 = vmin.xlane.f32.xlu0 %v3369_v49 }
 0x512   : > { %4903 = vmatmul.msk.bf16.vlgmr.msra.gmra.mxu1 %vm2454_vm0, %v6812_v16 }
 0x515   : > { %v7031_v14 = vpop.f32.mrf.mxu2 }
 0x516   : > { %v7033_v9 = vpop.f32.mrf.mxu3 }
 0x517   : > { %v7035_v51 = vpop.f32.mrf.mxu1 }
 0x518   : > { %v3538_v18 = vpop.f32.mrf.mxu0  ;;  %v3372_v41 = vsel %vm2454_vm0, %v7035_v51, inf }
 0x519   : > { %3373 = vmin.xlane.f32.xlu1 %v3372_v41  ;;  %v3539_v8 = vadd.f32 %v3538_v18, %v6643_v6 }
 0x51d   : > { %v7039_v2 = vpop.f32.mrf.mxu2 }
 0x51e   : > { %v7041_v11 = vpop.f32.mrf.mxu3 }
 0x51f   : > { %v7043_v10 = vpop.f32.mrf.mxu1 }
 0x520   : > { %v3541_v15 = vpop.f32.mrf.mxu0  ;;  %v3375_v16 = vsel %vm2454_vm0, %v7043_v10, inf }
 0x521   : > { %3376 = vmin.xlane.f32.xlu0 %v3375_v16  ;;  %v3542_v55 = vadd.f32 %v3541_v15, %v6588_v48 }
 0x522   : > { %4904 = vmatmul.msk.bf16.gmra.mxu1 %vm2454_vm0, %v6845_v17 }
 0x525   : > { %v7049_v59 = vpop.f32.mrf.mxu2 }
 0x526   : > { %v7051_v27 = vpop.f32.mrf.mxu3 }
 0x527   : > { %v7053_v42 = vpop.f32.mrf.mxu1 }
 0x528   : > { %v3543_v53 = vpop.f32.mrf.mxu0  ;;  %v3378_v40 = vsel %vm2454_vm0, %v7053_v42, inf }
 0x529   : > { %3379 = vmin.xlane.f32.xlu1 %v3378_v40 }
 0x52d   : > { %v3485_v38 = vpop.f32.mrf.mxu2 }
 0x52e   : > { %v3514_v26 = vpop.f32.mrf.mxu3 }
 0x52f   : > { %v7057_v44 = vpop.f32.mrf.mxu1 }
 0x530   : > { %v3546_v28 = vpop.f32.mrf.mxu0  ;;  %v3381_v54 = vsel %vm2454_vm0, %v7057_v44, inf }
 0x531   : > { %3382 = vmin.xlane.f32.xlu2 %v3381_v54  ;;  %v3547_v21 = vadd.f32 %v3546_v28, %v6516_v39 }
 0x532   : > { %4905 = vmatmul.msk.bf16.gmra.mxu1 %vm2454_vm0, %v6872_v20 }
 0x533   : > { %v3735_v49 = vmax.f32 %v3547_v21, 0.0  ;;  %v3513_v21 = vadd.f32 %v7051_v27, %v6588_v48 }
 0x535   : > { %v3488_v17 = vpop.f32.mrf.mxu2 }
 0x536   : > { %v3517_v23 = vpop.f32.mrf.mxu3  ;;  %v3489_v28 = vadd.f32 %v3488_v17, %v6516_v39 }
 0x537   : > { %v7063_v62 = vpop.f32.mrf.mxu1 }
 0x538   : > { %v3548_v52 = vpop.f32.mrf.mxu0  ;;  %v3384_v19 = vsel %vm2454_vm0, %v7063_v62, inf }
 0x539   : > { %3385 = vmin.xlane.f32.xlu0 %v3384_v19  ;;  %v3549_v4 = vadd.f32 %v3548_v52, %v6550_v5  ;;  %v3518_v19 = vadd.f32 %v3517_v23, %v6516_v39  ;;  %v3733_v23 = vmax.f32 %v3489_v28, 0.0 }
 0x53b   : > { %v3743_v63 = vmax.f32 %v3549_v4, 0.0  ;;  %v3484_v4 = vadd.f32 %v7049_v59, %v6588_v48  ;;  %v3510_v59 = vadd.f32 %v7041_v11, %v6643_v6 }
 0x53d   : > { %v3490_v36 = vpop.f32.mrf.mxu2  ;;  %v3783_v15 = vpack.c.bf16 %v3743_v63, %v3735_v49 }
 0x53e   : > { %v3519_v32 = vpop.f32.mrf.mxu3  ;;  %v3491_v25 = vadd.f32 %v3490_v36, %v6550_v5 }
 0x53f   : > { %v7067_v58 = vpop.f32.mrf.mxu1  ;;  %v3520_v41 = vadd.f32 %v3519_v32, %v6550_v5  ;;  %v3537_v32 = vadd.f32 %v7024_v13, %v6618_v43  ;;  %v3734_v13 = vmax.f32 %v3518_v19, 0.0 }
 0x540   : > { %v3551_v22 = vpop.f32.mrf.mxu0  ;;  %v3387_v12 = vsel %vm2454_vm0, %v7067_v58, inf }
 0x541   : > { %3388 = vmin.xlane.f32.xlu1 %v3387_v12  ;;  %v3552_v0 = vadd.f32 %v3551_v22, %v6507_v56  ;;  %v3486_v12 = vadd.f32 %v3485_v38, %v6602_v30  ;;  %v3742_v17 = vmax.f32 %v3520_v41, 0.0  ;;  %v3703_v63 = vmax.f32 %v3537_v32, 0.0 }
 0x542   : > { %4906 = vmatmul.msk.bf16.gmra.mxu1 %vm2454_vm0, %v6905_v47  ;;  %v3544_v47 = vadd.f32 %v3543_v53, %v6602_v30  ;;  %v3710_v41 = vmax.f32 %v3510_v59, 0.0 }
 0x543   : > { %v3751_v29 = vmax.f32 %v3552_v0, 0.0  ;;  %v3719_v0 = vmax.f32 %v3542_v55, 0.0  ;;  %v3782_v27 = vpack.c.bf16 %v3742_v17, %v3734_v13 }
 0x544   : > { %v3727_v40 = vmax.f32 %v3544_v47, 0.0 }
 0x545   : > { %v3493_v20 = vpop.f32.mrf.mxu2 }
 0x546   : > { %v3522_v60 = vpop.f32.mrf.mxu3  ;;  %v3494_v50 = vadd.f32 %v3493_v20, %v6507_v56  ;;  %v3741_v20 = vmax.f32 %v3491_v25, 0.0 }
 0x547   : > { %v7074_v46 = vpop.f32.mrf.mxu1  ;;  %v3523_v45 = vadd.f32 %v3522_v60, %v6507_v56 }
 0x548   : > { %v3553_v7 = vpop.f32.mrf.mxu0  ;;  %v3390_v33 = vsel %vm2454_vm0, %v7074_v46, inf  ;;  %v3749_v54 = vmax.f32 %v3494_v50, 0.0  ;;  %v3781_v50 = vpack.c.bf16 %v3741_v20, %v3733_v23 }
 0x549   : > { %v3554_v24 = vadd.f32 %v3553_v7, %v6475_v35  ;;  %3391 = vmin.xlane.f32.xlu2 %v3390_v33  ;;  %v3750_v36 = vmax.f32 %v3523_v45, 0.0  ;;  %v3515_v7 = vadd.f32 %v3514_v26, %v6602_v30  ;;  %v3481_v26 = vadd.f32 %v7039_v2, %v6643_v6 }
 0x54a   : > { %v3508_v2 = vadd.f32 %v7033_v9, %v6618_v43 }
 0x54b   : > { %v3759_v1 = vmax.f32 %v3554_v24, 0.0  ;;  %v3711_v24 = vmax.f32 %v3539_v8, 0.0  ;;  %v3726_v45 = vmax.f32 %v3515_v7, 0.0  ;;  %v3717_v8 = vmax.f32 %v3484_v4, 0.0 }
 0x54c   : > { %v3709_v55 = vmax.f32 %v3481_v26, 0.0 }
 0x54d   : > { %v3791_v3 = vpack.c.bf16 %v3759_v1, %v3751_v29  ;;  %v3495_v57 = vpop.f32.mrf.mxu2  ;;  %v3775_v29 = vpack.c.bf16 %v3727_v40, %v3719_v0  ;;  %v3725_v1 = vmax.f32 %v3486_v12, 0.0  ;;  %v3702_v40 = vmax.f32 %v3508_v2, 0.0 }
 0x54e   : > { %v3496_v61 = vadd.f32 %v3495_v57, %v6475_v35  ;;  %v3524_v37 = vpop.f32.mrf.mxu3  ;;  %v3479_v57 = vadd.f32 %v7031_v14, %v6618_v43 }
 0x54f   : > { %v3525_v16 = vadd.f32 %v3524_v37, %v6475_v35  ;;  %3936 = vmatpush.bf16.msrb.mxu0 %v3791_v3  ;;  %v7090_v53 = vpop.f32.mrf.mxu1  ;;  %v3767_v37 = vpack.c.bf16 %v3711_v24, %v3703_v63  ;;  %v3773_v49 = vpack.c.bf16 %v3725_v1, %v3717_v8  ;;  %v3766_v19 = vpack.c.bf16 %v3710_v41, %v3702_v40 }
 0x550   : > { %v3757_v18 = vmax.f32 %v3496_v61, 0.0  ;;  %v7093_v52 = vpop.f32.mrf.mxu0  ;;  %v3718_v61 = vmax.f32 %v3513_v21, 0.0 }
 0x551   : > { %v3758_v22 = vmax.f32 %v3525_v16, 0.0  ;;  %v3701_v16 = vmax.f32 %v3479_v57, 0.0 }
 0x552   : > { %v3789_v60 = vpack.c.bf16 %v3757_v18, %v3749_v54  ;;  %v3774_v11 = vpack.c.bf16 %v3726_v45, %v3718_v61  ;;  %v7139_v45 = vadd.f32 %v7093_v52, %v6618_v43 }
 0x553   : > { %v3790_v33 = vpack.c.bf16 %v3758_v22, %v3750_v36  ;;  %3937 = vmatpush.bf16.msrb.mxu0 %v3783_v15  ;;  %v3765_v54 = vpack.c.bf16 %v3709_v55, %v3701_v16 }
 0x554   : > { %3878 = vmatpush.bf16.msrb.mxu2 %v3789_v60 }
 0x555   : > { %3907 = vmatpush.bf16.msrb.mxu3 %v3790_v33  ;;  %v7104_v38 = vpop.f32.mrf.mxu2 }
 0x556   : > { %v7108_v47 = vpop.f32.mrf.mxu3 }
 0x557   : > { %3938 = vmatpush.bf16.msrb.mxu0 %v3775_v29  ;;  %v3567_v3 = vpop.f32.mrf.mxu1  ;;  %v7130_v29 = vadd.f32 %v7090_v53, %v6618_v43 }
 0x558   : > { %v3654_v25 = vpop.f32.mrf.mxu0  ;;  %3879 = vmatpush.bf16.msrb.mxu2 %v3781_v50  ;;  %v7133_v26 = vadd.f32 %v3567_v3, %v6643_v6 }
 0x559   : > { %3908 = vmatpush.bf16.msrb.mxu3 %v3782_v27  ;;  %v3704_v59 = vmax.f32 %v7130_v29, 0.0  ;;  %v7142_v27 = vadd.f32 %v3654_v25, %v6643_v6 }
 0x55b   : > { %3939 = vmatpush.bf16.msrb.mxu0 %v3767_v37  ;;  %v3712_v37 = vmax.f32 %v7133_v26, 0.0 }
 0x55c   : > { %3880 = vmatpush.bf16.msrb.mxu2 %v3773_v49 }
 0x55d   : > { %3909 = vmatpush.bf16.msrb.mxu3 %v3774_v11  ;;  %v7116_v28 = vpop.f32.mrf.mxu2 }
 0x55e   : > { %v7118_v14 = vpop.f32.mrf.mxu3 }
 0x55f   : > { %v3570_v18 = vpop.f32.mrf.mxu1 }
 0x560   : > { %v3657_v9 = vpop.f32.mrf.mxu0  ;;  %3881 = vmatpush.bf16.msrb.mxu2 %v3765_v54  ;;  %v3571_v41 = vadd.f32 %v3570_v18, %v6588_v48 }
 0x561   : > { %3910 = vmatpush.bf16.msrb.mxu3 %v3766_v19  ;;  %v3658_v40 = vadd.f32 %v3657_v9, %v6588_v48 }
 0x565   : > { %v7120_v36 = vpop.f32.mrf.mxu2 }
 0x566   : > { %v7122_v22 = vpop.f32.mrf.mxu3 }
 0x567   : > { %v3572_v15 = vpop.f32.mrf.mxu1 }
 0x568   : > { %v3659_v32 = vpop.f32.mrf.mxu0  ;;  %v7146_v8 = vadd.f32 %v3572_v15, %v6602_v30 }
 0x569   : > { %v7149_v3 = vadd.f32 %v3659_v32, %v6602_v30 }
 0x56a   : > { %v3728_v32 = vmax.f32 %v7146_v8, 0.0 }
 0x56d   : > { %v7124_v12 = vpop.f32.mrf.mxu2 }
 0x56e   : > { %v7126_v20 = vpop.f32.mrf.mxu3 }
 0x56f   : > { %v3575_v60 = vpop.f32.mrf.mxu1 }
 0x570   : > { %v3662_v0 = vpop.f32.mrf.mxu0  ;;  %v3576_v52 = vadd.f32 %v3575_v60, %v6516_v39  ;;  %v3731_v60 = vmax.f32 %v7149_v3, 0.0 }
 0x571   : > { %v3663_v54 = vadd.f32 %v3662_v0, %v6516_v39 }
 0x575   : > { %v3604_v7 = vpop.f32.mrf.mxu2 }
 0x576   : > { %v3633_v17 = vpop.f32.mrf.mxu3  ;;  %v3605_v8 = vadd.f32 %v3604_v7, %v6516_v39 }
 0x577   : > { %v3577_v33 = vpop.f32.mrf.mxu1 }
 0x578   : > { %v3664_v4 = vpop.f32.mrf.mxu0  ;;  %v3578_v25 = vadd.f32 %v3577_v33, %v6550_v5 }
 0x579   : > { %v3665_v11 = vadd.f32 %v3664_v4, %v6550_v5 }
 0x57d   : > { %v3606_v23 = vpop.f32.mrf.mxu2 }
 0x57e   : > { %v3635_v24 = vpop.f32.mrf.mxu3  ;;  %v3607_v3 = vadd.f32 %v3606_v23, %v6550_v5 }
 0x57f   : > { %v3580_v21 = vpop.f32.mrf.mxu1 }
 0x580   : > { %v3667_v13 = vpop.f32.mrf.mxu0  ;;  %v3581_v57 = vadd.f32 %v3580_v21, %v6507_v56 }
 0x582   : > { %v3752_v19 = vmax.f32 %v3581_v57, 0.0 }
 0x584   : > { %v3371_v1 = vpop.xlane.xlu0 %3370 }
 0x585   : > { %v3393_v50 = vsub.f32 %v3371_v1, %v7021_v31  ;;  %v3609_v63 = vpop.f32.mrf.mxu2  ;;  %v3668_v31 = vadd.f32 %v3667_v13, %v6507_v56  ;;  %v3736_v13 = vmax.f32 %v3576_v52, 0.0  ;;  %v3744_v1 = vmax.f32 %v3578_v25, 0.0 }
 0x586   : > { %v3638_v53 = vpop.f32.mrf.mxu3  ;;  %v3610_v18 = vadd.f32 %v3609_v63, %v6507_v56  ;;  %v3634_v63 = vadd.f32 %v3633_v17, %v6516_v39  ;;  %v3720_v17 = vmax.f32 %v3571_v41, 0.0 }
 0x587   : > { %v3401_v2 = vmul.f32 1.442695, %v3393_v50  ;;  %v3582_v61 = vpop.f32.mrf.mxu1  ;;  %v3755_v33 = vmax.f32 %v3668_v31, 0.0 }
 0x588   : > { %v3583_v55 = vadd.f32 %v3582_v61, %v6475_v35  ;;  %v3669_v49 = vpop.f32.mrf.mxu0  ;;  %v3639_v61 = vadd.f32 %v3638_v53, %v6507_v56 }
 0x589   : > { %5320 = vpow2.f32 %v3401_v2  ;;  %v3670_v16 = vadd.f32 %v3669_v49, %v6475_v35  ;;  %v3747_v2 = vmax.f32 %v3665_v11, 0.0  ;;  %v3636_v49 = vadd.f32 %v3635_v24, %v6550_v5 }
 0x58a   : > { %v3760_v15 = vmax.f32 %v3583_v55, 0.0  ;;  %v3739_v55 = vmax.f32 %v3663_v54, 0.0  ;;  %v3784_v54 = vpack.c.bf16 %v3744_v1, %v3736_v13  ;;  %v3602_v24 = vadd.f32 %v7124_v12, %v6602_v30 }
 0x58b   : > { %v3763_v21 = vmax.f32 %v3670_v16, 0.0  ;;  %v3753_v16 = vmax.f32 %v3610_v18, 0.0  ;;  %v3631_v18 = vadd.f32 %v7126_v20, %v6602_v30  ;;  %v3715_v13 = vmax.f32 %v7142_v27, 0.0 }
 0x58c   : > { %v3792_v4 = vpack.c.bf16 %v3760_v15, %v3752_v19  ;;  %v3374_v50 = vpop.xlane.xlu1 %3373  ;;  %v3787_v19 = vpack.c.bf16 %v3747_v2, %v3739_v55  ;;  %v3754_v15 = vmax.f32 %v3639_v61, 0.0  ;;  %v3600_v1 = vadd.f32 %v7120_v36, %v6588_v48 }
 0x58d   : > { %v3795_v9 = vpack.c.bf16 %v3763_v21, %v3755_v33  ;;  %v3394_v0 = vsub.f32 %v3374_v50, %v7035_v51  ;;  %v3611_v57 = vpop.f32.mrf.mxu2  ;;  %v3745_v21 = vmax.f32 %v3607_v3, 0.0  ;;  %v3723_v50 = vmax.f32 %v3658_v40, 0.0 }
 0x58e   : > { %v3612_v31 = vadd.f32 %v3611_v57, %v6475_v35  ;;  %v3640_v52 = vpop.f32.mrf.mxu3  ;;  %3965 = vmatpush.bf16.msrb.mxu1 %v3792_v4  ;;  %v3737_v2 = vmax.f32 %v3605_v8, 0.0  ;;  %v3776_v61 = vpack.c.bf16 %v3728_v32, %v3720_v17  ;;  %v3629_v12 = vadd.f32 %v7122_v22, %v6588_v48 }
 0x58f   : > { %v7169_v25 = vpop.eup %5320  ;;  %v3403_v53 = vmul.f32 1.442695, %v3394_v0  ;;  %v3641_v11 = vadd.f32 %v3640_v52, %v6475_v35  ;;  %4052 = vmatpush.bf16.msra.mxu0 %v3795_v9  ;;  %v7174_v51 = vpop.f32.mrf.mxu1  ;;  %v3746_v9 = vmax.f32 %v3636_v49, 0.0  ;;  %v3779_v57 = vpack.c.bf16 %v3731_v60, %v3723_v50 }
 0x590   : > { %v3761_v7 = vmax.f32 %v3612_v31, 0.0  ;;  %v3417_v23 = vsel %vm2454_vm0, %v7169_v25, 0.0  ;;  %v3738_v40 = vmax.f32 %v3634_v63, 0.0  ;;  %v3707_v55 = vmax.f32 %v7139_v45, 0.0 }
 0x591   : > { %5322 = vpow2.f32 %v3403_v53  ;;  %v3762_v33 = vmax.f32 %v3641_v11, 0.0  ;;  %3418 = vadd.xlane.f32.xlu0 %v3417_v23  ;;  %v3597_v27 = vadd.f32 %v7116_v28, %v6643_v6  ;;  %v3729_v3 = vmax.f32 %v3602_v24, 0.0 }
 0x592   : > { %v3793_v4 = vpack.c.bf16 %v3761_v7, %v3753_v16  ;;  %3966 = vmatpush.bf16.msrb.mxu1 %v3784_v54  ;;  %v3785_v31 = vpack.c.bf16 %v3745_v21, %v3737_v2  ;;  %v3626_v32 = vadd.f32 %v7118_v14, %v6643_v6  ;;  %v3730_v8 = vmax.f32 %v3631_v18, 0.0 }
 0x593   : > { %v3794_v0 = vpack.c.bf16 %v3762_v33, %v3754_v15  ;;  %4053 = vmatpush.bf16.msra.mxu0 %v3787_v19  ;;  %v3786_v22 = vpack.c.bf16 %v3746_v9, %v3738_v40  ;;  %v3721_v45 = vmax.f32 %v3600_v1, 0.0  ;;  %v3768_v63 = vpack.c.bf16 %v3712_v37, %v3704_v59 }
 0x594   : > { %3994 = vmatpush.bf16.msra.mxu2 %v3793_v4  ;;  %v3377_v41 = vpop.xlane.xlu0 %3376  ;;  %v3624_v14 = vadd.f32 %v7108_v47, %v6618_v43  ;;  %v3771_v49 = vpack.c.bf16 %v3715_v13, %v3707_v55  ;;  %v3722_v53 = vmax.f32 %v3629_v12, 0.0  ;;  %v3713_v11 = vmax.f32 %v3597_v27, 0.0 }
 0x595   : > { %4023 = vmatpush.bf16.msra.mxu3 %v3794_v0  ;;  %v3395_v20 = vsub.f32 %v3377_v41, %v7043_v10  ;;  %v3595_v10 = vadd.f32 %v7104_v38, %v6618_v43  ;;  %v3777_v38 = vpack.c.bf16 %v3729_v3, %v3721_v45  ;;  %v3714_v16 = vmax.f32 %v3626_v32, 0.0 }
 0x596   : > { %3967 = vmatpush.bf16.msrb.mxu1 %v3776_v61  ;;  %v3778_v7 = vpack.c.bf16 %v3730_v8, %v3722_v53  ;;  %v3706_v54 = vmax.f32 %v3624_v14, 0.0 }
 0x597   : > { %v7191_v36 = vpop.eup %5322  ;;  %v3405_v60 = vmul.f32 1.442695, %v3395_v20  ;;  %4054 = vmatpush.bf16.msra.mxu0 %v3779_v57  ;;  %v7195_v52 = vpop.f32.mrf.mxu1  ;;  %v3705_v23 = vmax.f32 %v3595_v10, 0.0 }
 0x598   : > { %3995 = vmatpush.bf16.msra.mxu2 %v3785_v31  ;;  %v3420_v28 = vsel %vm2454_vm0, %v7191_v36, 0.0  ;;  %v3770_v37 = vpack.c.bf16 %v3714_v16, %v3706_v54 }
 0x599   : > { %5324 = vpow2.f32 %v3405_v60  ;;  %4024 = vmatpush.bf16.msra.mxu3 %v3786_v22  ;;  %3421 = vadd.xlane.f32.xlu1 %v3420_v28  ;;  %v3769_v59 = vpack.c.bf16 %v3713_v11, %v3705_v23 }
 0x59a   : > { %3968 = vmatpush.bf16.msrb.mxu1 %v3768_v63 }
 0x59b   : > { %4055 = vmatpush.bf16.msra.mxu0 %v3771_v49 }
 0x59c   : > { %3996 = vmatpush.bf16.msra.mxu2 %v3777_v38  ;;  %v3380_v29 = vpop.xlane.xlu1 %3379  ;;  %v3682_v38 = vadd.f32 %v7174_v51, %v6618_v43 }
 0x59d   : > { %4025 = vmatpush.bf16.msra.mxu3 %v3778_v7  ;;  %v3396_v26 = vsub.f32 %v3380_v29, %v7053_v42 }
 0x59e   : > { %v3708_v23 = vmax.f32 %v3682_v38, 0.0 }
 0x59f   : > { %v7208_v47 = vpop.eup %5324  ;;  %v3407_v19 = vmul.f32 1.442695, %v3396_v26  ;;  %v3686_v15 = vpop.f32.mrf.mxu1 }
 0x5a0   : > { %3997 = vmatpush.bf16.msra.mxu2 %v3769_v59  ;;  %v3423_v33 = vsel %vm2454_vm0, %v7208_v47, 0.0 }
 0x5a1   : > { %5326 = vpow2.f32 %v3407_v19  ;;  %4026 = vmatpush.bf16.msra.mxu3 %v3770_v37  ;;  %3424 = vadd.xlane.f32.xlu2 %v3423_v33 }
 0x5a4   : > { %v3383_v17 = vpop.xlane.xlu2 %3382 }
 0x5a5   : > { %v3397_v24 = vsub.f32 %v3383_v17, %v7057_v44 }
 0x5a7   : > { %v7213_v21 = vpop.eup %5326  ;;  %v3409_v4 = vmul.f32 1.442695, %v3397_v24  ;;  %v3688_v42 = vpop.f32.mrf.mxu1 }
 0x5a8   : > { %v3426_v50 = vsel %vm2454_vm0, %v7213_v21, 0.0  ;;  %v3689_v63 = vadd.f32 %v3688_v42, %v6602_v30 }
 0x5a9   : > { %5328 = vpow2.f32 %v3409_v4  ;;  %3427 = vadd.xlane.f32.xlu0 %v3426_v50 }
 0x5ac   : > { %v3386_v18 = vpop.xlane.xlu0 %3385 }
 0x5ad   : > { %v3398_v9 = vsub.f32 %v3386_v18, %v7063_v62 }
 0x5af   : > { %v7218_v0 = vpop.eup %5328  ;;  %v3411_v13 = vmul.f32 1.442695, %v3398_v9  ;;  %v3691_v1 = vpop.f32.mrf.mxu1 }
 0x5b0   : > { %v3429_v2 = vsel %vm2454_vm0, %v7218_v0, 0.0  ;;  %v3692_v10 = vadd.f32 %v3691_v1, %v6516_v39 }
 0x5b1   : > { %5330 = vpow2.f32 %v3411_v13  ;;  %3430 = vadd.xlane.f32.xlu1 %v3429_v2 }
 0x5b2   : > { %v3740_v53 = vmax.f32 %v3692_v10, 0.0 }
 0x5b4   : > { %v3389_v44 = vpop.xlane.xlu1 %3388 }
 0x5b5   : > { %v3399_v41 = vsub.f32 %v3389_v44, %v7067_v58 }
 0x5b7   : > { %v7223_v61 = vpop.eup %5330  ;;  %v3413_v12 = vmul.f32 1.442695, %v3399_v41  ;;  %v3693_v57 = vpop.f32.mrf.mxu1 }
 0x5b8   : > { %v3432_v40 = vsel %vm2454_vm0, %v7223_v61, 0.0  ;;  %v3694_v22 = vadd.f32 %v3693_v57, %v6550_v5  ;;  %v3684_v5 = vadd.f32 %v7195_v52, %v6643_v6 }
 0x5b9   : > { %5332 = vpow2.f32 %v3413_v12  ;;  %3433 = vadd.xlane.f32.xlu2 %v3432_v40 }
 0x5ba   : > { %v3748_v14 = vmax.f32 %v3694_v22, 0.0  ;;  %v3716_v39 = vmax.f32 %v3684_v5, 0.0  ;;  %v4916_v5 = vld [vmem:[%s5636_s16 + $0x248] sm:$0xff] }
 0x5bc   : > { %v3392_v62 = vpop.xlane.xlu2 %3391  ;;  %v3788_v11 = vpack.c.bf16 %v3748_v14, %v3740_v53  ;;  %v3772_v30 = vpack.c.bf16 %v3716_v39, %v3708_v23  ;;  %v4915_v53 = vld [vmem:[%s5636_s16 + $0x240] sm:$0xff]  ;;  %v4925_v39 = vld [vmem:[%s5636_s16 + $0x290] sm:$0xff] }
 0x5bd   : > { %v3400_v20 = vsub.f32 %v3392_v62, %v7074_v46 }
 0x5bf   : > { %v7228_v55 = vpop.eup %5332  ;;  %v3415_v27 = vmul.f32 1.442695, %v3400_v20  ;;  %v3696_v3 = vpop.f32.mrf.mxu1 }
 0x5c0   : > { %v3435_v31 = vsel %vm2454_vm0, %v7228_v55, 0.0  ;;  %v3697_v58 = vadd.f32 %v3696_v3, %v6507_v56  ;;  %v3687_v56 = vadd.f32 %v3686_v15, %v6588_v48 }
 0x5c1   : > { %5334 = vpow2.f32 %v3415_v27  ;;  %3436 = vadd.xlane.f32.xlu0 %v3435_v31 }
 0x5c2   : > { %v3756_v45 = vmax.f32 %v3697_v58, 0.0  ;;  %v3724_v16 = vmax.f32 %v3687_v56, 0.0 }
 0x5c7   : > { %v7233_v32 = vpop.eup %5334  ;;  %v3698_v8 = vpop.f32.mrf.mxu1 }
 0x5c8   : > { %v3699_v60 = vadd.f32 %v3698_v8, %v6475_v35  ;;  %v3438_v46 = vsel %vm2454_vm0, %v7233_v32, 0.0  ;;  %v3732_v35 = vmax.f32 %v3689_v63, 0.0  ;;  %v4908_v8 = vld [vmem:[%s5636_s16 + $0x208] sm:$0xff] }
 0x5c9   : > { %3439 = vadd.xlane.f32.xlu1 %v3438_v46 }
 0x5ca   : > { %v3764_v28 = vmax.f32 %v3699_v60, 0.0  ;;  %v3780_v7 = vpack.c.bf16 %v3732_v35, %v3724_v16 }
 0x5cc   : > { %v3796_v49 = vpack.c.bf16 %v3764_v28, %v3756_v45  ;;  %v4917_v45 = vld [vmem:[%s5636_s16 + $0x250] sm:$0xff]  ;;  %v4918_v28 = vld [vmem:[%s5636_s16 + $0x258] sm:$0xff] }
 0x5ce   : > { %4081 = vmatpush.bf16.msra.mxu1 %v3796_v49 }
 0x5d2   : > { %4082 = vmatpush.bf16.msra.mxu1 %v3788_v11 }
 0x5d6   : > { %4083 = vmatpush.bf16.msra.mxu1 %v3780_v7  ;;  %v4926_v7 = vld [vmem:[%s5636_s16 + $0x298] sm:$0xff] }
 0x5da   : > { %4084 = vmatpush.bf16.msra.mxu1 %v3772_v30 }
 0x604   : > { %v3419_v29 = vpop.xlane.xlu0 %3418 }
 0x605   : > { %5336 = vrcp.f32 %v3419_v29 }
 0x60b   : > { %v5337_v54 = vpop.eup %5336 }
 0x60c   : > { %v3422_v48 = vpop.xlane.xlu1 %3421  ;;  %v3449_v6 = vmul.f32 %v5337_v54, %v6689_v34  ;;  %v4923_v54 = vld [vmem:[%s5636_s16 + $0x280] sm:$0xff] }
 0x60d   : > { %5338 = vrcp.f32 %v3422_v48 }
 0x60e   : > { %v3457_v43 = vmul.f32 %v7169_v25, %v3449_v6  ;;  %v4924_v6 = vld [vmem:[%s5636_s16 + $0x288] sm:$0xff] }
 0x613   : > { %v5339_v52 = vpop.eup %5338 }
 0x614   : > { %v3450_v26 = vmul.f32 %v5339_v52, %v6689_v34  ;;  %v3425_v59 = vpop.xlane.xlu2 %3424 }
 0x615   : > { %5340 = vrcp.f32 %v3425_v59  ;;  %v4933_v59 = vld [vmem:[%s5636_s16 + $0x2d0] sm:$0xff] }
 0x616   : > { %v3458_v51 = vmul.f32 %v7191_v36, %v3450_v26 }
 0x618   : > { %v3465_v37 = vpack.c.bf16 %v3458_v51, %v3457_v43 }
 0x61a   : > { %4971 = vmatmul.msk.bf16.vlgmr.msrb.gmra.mxu2 %vm2454_vm0, %v3465_v37  ;;  %4975 = vmatmul.msk.bf16.vlgmr.msrb.gmra.mxu3 %vm2454_vm0, %v3465_v37 }
 0x61b   : > { %4979 = vmatmul.msk.bf16.vlgmr.msrb.gmra.mxu0 %vm2454_vm0, %v3465_v37  ;;  %4983 = vmatmul.msk.bf16.vlgmr.msrb.gmra.mxu1 %vm2454_vm0, %v3465_v37  ;;  %v5341_v15 = vpop.eup %5340 }
 0x61c   : > { %v3428_v19 = vpop.xlane.xlu0 %3427  ;;  %v3451_v33 = vmul.f32 %v5341_v15, %v6689_v34 }
 0x61d   : > { %5342 = vrcp.f32 %v3428_v19 }
 0x61e   : > { %v3459_v36 = vmul.f32 %v7208_v47, %v3451_v33 }
 0x623   : > { %v5343_v17 = vpop.eup %5342 }
 0x624   : > { %v3452_v25 = vmul.f32 %v5343_v17, %v6689_v34  ;;  %v3431_v4 = vpop.xlane.xlu1 %3430 }
 0x625   : > { %5344 = vrcp.f32 %v3431_v4 }
 0x626   : > { %v3460_v24 = vmul.f32 %v7213_v21, %v3452_v25  ;;  %v4931_v25 = vld [vmem:[%s5636_s16 + $0x2c0] sm:$0xff] }
 0x628   : > { %v3466_v42 = vpack.c.bf16 %v3460_v24, %v3459_v36  ;;  %v4932_v36 = vld [vmem:[%s5636_s16 + $0x2c8] sm:$0xff] }
 0x62a   : > { %4972 = vmatmul.msk.bf16.gmra.mxu2 %vm2454_vm0, %v3466_v42  ;;  %4976 = vmatmul.msk.bf16.gmra.mxu3 %vm2454_vm0, %v3466_v42 }
 0x62b   : > { %4980 = vmatmul.msk.bf16.gmra.mxu0 %vm2454_vm0, %v3466_v42  ;;  %4984 = vmatmul.msk.bf16.gmra.mxu1 %vm2454_vm0, %v3466_v42  ;;  %v5345_v18 = vpop.eup %5344 }
 0x62c   : > { %v3434_v50 = vpop.xlane.xlu2 %3433  ;;  %v3453_v9 = vmul.f32 %v5345_v18, %v6689_v34  ;;  %v4941_v18 = vld [vmem:[%s5636_s16 + $0x310] sm:$0xff] }
 0x62d   : > { %5346 = vrcp.f32 %v3434_v50 }
 0x62e   : > { %v3461_v21 = vmul.f32 %v7218_v0, %v3453_v9  ;;  %v4942_v9 = vld [vmem:[%s5636_s16 + $0x318] sm:$0xff] }
 0x633   : > { %v5347_v13 = vpop.eup %5346 }
 0x634   : > { %v3454_v47 = vmul.f32 %v5347_v13, %v6689_v34  ;;  %v3437_v2 = vpop.xlane.xlu0 %3436 }
 0x635   : > { %5348 = vrcp.f32 %v3437_v2  ;;  %v4939_v2 = vld [vmem:[%s5636_s16 + $0x300] sm:$0xff] }
 0x636   : > { %v3462_v1 = vmul.f32 %v7223_v61, %v3454_v47 }
 0x638   : > { %v3467_v44 = vpack.c.bf16 %v3462_v1, %v3461_v21 }
 0x63a   : > { %4973 = vmatmul.msk.bf16.gmra.mxu2 %vm2454_vm0, %v3467_v44  ;;  %4977 = vmatmul.msk.bf16.gmra.mxu3 %vm2454_vm0, %v3467_v44 }
 0x63b   : > { %4981 = vmatmul.msk.bf16.gmra.mxu0 %vm2454_vm0, %v3467_v44  ;;  %4985 = vmatmul.msk.bf16.gmra.mxu1 %vm2454_vm0, %v3467_v44  ;;  %v5349_v12 = vpop.eup %5348 }
 0x63c   : > { %v3440_v41 = vpop.xlane.xlu1 %3439  ;;  %v3455_v57 = vmul.f32 %v5349_v12, %v6689_v34 }
 0x63d   : > { %5350 = vrcp.f32 %v3440_v41 }
 0x63e   : > { %v3463_v61 = vmul.f32 %v7228_v55, %v3455_v57  ;;  %v4910_v55 = vld [vmem:[%s5636_s16 + $0x218] sm:$0xff] }
 0x643   : > { %v5351_v40 = vpop.eup %5350 }
 0x644   : > { %v3456_v0 = vmul.f32 %v5351_v40, %v6689_v34  ;;  %v4909_v34 = vld [vmem:[%s5636_s16 + $0x210] sm:$0xff] }
 0x646   : > { %v3464_v62 = vmul.f32 %v7233_v32, %v3456_v0  ;;  %v4907_v32 = vld [vmem:[%s5636_s16 + $0x200] sm:$0xff]  ;;  %v4949_v0 = vld [vmem:[%s5636_s16 + $0x350] sm:$0xff] }
 0x648   : > { %v3468_v20 = vpack.c.bf16 %v3464_v62, %v3463_v61  ;;  %v4950_v61 = vld [vmem:[%s5636_s16 + $0x358] sm:$0xff] }
 0x64a   : > { %4974 = vmatmul.msk.bf16.gmra.mxu2 %vm2454_vm0, %v3468_v20  ;;  %4978 = vmatmul.msk.bf16.gmra.mxu3 %vm2454_vm0, %v3468_v20 }
 0x64b   : > { %4982 = vmatmul.msk.bf16.gmra.mxu0 %vm2454_vm0, %v3468_v20  ;;  %4986 = vmatmul.msk.bf16.gmra.mxu1 %vm2454_vm0, %v3468_v20 }
 0x65a   : > { %4987 = vmatmul.msk.bf16.vlgmr.msra.gmra.mxu2 %vm2454_vm0, %v3465_v37  ;;  %4991 = vmatmul.msk.bf16.vlgmr.msra.gmra.mxu3 %vm2454_vm0, %v3465_v37 }
 0x65b   : > { %4995 = vmatmul.msk.bf16.vlgmr.msra.gmra.mxu0 %vm2454_vm0, %v3465_v37  ;;  %4999 = vmatmul.msk.bf16.vlgmr.msra.gmra.mxu1 %vm2454_vm0, %v3465_v37  ;;  %v4934_v37 = vld [vmem:[%s5636_s16 + $0x2d8] sm:$0xff] }
 0x66a   : > { %4988 = vmatmul.msk.bf16.gmra.mxu2 %vm2454_vm0, %v3466_v42  ;;  %4992 = vmatmul.msk.bf16.gmra.mxu3 %vm2454_vm0, %v3466_v42 }
 0x66b   : > { %4996 = vmatmul.msk.bf16.gmra.mxu0 %vm2454_vm0, %v3466_v42  ;;  %5000 = vmatmul.msk.bf16.gmra.mxu1 %vm2454_vm0, %v3466_v42 }
 0x67a   : > { %4989 = vmatmul.msk.bf16.gmra.mxu2 %vm2454_vm0, %v3467_v44  ;;  %4993 = vmatmul.msk.bf16.gmra.mxu3 %vm2454_vm0, %v3467_v44 }
 0x67b   : > { %4997 = vmatmul.msk.bf16.gmra.mxu0 %vm2454_vm0, %v3467_v44  ;;  %5001 = vmatmul.msk.bf16.gmra.mxu1 %vm2454_vm0, %v3467_v44  ;;  %v4940_v44 = vld [vmem:[%s5636_s16 + $0x308] sm:$0xff] }
 0x68a   : > { %4990 = vmatmul.msk.bf16.gmra.mxu2 %vm2454_vm0, %v3468_v20  ;;  %4994 = vmatmul.msk.bf16.gmra.mxu3 %vm2454_vm0, %v3468_v20 }
 0x68b   : > { %4998 = vmatmul.msk.bf16.gmra.mxu0 %vm2454_vm0, %v3468_v20  ;;  %5002 = vmatmul.msk.bf16.gmra.mxu1 %vm2454_vm0, %v3468_v20 }
 0x698   : > { %v3941_v27 = vpop.f32.mrf.mxu0  ;;  %v3970_v3 = vpop.f32.mrf.mxu1 }
 0x699   : > { %v3942_v31 = vadd.f32 %v4909_v34, %v3941_v27  ;;  %v3971_v58 = vadd.f32 %v4910_v55, %v3970_v3  ;;  %v4947_v27 = vld [vmem:[%s5636_s16 + $0x340] sm:$0xff]  ;;  %v4948_v3 = vld [vmem:[%s5636_s16 + $0x348] sm:$0xff] }
 0x69b   : > { %5005 = vst [vmem:[%s6799_s10 + $0x210] sm:$0xff] %v3942_v31 }
 0x69c   : > { %5006 = vst [vmem:[%s6799_s10 + $0x218] sm:$0xff] %v3971_v58 }
 0x69d   : > { %v3883_v22 = vpop.f32.mrf.mxu2  ;;  %v3912_v60 = vpop.f32.mrf.mxu3 }
 0x69e   : > { %v3884_v46 = vadd.f32 %v4907_v32, %v3883_v22  ;;  %v3913_v10 = vadd.f32 %v4908_v8, %v3912_v60  ;;  %v4957_v22 = vld [vmem:[%s5636_s16 + $0x390] sm:$0xff]  ;;  %v4958_v60 = vld [vmem:[%s5636_s16 + $0x398] sm:$0xff] }
 0x6a0   : > { %5003 = vst [vmem:[%s6799_s10 + $0x200] sm:$0xff] %v3884_v46  ;;  %v3943_v63 = vpop.f32.mrf.mxu0  ;;  %v3972_v14 = vpop.f32.mrf.mxu1 }
 0x6a1   : > { %5004 = vst [vmem:[%s6799_s10 + $0x208] sm:$0xff] %v3913_v10  ;;  %v3944_v49 = vadd.f32 %v4917_v45, %v3943_v63  ;;  %v3973_v56 = vadd.f32 %v4918_v28, %v3972_v14  ;;  %v4955_v63 = vld [vmem:[%s5636_s16 + $0x380] sm:$0xff]  ;;  %v4956_v14 = vld [vmem:[%s5636_s16 + $0x388] sm:$0xff] }
 0x6a3   : > { %5013 = vst [vmem:[%s6799_s10 + $0x250] sm:$0xff] %v3944_v49 }
 0x6a4   : > { %5014 = vst [vmem:[%s6799_s10 + $0x258] sm:$0xff] %v3973_v56 }
 0x6a5   : > { %v3885_v35 = vpop.f32.mrf.mxu2  ;;  %v3914_v11 = vpop.f32.mrf.mxu3 }
 0x6a6   : > { %v3886_v38 = vadd.f32 %v4915_v53, %v3885_v35  ;;  %v3915_v16 = vadd.f32 %v4916_v5, %v3914_v11  ;;  %v4965_v35 = vld [vmem:[%s5636_s16 + $0x3d0] sm:$0xff]  ;;  %v4966_v11 = vld [vmem:[%s5636_s16 + $0x3d8] sm:$0xff] }
 0x6a8   : > { %5011 = vst [vmem:[%s6799_s10 + $0x240] sm:$0xff] %v3886_v38  ;;  %v3946_v23 = vpop.f32.mrf.mxu0  ;;  %v3975_v30 = vpop.f32.mrf.mxu1 }
 0x6a9   : > { %5012 = vst [vmem:[%s6799_s10 + $0x248] sm:$0xff] %v3915_v16  ;;  %v3947_v29 = vadd.f32 %v4925_v39, %v3946_v23  ;;  %v3976_v48 = vadd.f32 %v4926_v7, %v3975_v30  ;;  %v4963_v23 = vld [vmem:[%s5636_s16 + $0x3c0] sm:$0xff]  ;;  %v4964_v30 = vld [vmem:[%s5636_s16 + $0x3c8] sm:$0xff] }
 0x6ab   : > { %5021 = vst [vmem:[%s6799_s10 + $0x290] sm:$0xff] %v3947_v29 }
 0x6ac   : > { %5022 = vst [vmem:[%s6799_s10 + $0x298] sm:$0xff] %v3976_v48 }
 0x6ad   : > { %v3888_v52 = vpop.f32.mrf.mxu2  ;;  %v3917_v26 = vpop.f32.mrf.mxu3 }
 0x6ae   : > { %v3889_v43 = vadd.f32 %v4923_v54, %v3888_v52  ;;  %v3918_v51 = vadd.f32 %v4924_v6, %v3917_v26  ;;  %v4913_v52 = vld [vmem:[%s5636_s16 + $0x230] sm:$0xff]  ;;  %v4914_v26 = vld [vmem:[%s5636_s16 + $0x238] sm:$0xff] }
 0x6b0   : > { %5019 = vst [vmem:[%s6799_s10 + $0x280] sm:$0xff] %v3889_v43  ;;  %v3948_v19 = vpop.f32.mrf.mxu0  ;;  %v3977_v15 = vpop.f32.mrf.mxu1 }
 0x6b1   : > { %5020 = vst [vmem:[%s6799_s10 + $0x288] sm:$0xff] %v3918_v51  ;;  %v3949_v33 = vadd.f32 %v4933_v59, %v3948_v19  ;;  %v3978_v17 = vadd.f32 %v4934_v37, %v3977_v15  ;;  %v4911_v19 = vld [vmem:[%s5636_s16 + $0x220] sm:$0xff]  ;;  %v4912_v15 = vld [vmem:[%s5636_s16 + $0x228] sm:$0xff] }
 0x6b3   : > { %5029 = vst [vmem:[%s6799_s10 + $0x2d0] sm:$0xff] %v3949_v33 }
 0x6b4   : > { %5030 = vst [vmem:[%s6799_s10 + $0x2d8] sm:$0xff] %v3978_v17 }
 0x6b5   : > { %v3890_v24 = vpop.f32.mrf.mxu2  ;;  %v3919_v4 = vpop.f32.mrf.mxu3 }
 0x6b6   : > { %v3891_v42 = vadd.f32 %v4931_v25, %v3890_v24  ;;  %v3920_v50 = vadd.f32 %v4932_v36, %v3919_v4  ;;  %v4921_v24 = vld [vmem:[%s5636_s16 + $0x270] sm:$0xff]  ;;  %v4922_v4 = vld [vmem:[%s5636_s16 + $0x278] sm:$0xff] }
 0x6b8   : > { %5027 = vst [vmem:[%s6799_s10 + $0x2c0] sm:$0xff] %v3891_v42  ;;  %v3951_v13 = vpop.f32.mrf.mxu0  ;;  %v3980_v47 = vpop.f32.mrf.mxu1 }
 0x6b9   : > { %5028 = vst [vmem:[%s6799_s10 + $0x2c8] sm:$0xff] %v3920_v50  ;;  %v3952_v21 = vadd.f32 %v4941_v18, %v3951_v13  ;;  %v3981_v1 = vadd.f32 %v4942_v9, %v3980_v47  ;;  %v4919_v13 = vld [vmem:[%s5636_s16 + $0x260] sm:$0xff]  ;;  %v4920_v47 = vld [vmem:[%s5636_s16 + $0x268] sm:$0xff] }
 0x6bb   : > { %5037 = vst [vmem:[%s6799_s10 + $0x310] sm:$0xff] %v3952_v21 }
 0x6bc   : > { %5038 = vst [vmem:[%s6799_s10 + $0x318] sm:$0xff] %v3981_v1 }
 0x6bd   : > { %v3893_v41 = vpop.f32.mrf.mxu2  ;;  %v3922_v12 = vpop.f32.mrf.mxu3 }
 0x6be   : > { %v3894_v57 = vadd.f32 %v4939_v2, %v3893_v41  ;;  %v3923_v40 = vadd.f32 %v4940_v44, %v3922_v12  ;;  %v4929_v41 = vld [vmem:[%s5636_s16 + $0x2b0] sm:$0xff]  ;;  %v4930_v12 = vld [vmem:[%s5636_s16 + $0x2b8] sm:$0xff] }
 0x6c0   : > { %5035 = vst [vmem:[%s6799_s10 + $0x300] sm:$0xff] %v3894_v57  ;;  %v3953_v62 = vpop.f32.mrf.mxu0  ;;  %v3982_v20 = vpop.f32.mrf.mxu1 }
 0x6c1   : > { %5036 = vst [vmem:[%s6799_s10 + $0x308] sm:$0xff] %v3923_v40  ;;  %v3954_v34 = vadd.f32 %v4949_v0, %v3953_v62  ;;  %v3983_v55 = vadd.f32 %v4950_v61, %v3982_v20  ;;  %v4927_v62 = vld [vmem:[%s5636_s16 + $0x2a0] sm:$0xff]  ;;  %v4928_v20 = vld [vmem:[%s5636_s16 + $0x2a8] sm:$0xff] }
 0x6c3   : > { %5045 = vst [vmem:[%s6799_s10 + $0x350] sm:$0xff] %v3954_v34 }
 0x6c4   : > { %5046 = vst [vmem:[%s6799_s10 + $0x358] sm:$0xff] %v3983_v55 }
 0x6c5   : > { %v3895_v31 = vpop.f32.mrf.mxu2  ;;  %v3924_v58 = vpop.f32.mrf.mxu3 }
 0x6c6   : > { %v3896_v32 = vadd.f32 %v4947_v27, %v3895_v31  ;;  %v3925_v8 = vadd.f32 %v4948_v3, %v3924_v58  ;;  %v4937_v31 = vld [vmem:[%s5636_s16 + $0x2f0] sm:$0xff]  ;;  %v4938_v58 = vld [vmem:[%s5636_s16 + $0x2f8] sm:$0xff] }
 0x6c8   : > { %5043 = vst [vmem:[%s6799_s10 + $0x340] sm:$0xff] %v3896_v32  ;;  %v3956_v46 = vpop.f32.mrf.mxu0  ;;  %v3985_v10 = vpop.f32.mrf.mxu1 }
 0x6c9   : > { %5044 = vst [vmem:[%s6799_s10 + $0x348] sm:$0xff] %v3925_v8  ;;  %v3957_v45 = vadd.f32 %v4957_v22, %v3956_v46  ;;  %v3986_v28 = vadd.f32 %v4958_v60, %v3985_v10  ;;  %v4935_v46 = vld [vmem:[%s5636_s16 + $0x2e0] sm:$0xff]  ;;  %v4936_v10 = vld [vmem:[%s5636_s16 + $0x2e8] sm:$0xff] }
 0x6cb   : > { %5053 = vst [vmem:[%s6799_s10 + $0x390] sm:$0xff] %v3957_v45 }
 0x6cc   : > { %5054 = vst [vmem:[%s6799_s10 + $0x398] sm:$0xff] %v3986_v28 }
 0x6cd   : > { %v3898_v49 = vpop.f32.mrf.mxu2  ;;  %v3927_v56 = vpop.f32.mrf.mxu3 }
 0x6ce   : > { %v3899_v53 = vadd.f32 %v4955_v63, %v3898_v49  ;;  %v3928_v5 = vadd.f32 %v4956_v14, %v3927_v56  ;;  %v4945_v49 = vld [vmem:[%s5636_s16 + $0x330] sm:$0xff]  ;;  %v4946_v56 = vld [vmem:[%s5636_s16 + $0x338] sm:$0xff] }
 0x6d0   : > { %5051 = vst [vmem:[%s6799_s10 + $0x380] sm:$0xff] %v3899_v53  ;;  %v3958_v38 = vpop.f32.mrf.mxu0  ;;  %v3987_v16 = vpop.f32.mrf.mxu1 }
 0x6d1   : > { %5052 = vst [vmem:[%s6799_s10 + $0x388] sm:$0xff] %v3928_v5  ;;  %v3959_v39 = vadd.f32 %v4965_v35, %v3958_v38  ;;  %v3988_v7 = vadd.f32 %v4966_v11, %v3987_v16  ;;  %v4943_v38 = vld [vmem:[%s5636_s16 + $0x320] sm:$0xff]  ;;  %v4944_v16 = vld [vmem:[%s5636_s16 + $0x328] sm:$0xff] }
 0x6d3   : > { %5061 = vst [vmem:[%s6799_s10 + $0x3d0] sm:$0xff] %v3959_v39 }
 0x6d4   : > { %5062 = vst [vmem:[%s6799_s10 + $0x3d8] sm:$0xff] %v3988_v7 }
 0x6d5   : > { %v3900_v29 = vpop.f32.mrf.mxu2  ;;  %v3929_v48 = vpop.f32.mrf.mxu3 }
 0x6d6   : > { %v3901_v54 = vadd.f32 %v4963_v23, %v3900_v29  ;;  %v3930_v6 = vadd.f32 %v4964_v30, %v3929_v48  ;;  %v4953_v29 = vld [vmem:[%s5636_s16 + $0x370] sm:$0xff]  ;;  %v4954_v48 = vld [vmem:[%s5636_s16 + $0x378] sm:$0xff] }
 0x6d8   : > { %5059 = vst [vmem:[%s6799_s10 + $0x3c0] sm:$0xff] %v3901_v54  ;;  %v4057_v43 = vpop.f32.mrf.mxu0  ;;  %v4086_v51 = vpop.f32.mrf.mxu1 }
 0x6d9   : > { %5060 = vst [vmem:[%s6799_s10 + $0x3c8] sm:$0xff] %v3930_v6  ;;  %v4058_v59 = vadd.f32 %v4913_v52, %v4057_v43  ;;  %v4087_v37 = vadd.f32 %v4914_v26, %v4086_v51  ;;  %v4951_v43 = vld [vmem:[%s5636_s16 + $0x360] sm:$0xff]  ;;  %v4952_v51 = vld [vmem:[%s5636_s16 + $0x368] sm:$0xff] }
 0x6db   : > { %5009 = vst [vmem:[%s6799_s10 + $0x230] sm:$0xff] %v4058_v59 }
 0x6dc   : > { %5010 = vst [vmem:[%s6799_s10 + $0x238] sm:$0xff] %v4087_v37 }
 0x6dd   : > { %v3999_v33 = vpop.f32.mrf.mxu2  ;;  %v4028_v17 = vpop.f32.mrf.mxu3 }
 0x6de   : > { %v4000_v25 = vadd.f32 %v4911_v19, %v3999_v33  ;;  %v4029_v36 = vadd.f32 %v4912_v15, %v4028_v17  ;;  %v4961_v33 = vld [vmem:[%s5636_s16 + $0x3b0] sm:$0xff]  ;;  %v4962_v17 = vld [vmem:[%s5636_s16 + $0x3b8] sm:$0xff] }
 0x6e0   : > { %5007 = vst [vmem:[%s6799_s10 + $0x220] sm:$0xff] %v4000_v25  ;;  %v4059_v42 = vpop.f32.mrf.mxu0  ;;  %v4088_v50 = vpop.f32.mrf.mxu1 }
 0x6e1   : > { %5008 = vst [vmem:[%s6799_s10 + $0x228] sm:$0xff] %v4029_v36  ;;  %v4060_v18 = vadd.f32 %v4921_v24, %v4059_v42  ;;  %v4089_v9 = vadd.f32 %v4922_v4, %v4088_v50  ;;  %v4959_v42 = vld [vmem:[%s5636_s16 + $0x3a0] sm:$0xff]  ;;  %v4960_v50 = vld [vmem:[%s5636_s16 + $0x3a8] sm:$0xff] }
 0x6e3   : > { %5017 = vst [vmem:[%s6799_s10 + $0x270] sm:$0xff] %v4060_v18 }
 0x6e4   : > { %5018 = vst [vmem:[%s6799_s10 + $0x278] sm:$0xff] %v4089_v9 }
 0x6e5   : > { %v4001_v21 = vpop.f32.mrf.mxu2  ;;  %v4030_v1 = vpop.f32.mrf.mxu3 }
 0x6e6   : > { %v4002_v2 = vadd.f32 %v4919_v13, %v4001_v21  ;;  %v4031_v44 = vadd.f32 %v4920_v47, %v4030_v1  ;;  %v4969_v21 = vld [vmem:[%s5636_s16 + $0x3f0] sm:$0xff]  ;;  %v4970_v1 = vld [vmem:[%s5636_s16 + $0x3f8] sm:$0xff] }
 0x6e8   : > { %5015 = vst [vmem:[%s6799_s10 + $0x260] sm:$0xff] %v4002_v2  ;;  %v4062_v57 = vpop.f32.mrf.mxu0  ;;  %v4091_v40 = vpop.f32.mrf.mxu1 }
 0x6e9   : > { %5016 = vst [vmem:[%s6799_s10 + $0x268] sm:$0xff] %v4031_v44  ;;  %v4063_v0 = vadd.f32 %v4929_v41, %v4062_v57  ;;  %v4092_v61 = vadd.f32 %v4930_v12, %v4091_v40  ;;  %v4967_v57 = vld [vmem:[%s5636_s16 + $0x3e0] sm:$0xff]  ;;  %v4968_v40 = vld [vmem:[%s5636_s16 + $0x3e8] sm:$0xff] }
 0x6eb   : > { %5025 = vst [vmem:[%s6799_s10 + $0x2b0] sm:$0xff] %v4063_v0 }
 0x6ec   : > { %5026 = vst [vmem:[%s6799_s10 + $0x2b8] sm:$0xff] %v4092_v61 }
 0x6ed   : > { %v4004_v34 = vpop.f32.mrf.mxu2  ;;  %v4033_v55 = vpop.f32.mrf.mxu3 }
 0x6ee   : > { %v4005_v27 = vadd.f32 %v4927_v62, %v4004_v34  ;;  %v4034_v3 = vadd.f32 %v4928_v20, %v4033_v55 }
 0x6f0   : > { %5023 = vst [vmem:[%s6799_s10 + $0x2a0] sm:$0xff] %v4005_v27  ;;  %v4064_v32 = vpop.f32.mrf.mxu0  ;;  %v4093_v8 = vpop.f32.mrf.mxu1 }
 0x6f1   : > { %5024 = vst [vmem:[%s6799_s10 + $0x2a8] sm:$0xff] %v4034_v3  ;;  %v4065_v22 = vadd.f32 %v4937_v31, %v4064_v32  ;;  %v4094_v60 = vadd.f32 %v4938_v58, %v4093_v8 }
 0x6f3   : > { %5033 = vst [vmem:[%s6799_s10 + $0x2f0] sm:$0xff] %v4065_v22 }
 0x6f4   : > { %5034 = vst [vmem:[%s6799_s10 + $0x2f8] sm:$0xff] %v4094_v60 }
 0x6f5   : > { %v4006_v45 = vpop.f32.mrf.mxu2  ;;  %v4035_v28 = vpop.f32.mrf.mxu3 }
 0x6f6   : > { %v4007_v63 = vadd.f32 %v4935_v46, %v4006_v45  ;;  %v4036_v14 = vadd.f32 %v4936_v10, %v4035_v28 }
 0x6f8   : > { %5031 = vst [vmem:[%s6799_s10 + $0x2e0] sm:$0xff] %v4007_v63  ;;  %v4067_v53 = vpop.f32.mrf.mxu0  ;;  %v4096_v5 = vpop.f32.mrf.mxu1 }
 0x6f9   : > { %5032 = vst [vmem:[%s6799_s10 + $0x2e8] sm:$0xff] %v4036_v14  ;;  %v4068_v35 = vadd.f32 %v4945_v49, %v4067_v53  ;;  %v4097_v11 = vadd.f32 %v4946_v56, %v4096_v5 }
 0x6fb   : > { %5041 = vst [vmem:[%s6799_s10 + $0x330] sm:$0xff] %v4068_v35 }
 0x6fc   : > { %5042 = vst [vmem:[%s6799_s10 + $0x338] sm:$0xff] %v4097_v11 }
 0x6fd   : > { %v4009_v39 = vpop.f32.mrf.mxu2  ;;  %v4038_v7 = vpop.f32.mrf.mxu3 }
 0x6fe   : > { %v4010_v23 = vadd.f32 %v4943_v38, %v4009_v39  ;;  %v4039_v30 = vadd.f32 %v4944_v16, %v4038_v7 }
 0x700   : > { %5039 = vst [vmem:[%s6799_s10 + $0x320] sm:$0xff] %v4010_v23  ;;  %v4069_v54 = vpop.f32.mrf.mxu0  ;;  %v4098_v6 = vpop.f32.mrf.mxu1 }
 0x701   : > { %5040 = vst [vmem:[%s6799_s10 + $0x328] sm:$0xff] %v4039_v30  ;;  %v4070_v52 = vadd.f32 %v4953_v29, %v4069_v54  ;;  %v4099_v26 = vadd.f32 %v4954_v48, %v4098_v6 }
 0x703   : > { %5049 = vst [vmem:[%s6799_s10 + $0x370] sm:$0xff] %v4070_v52 }
 0x704   : > { %5050 = vst [vmem:[%s6799_s10 + $0x378] sm:$0xff] %v4099_v26 }
 0x705   : > { %v4011_v59 = vpop.f32.mrf.mxu2  ;;  %v4040_v37 = vpop.f32.mrf.mxu3 }
 0x706   : > { %v4012_v19 = vadd.f32 %v4951_v43, %v4011_v59  ;;  %v4041_v15 = vadd.f32 %v4952_v51, %v4040_v37 }
 0x708   : > { %5047 = vst [vmem:[%s6799_s10 + $0x360] sm:$0xff] %v4012_v19  ;;  %v4072_v25 = vpop.f32.mrf.mxu0  ;;  %v4101_v36 = vpop.f32.mrf.mxu1 }
 0x709   : > { %5048 = vst [vmem:[%s6799_s10 + $0x368] sm:$0xff] %v4041_v15  ;;  %v4073_v24 = vadd.f32 %v4961_v33, %v4072_v25  ;;  %v4102_v4 = vadd.f32 %v4962_v17, %v4101_v36 }
 0x70b   : > { %5057 = vst [vmem:[%s6799_s10 + $0x3b0] sm:$0xff] %v4073_v24 }
 0x70c   : > { %5058 = vst [vmem:[%s6799_s10 + $0x3b8] sm:$0xff] %v4102_v4 }
 0x70d   : > { %v4014_v18 = vpop.f32.mrf.mxu2  ;;  %v4043_v9 = vpop.f32.mrf.mxu3 }
 0x70e   : > { %v4015_v13 = vadd.f32 %v4959_v42, %v4014_v18  ;;  %v4044_v47 = vadd.f32 %v4960_v50, %v4043_v9 }
 0x710   : > { %5055 = vst [vmem:[%s6799_s10 + $0x3a0] sm:$0xff] %v4015_v13  ;;  %v4074_v2 = vpop.f32.mrf.mxu0  ;;  %v4103_v44 = vpop.f32.mrf.mxu1 }
 0x711   : > { %5056 = vst [vmem:[%s6799_s10 + $0x3a8] sm:$0xff] %v4044_v47  ;;  %v4075_v41 = vadd.f32 %v4969_v21, %v4074_v2  ;;  %v4104_v12 = vadd.f32 %v4970_v1, %v4103_v44 }
 0x713   : > { %5065 = vst [vmem:[%s6799_s10 + $0x3f0] sm:$0xff] %v4075_v41 }
 0x714   : > { %5066 = vst [vmem:[%s6799_s10 + $0x3f8] sm:$0xff] %v4104_v12 }
 0x715   : > { %v4016_v0 = vpop.f32.mrf.mxu2  ;;  %v4045_v61 = vpop.f32.mrf.mxu3 }
 0x716   : > { %v4017_v62 = vadd.f32 %v4967_v57, %v4016_v0  ;;  %v4046_v20 = vadd.f32 %v4968_v40, %v4045_v61 }
 0x718   : > { %5063 = vst [vmem:[%s6799_s10 + $0x3e0] sm:$0xff] %v4017_v62 }
 0x719   : > { %5064 = vst [vmem:[%s6799_s10 + $0x3e8] sm:$0xff] %v4046_v20 }
 0x71a   : > { %5444 = shalt.err (!%p5441_p10)
}
 0x71b   : > { %s5495_s8 = smov 1024   ;;  %s5496_s10 = smov 64  }
 0x71c   : > { %5227 = dma.vmem_to_hbm [thread:$0]  (%p5602_p7), %s4186_s0, 16384, %s4188_s7, %s4172_s14, %s5495_s8, %s5495_s8, %s5496_s10  }
 0x71d PF: > { %s4202_s19 = sand.u32 1, %s5475_s23   ;;  %p7788_p12 = scmp.ge.s32.totalorder %s5487_s26, 2 }
 0x71e   : > { %s4203_s30 = scalar_lea.sflag [#allocation5], %s4202_s19 }
 0x71f   : > { %p5238_p13 = pnand %p7788_p12, %p5570_p6 }
 0x721   : > { %p5239_p0 = pneg %p5238_p13 }
 0x723   : > { %5470 = dma.done.wait (%p5239_p0), %s4203_s30, 16384  }
 0x724   : > { %5472 = vsyncadd (%p5239_p0), %s4203_s30, 4294950912  ;;  %p21_p3 = scmp.ge.s32.totalorder %s5588_s12, 4   ;;  %s7789_s23 = smov %s5479_s24 }
 0x725   : > { %s7790_s24 = smov %s5483_s25  ;;  %s7791_s25 = smov %s5598_s17 }
 0x726   : > { %s7792_s26 = smov %s5588_s12  ;;  %23 = sbr.rel (!%p21_p3) target bundleno = 8 (0x8), region = 95 }
 0x72b   :  { %4209 = vsyncpa [#allocation4], 1 }
 0x72c   :  { %4211 = vsyncpa [#allocation4 + $0x1], 1 }
 0x72d   :  { %4212 = vsyncpa [#allocation7], 1 }
 0x72e   :  { %4213 = vsyncpa [#allocation5], 1 }
 0x72f   :  { %4215 = vsyncpa [#allocation5 + $0x1], 1 }

</bundles_post_ra>
